<compile_context>
chip_gen: v7x
topology: tpu7x:2x2x1
jax: 0.10.0
libtpu: 0.0.40
codegen_flags: <defaults>
</compile_context>

<pallas_src>
import functools
import math

import jax
import jax.numpy as jnp
from jax import lax
from jax.experimental import pallas as pl
from jax.experimental.pallas import tpu as pltpu


def _layernorm(v, g, b, eps=1e-5):
    # v: (M, E), g/b: (1, E) -- all f32
    mu = jnp.mean(v, axis=-1, keepdims=True)
    var = jnp.mean((v - mu) ** 2, axis=-1, keepdims=True)
    return (v - mu) * lax.rsqrt(var + eps) * g + b


def clip_layer_kernel(n_head, heads_per_group, mlp_chunk,
                      x_ref,
                      ln1_g, ln1_b,
                      w_q, w_k, w_v, b_q, b_k, b_v,
                      w_out, b_out,
                      ln2_g, ln2_b,
                      w1, b1, w2, b2,
                      o_ref,
                      attn_scratch):
    BT, S, E = x_ref.shape
    d_head = E // n_head
    inv_sqrt_dh = 1.0 / math.sqrt(d_head)
    cdt = w_q.dtype                               # MXU operand dtype (bfloat16 by default)
    M = BT * S                                    # fused rows; S is sublane-aligned (S % 8 == 0)

    x = x_ref[...].reshape(M, E)                  # (M, E) f32

    # ---------------- residual 1: LayerNorm -> causal multi-head self-attention ----------------
    residue = x
    xln = _layernorm(x, ln1_g[...], ln1_b[...]).astype(cdt)

    # q/k/v projections as three (E,E) dots; f32 intermediates are dropped immediately so only
    # the bf16 q (pre-scaled by 1/sqrt(d_head)), k, v survive across the head loop.
    q = jnp.dot(xln, w_q[...], preferred_element_type=jnp.float32) + b_q[...]
    q = (q * inv_sqrt_dh).astype(cdt).reshape(BT, S, E)
    k = (jnp.dot(xln, w_k[...], preferred_element_type=jnp.float32)
         + b_k[...]).astype(cdt).reshape(BT, S, E)
    v = (jnp.dot(xln, w_v[...], preferred_element_type=jnp.float32)
         + b_v[...]).astype(cdt).reshape(BT, S, E)

    # additive causal bias, computed once and reused by every head
    rows = lax.broadcasted_iota(jnp.int32, (S, S), 0)
    cols = lax.broadcasted_iota(jnp.int32, (S, S), 1)
    causal_bias = jnp.where(cols > rows, jnp.float32(-1e9), jnp.float32(0.0))

    gw = heads_per_group * d_head                 # lane width of one head group (128 for real CLIP)
    n_groups = n_head // heads_per_group
    for g in range(n_groups):                     # small static loop (<= n_head iterations)
        lo = g * gw
        qg = q[:, :, lo:lo + gw]                  # lane-aligned group chunks
        kg = k[:, :, lo:lo + gw]
        vg = v[:, :, lo:lo + gw]
        outs = []
        for h in range(heads_per_group):
            sl = slice(h * d_head, (h + 1) * d_head)
            s = jnp.einsum('bqd,bkd->bqk', qg[:, :, sl], kg[:, :, sl],
                           preferred_element_type=jnp.float32)     # (BT, S, S) f32
            s = s + causal_bias                                     # broadcast (S, S)
            s = s - jnp.max(s, axis=-1, keepdims=True)
            p = jnp.exp(s)
            p = p * pl.reciprocal(jnp.sum(p, axis=-1, keepdims=True), approx=True)
            outs.append(jnp.einsum('bqk,bkd->bqd', p.astype(cdt), vg[:, :, sl],
                                   preferred_element_type=jnp.float32))
        og = outs[0] if heads_per_group == 1 else jnp.concatenate(outs, axis=-1)
        # one lane-dense (gw-wide) store per group instead of per-head masked 64-lane stores
        attn_scratch[:, lo:lo + gw] = og.reshape(M, gw).astype(attn_scratch.dtype)

    attn = jnp.dot(attn_scratch[...], w_out[...],
                   preferred_element_type=jnp.float32) + b_out[...]
    x = attn + residue

    # ---------------- residual 2: LayerNorm -> MLP with QuickGELU (blocked over 4E) ----------------
    residue = x
    xln = _layernorm(x, ln2_g[...], ln2_b[...]).astype(cdt)

    H = w1.shape[-1]                              # 4E
    acc = residue + b2[...]                       # fold output bias + residual into the accumulator
    for lo in range(0, H, mlp_chunk):             # static chunk loop; f32 (M,4E) never materialized
        hi = min(H, lo + mlp_chunk)
        h1 = jnp.dot(xln, w1[:, lo:hi], preferred_element_type=jnp.float32) + b1[:, lo:hi]
        h1 = h1 * jax.nn.sigmoid(1.702 * h1)      # QuickGELU
        acc = acc + jnp.dot(h1.astype(cdt), w2[lo:hi, :],
                            preferred_element_type=jnp.float32)

    o_ref[...] = acc.reshape(BT, S, E)


def _heads_per_group(n_head, d_head):
    """Heads processed per inner iteration so the group lane width is >=128 when possible."""
    if d_head >= 128:
        return 1
    hg = min(n_head, max(1, 128 // d_head))
    while n_head % hg:
        hg -= 1
    return hg


def _vmem_capacity_bytes():
    try:
        cap = getattr(pltpu.get_tpu_info(), "vmem_capacity_bytes", None)
        if cap:
            return int(cap)
    except Exception:
        pass
    return 64 << 20          # conservative fallback (v7x per-TensorCore VMEM)


def _vmem_estimate(b_tile, S, E, n_head, mlp_chunk, weight_bytes):
    """Rough per-step VMEM footprint: weights single-buffered, x/out double-buffered."""
    M = b_tile * S
    hg = _heads_per_group(n_head, max(1, E // n_head))
    io = 2 * 2 * M * E * 4                        # x + out blocks, double-buffered, f32
    scratch = M * E * 2                           # bf16 attention scratch
    acts = (5 * M * E * 4                         # f32 x / residue / ln / attn / acc
            + 3 * M * E * 2                       # bf16 q, k, v
            + (hg + 1) * b_tile * S * S * 4       # score tensors in flight
            + 2 * M * mlp_chunk * 4)              # f32 h1 chunk (+ cast copy)
    return weight_bytes + io + scratch + acts + (4 << 20)


def _pick_b_tile(B, S_pad, E, n_head, mlp_chunk, weight_bytes, vmem_cap):
    """Sequences fused per grid step: target ~1024 MXU rows on 64 MiB-VMEM parts (v7x) and
    ~2048 on v5e/v6e, bounded by the VMEM budget.  Only on the 64 MiB part (2 TensorCores)
    do we prefer keeping >= 2 grid steps, and only when M stays reasonably tall."""
    target_rows = 1024 if vmem_cap <= (64 << 20) else 2048
    best = 1
    for d in range(1, B + 1):
        if B % d:
            continue
        if d > 1 and d * S_pad > target_rows:
            continue
        if _vmem_estimate(d, S_pad, E, n_head, mlp_chunk, weight_bytes) > 0.8 * vmem_cap:
            continue
        best = d
    if vmem_cap <= (64 << 20) and B // best < 2:
        for d in range(best - 1, 0, -1):
            if B % d == 0 and B // d >= 2 and d * S_pad >= 256:
                best = d
                break
    return best


def clip_layer(x, params, n_head, *, b_tile=None, matmul_dtype=jnp.bfloat16):
    """x: (B, S, E) float32; params: dict of weights (see init_params)."""
    B, S, E = x.shape
    assert E % n_head == 0

    # Pad S to a sublane multiple (real CLIP S=77 -> 80): batch fusion + layout-free reshapes.
    S_pad = ((S + 7) // 8) * 8
    x_p = x if S_pad == S else jnp.pad(x, ((0, 0), (0, S_pad - S), (0, 0)))

    H4 = 4 * E
    mlp_chunk = H4 if H4 <= 1024 else 1024

    # Big matmul weights in bf16 (f32 accumulation in-kernel); LN params and biases stay f32.
    wm = lambda a: a.astype(matmul_dtype)
    w_in, b_in = params["w_in"], params["b_in"]
    weights = (
        params["ln1_g"], params["ln1_b"],
        wm(w_in[:, :E]), wm(w_in[:, E:2 * E]), wm(w_in[:, 2 * E:]),
        b_in[:, :E], b_in[:, E:2 * E], b_in[:, 2 * E:],
        wm(params["w_out"]), params["b_out"],
        params["ln2_g"], params["ln2_b"],
        wm(params["w1"]), params["b1"], wm(params["w2"]), params["b2"],
    )
    weight_bytes = sum(int(w.size) * w.dtype.itemsize for w in weights)
    vmem_cap = _vmem_capacity_bytes()

    if b_tile is None:
        b_tile = _pick_b_tile(B, S_pad, E, n_head, mlp_chunk, weight_bytes, vmem_cap)
    assert B % b_tile == 0, "b_tile must divide the batch size"
    grid = (B // b_tile,)

    est = _vmem_estimate(b_tile, S_pad, E, n_head, mlp_chunk, weight_bytes)
    vmem_limit = int(min(0.9 * vmem_cap, max(32 << 20, est)))

    M_total = B * S_pad
    cost = pl.CostEstimate(
        flops=24 * M_total * E * E + 4 * M_total * S_pad * E,
        transcendentals=M_total * 4 * E + n_head * B * S_pad * S_pad,
        bytes_accessed=weight_bytes + 2 * M_total * E * 4,   # weights once + x in + out
    )

    x_spec = pl.BlockSpec((b_tile, S_pad, E), lambda g: (g, 0, 0))
    out_spec = pl.BlockSpec((b_tile, S_pad, E), lambda g: (g, 0, 0))

    def weight_spec(arr, single_buffer):
        imap = lambda g: (0,) * arr.ndim
        if single_buffer:
            # grid-invariant input: one resident copy instead of a double buffer
            return pl.BlockSpec(arr.shape, imap, pipeline_mode=pl.Buffered(1))
        return pl.BlockSpec(arr.shape, imap)

    hg = _heads_per_group(n_head, E // n_head)
    kern = functools.partial(clip_layer_kernel, n_head, hg, mlp_chunk)

    def build(single_buffer):
        return pl.pallas_call(
            kern,
            out_shape=jax.ShapeDtypeStruct((B, S_pad, E), jnp.float32),
            grid_spec=pltpu.PrefetchScalarGridSpec(
                num_scalar_prefetch=0,
                grid=grid,
                in_specs=[x_spec] + [weight_spec(w, single_buffer) for w in weights],
                out_specs=out_spec,
                scratch_shapes=[pltpu.VMEM((b_tile * S_pad, E), matmul_dtype)],
            ),
            compiler_params=pltpu.CompilerParams(
                dimension_semantics=("parallel",),
                vmem_limit_bytes=vmem_limit,
            ),
            cost_estimate=cost,
        )

    args = (x_p,) + weights
    try:
        out = build(True)(*args)
    except Exception:
        # Fallback only for JAX builds that reject single-buffered (pl.Buffered(1)) inputs;
        # weights then get the default double buffer.
        out = build(False)(*args)
    out = jax.block_until_ready(out)
    return out[:, :S, :] if S_pad != S else out
    # TODO(synk): optional further wins not taken here: manual make_async_copy overlap of
    # w_out/w1/w2 DMA behind step-0 compute, and fp8 weight storage on v7x.


def init_params(key, n_embd):
    """Deterministic synthetic parameters matching the PyTorch module's shapes.
    Linear weights are stored as (in, out), i.e. the transpose of torch's (out, in)."""
    E = n_embd
    ks = jax.random.split(key, 8)
    scale = 0.02
    return {
        "ln1_g": jnp.ones((1, E), jnp.float32),
        "ln1_b": jnp.zeros((1, E), jnp.float32),
        # SelfAttention: in_proj Linear(E, 3E), out_proj Linear(E, E)
        "w_in":  scale * jax.random.normal(ks[0], (E, 3 * E), jnp.float32),
        "b_in":  scale * jax.random.normal(ks[1], (1, 3 * E), jnp.float32),
        "w_out": scale * jax.random.normal(ks[2], (E, E), jnp.float32),
        "b_out": scale * jax.random.normal(ks[3], (1, E), jnp.float32),
        "ln2_g": jnp.ones((1, E), jnp.float32),
        "ln2_b": jnp.zeros((1, E), jnp.float32),
        # MLP: Linear(E, 4E), Linear(4E, E)
        "w1": scale * jax.random.normal(ks[4], (E, 4 * E), jnp.float32),
        "b1": scale * jax.random.normal(ks[5], (1, 4 * E), jnp.float32),
        "w2": scale * jax.random.normal(ks[6], (4 * E, E), jnp.float32),
        "b2": scale * jax.random.normal(ks[7], (1, E), jnp.float32),
    }


def clip_layer_ref(x, params, n_head):
    """Pure-JAX f32 reference for a sanity check."""
    B, S, E = x.shape
    dh = E // n_head

    def ln(v, g, b):
        mu = v.mean(-1, keepdims=True)
        var = ((v - mu) ** 2).mean(-1, keepdims=True)
        return (v - mu) / jnp.sqrt(var + 1e-5) * g + b

    r = x
    h = ln(x, params["ln1_g"], params["ln1_b"])
    qkv = h @ params["w_in"] + params["b_in"]
    q, k, v = jnp.split(qkv, 3, axis=-1)
    q = q.reshape(B, S, n_head, dh).transpose(0, 2, 1, 3)
    k = k.reshape(B, S, n_head, dh).transpose(0, 2, 1, 3)
    v = v.reshape(B, S, n_head, dh).transpose(0, 2, 1, 3)
    w = jnp.einsum("bhqd,bhkd->bhqk", q, k)
    mask = jnp.triu(jnp.ones((S, S), bool), k=1)
    w = jnp.where(mask, -jnp.inf, w) / math.sqrt(dh)
    w = jax.nn.softmax(w, axis=-1)
    o = jnp.einsum("bhqk,bhkd->bhqd", w, v).transpose(0, 2, 1, 3).reshape(B, S, E)
    x = o @ params["w_out"] + params["b_out"] + r
    r = x
    h = ln(x, params["ln2_g"], params["ln2_b"])
    h = h @ params["w1"] + params["b1"]
    h = h * jax.nn.sigmoid(1.702 * h)
    h = h @ params["w2"] + params["b2"]
    return h + r


if __name__ == "__main__":
    B, S, E, H = 2, 8, 32, 4
    key = jax.random.PRNGKey(0)
    kx, kp = jax.random.split(key)
    x = jax.random.normal(kx, (B, S, E), jnp.float32)
    params = init_params(kp, E)

    ref = clip_layer_ref(x, params, H)

    # default path (auto b_tile)
    out = clip_layer(x, params, H)
    assert out.shape == (B, S, E)
    # tolerance relaxed for bf16 matmul operands + approx softmax reciprocal
    assert jnp.allclose(out, ref, atol=1e-2, rtol=1e-2), "mismatch vs reference (auto b_tile)"

    # fused-batch path (exercises the flattened (b_tile*S, E) matmuls)
    out2 = clip_layer(x, params, H, b_tile=2)
    assert jnp.allclose(out2, ref, atol=1e-2, rtol=1e-2), "mismatch vs reference (b_tile=2)"

    # padded-sequence path (what real CLIP S=77 -> 80 uses)
    S2 = 7
    x2 = jax.random.normal(jax.random.PRNGKey(1), (B, S2, E), jnp.float32)
    ref2 = clip_layer_ref(x2, params, H)
    out3 = clip_layer(x2, params, H)
    assert out3.shape == (B, S2, E)
    assert jnp.allclose(out3, ref2, atol=1e-2, rtol=1e-2), "mismatch vs reference (padded S)"

    print("KERNEL_OK")
</pallas_src>

<mosaic_0001>
module attributes {stable_mosaic.version = 11 : i64} {
  func.func @clip_layer_kernel(%arg0: i32, %arg1: memref<2x8x32xf32, #tpu.memory_space<vmem>>, %arg2: memref<1x32xf32, #tpu.memory_space<vmem>>, %arg3: memref<1x32xf32, #tpu.memory_space<vmem>>, %arg4: memref<32x32xbf16, #tpu.memory_space<vmem>>, %arg5: memref<32x32xbf16, #tpu.memory_space<vmem>>, %arg6: memref<32x32xbf16, #tpu.memory_space<vmem>>, %arg7: memref<1x32xf32, #tpu.memory_space<vmem>>, %arg8: memref<1x32xf32, #tpu.memory_space<vmem>>, %arg9: memref<1x32xf32, #tpu.memory_space<vmem>>, %arg10: memref<32x32xbf16, #tpu.memory_space<vmem>>, %arg11: memref<1x32xf32, #tpu.memory_space<vmem>>, %arg12: memref<1x32xf32, #tpu.memory_space<vmem>>, %arg13: memref<1x32xf32, #tpu.memory_space<vmem>>, %arg14: memref<32x128xbf16, #tpu.memory_space<vmem>>, %arg15: memref<1x128xf32, #tpu.memory_space<vmem>>, %arg16: memref<128x32xbf16, #tpu.memory_space<vmem>>, %arg17: memref<1x32xf32, #tpu.memory_space<vmem>>, %arg18: memref<2x8x32xf32, #tpu.memory_space<vmem>>, %arg19: memref<16x32xbf16, #tpu.memory_space<vmem>>) attributes {dimension_semantics = [#tpu.dimension_semantics<parallel>], iteration_bounds = array<i64: 1>, scalar_prefetch = 0 : i64, scratch_operands = 1 : i64, tpu.core_type = #tpu.core_type<tc>, window_params = [{transform_indices = @transform_0, window_bounds = array<i64: 2, 8, 32>}, {pipeline_mode = #tpu.pipeline_mode<synchronous>, transform_indices = @transform_1, window_bounds = array<i64: 1, 32>}, {pipeline_mode = #tpu.pipeline_mode<synchronous>, transform_indices = @transform_2, window_bounds = array<i64: 1, 32>}, {pipeline_mode = #tpu.pipeline_mode<synchronous>, transform_indices = @transform_3, window_bounds = array<i64: 32, 32>}, {pipeline_mode = #tpu.pipeline_mode<synchronous>, transform_indices = @transform_4, window_bounds = array<i64: 32, 32>}, {pipeline_mode = #tpu.pipeline_mode<synchronous>, transform_indices = @transform_5, window_bounds = array<i64: 32, 32>}, {pipeline_mode = #tpu.pipeline_mode<synchronous>, transform_indices = @transform_6, window_bounds = array<i64: 1, 32>}, {pipeline_mode = #tpu.pipeline_mode<synchronous>, transform_indices = @transform_7, window_bounds = array<i64: 1, 32>}, {pipeline_mode = #tpu.pipeline_mode<synchronous>, transform_indices = @transform_8, window_bounds = array<i64: 1, 32>}, {pipeline_mode = #tpu.pipeline_mode<synchronous>, transform_indices = @transform_9, window_bounds = array<i64: 32, 32>}, {pipeline_mode = #tpu.pipeline_mode<synchronous>, transform_indices = @transform_10, window_bounds = array<i64: 1, 32>}, {pipeline_mode = #tpu.pipeline_mode<synchronous>, transform_indices = @transform_11, window_bounds = array<i64: 1, 32>}, {pipeline_mode = #tpu.pipeline_mode<synchronous>, transform_indices = @transform_12, window_bounds = array<i64: 1, 32>}, {pipeline_mode = #tpu.pipeline_mode<synchronous>, transform_indices = @transform_13, window_bounds = array<i64: 32, 128>}, {pipeline_mode = #tpu.pipeline_mode<synchronous>, transform_indices = @transform_14, window_bounds = array<i64: 1, 128>}, {pipeline_mode = #tpu.pipeline_mode<synchronous>, transform_indices = @transform_15, window_bounds = array<i64: 128, 32>}, {pipeline_mode = #tpu.pipeline_mode<synchronous>, transform_indices = @transform_16, window_bounds = array<i64: 1, 32>}, {transform_indices = @transform_17, window_bounds = array<i64: 2, 8, 32>}]} {
    %c0 = arith.constant 0 : index
    %c0_0 = arith.constant 0 : index
    %c0_1 = arith.constant 0 : index
    %0 = vector.load %arg1[%c0, %c0_0, %c0_1] : memref<2x8x32xf32, #tpu.memory_space<vmem>>, vector<2x8x32xf32>
    %1 = vector.shape_cast %0 : vector<2x8x32xf32> to vector<16x32xf32>
    %c0_2 = arith.constant 0 : index
    %c0_3 = arith.constant 0 : index
    %2 = vector.load %arg2[%c0_2, %c0_3] : memref<1x32xf32, #tpu.memory_space<vmem>>, vector<1x32xf32>
    %c0_4 = arith.constant 0 : index
    %c0_5 = arith.constant 0 : index
    %3 = vector.load %arg3[%c0_4, %c0_5] : memref<1x32xf32, #tpu.memory_space<vmem>>, vector<1x32xf32>
    %cst = arith.constant dense<0.000000e+00> : vector<16xf32>
    %4 = vector.multi_reduction <add>, %1, %cst [1] : vector<16x32xf32> to vector<16xf32>
    %5 = vector.shape_cast %4 : vector<16xf32> to vector<16x1xf32>
    %cst_6 = arith.constant 3.200000e+01 : f32
    %6 = vector.broadcast %cst_6 : f32 to vector<16x1xf32>
    %7 = arith.divf %5, %6 : vector<16x1xf32>
    %8 = vector.broadcast %7 : vector<16x1xf32> to vector<16x32xf32>
    %9 = arith.subf %1, %8 : vector<16x32xf32>
    %10 = arith.mulf %9, %9 : vector<16x32xf32>
    %cst_7 = arith.constant dense<0.000000e+00> : vector<16xf32>
    %11 = vector.multi_reduction <add>, %10, %cst_7 [1] : vector<16x32xf32> to vector<16xf32>
    %12 = vector.shape_cast %11 : vector<16xf32> to vector<16x1xf32>
    %cst_8 = arith.constant 3.200000e+01 : f32
    %13 = vector.broadcast %cst_8 : f32 to vector<16x1xf32>
    %14 = arith.divf %12, %13 : vector<16x1xf32>
    %15 = vector.broadcast %7 : vector<16x1xf32> to vector<16x32xf32>
    %16 = arith.subf %1, %15 : vector<16x32xf32>
    %cst_9 = arith.constant 9.99999974E-6 : f32
    %17 = vector.broadcast %cst_9 : f32 to vector<16x1xf32>
    %18 = arith.addf %14, %17 : vector<16x1xf32>
    %19 = math.rsqrt %18 : vector<16x1xf32>
    %20 = vector.broadcast %19 : vector<16x1xf32> to vector<16x32xf32>
    %21 = arith.mulf %16, %20 : vector<16x32xf32>
    %22 = vector.broadcast %2 : vector<1x32xf32> to vector<16x32xf32>
    %23 = arith.mulf %21, %22 : vector<16x32xf32>
    %24 = vector.broadcast %3 : vector<1x32xf32> to vector<16x32xf32>
    %25 = arith.addf %23, %24 : vector<16x32xf32>
    %26 = arith.truncf %25 : vector<16x32xf32> to vector<16x32xbf16>
    %c0_10 = arith.constant 0 : index
    %c0_11 = arith.constant 0 : index
    %27 = vector.load %arg4[%c0_10, %c0_11] : memref<32x32xbf16, #tpu.memory_space<vmem>>, vector<32x32xbf16>
    %cst_12 = arith.constant dense<0.000000e+00> : vector<16x32xf32>
    %28 = tpu.matmul %26, %27, %cst_12 {dimension_numbers = #tpu.dot_dimension_numbers<[1], [0], [0], [1], [0, 0, 1, 1], [], []>} : vector<16x32xbf16>, vector<32x32xbf16>, vector<16x32xf32> -> vector<16x32xf32>
    %c0_13 = arith.constant 0 : index
    %c0_14 = arith.constant 0 : index
    %29 = vector.load %arg7[%c0_13, %c0_14] : memref<1x32xf32, #tpu.memory_space<vmem>>, vector<1x32xf32>
    %30 = vector.broadcast %29 : vector<1x32xf32> to vector<16x32xf32>
    %31 = arith.addf %28, %30 : vector<16x32xf32>
    %cst_15 = arith.constant 0.353553385 : f32
    %32 = vector.broadcast %cst_15 : f32 to vector<16x32xf32>
    %33 = arith.mulf %31, %32 : vector<16x32xf32>
    %34 = arith.truncf %33 : vector<16x32xf32> to vector<16x32xbf16>
    %35 = vector.shape_cast %34 : vector<16x32xbf16> to vector<2x8x32xbf16>
    %c0_16 = arith.constant 0 : index
    %c0_17 = arith.constant 0 : index
    %36 = vector.load %arg5[%c0_16, %c0_17] : memref<32x32xbf16, #tpu.memory_space<vmem>>, vector<32x32xbf16>
    %cst_18 = arith.constant dense<0.000000e+00> : vector<16x32xf32>
    %37 = tpu.matmul %26, %36, %cst_18 {dimension_numbers = #tpu.dot_dimension_numbers<[1], [0], [0], [1], [0, 0, 1, 1], [], []>} : vector<16x32xbf16>, vector<32x32xbf16>, vector<16x32xf32> -> vector<16x32xf32>
    %c0_19 = arith.constant 0 : index
    %c0_20 = arith.constant 0 : index
    %38 = vector.load %arg8[%c0_19, %c0_20] : memref<1x32xf32, #tpu.memory_space<vmem>>, vector<1x32xf32>
    %39 = vector.broadcast %38 : vector<1x32xf32> to vector<16x32xf32>
    %40 = arith.addf %37, %39 : vector<16x32xf32>
    %41 = arith.truncf %40 : vector<16x32xf32> to vector<16x32xbf16>
    %42 = vector.shape_cast %41 : vector<16x32xbf16> to vector<2x8x32xbf16>
    %c0_21 = arith.constant 0 : index
    %c0_22 = arith.constant 0 : index
    %43 = vector.load %arg6[%c0_21, %c0_22] : memref<32x32xbf16, #tpu.memory_space<vmem>>, vector<32x32xbf16>
    %cst_23 = arith.constant dense<0.000000e+00> : vector<16x32xf32>
    %44 = tpu.matmul %26, %43, %cst_23 {dimension_numbers = #tpu.dot_dimension_numbers<[1], [0], [0], [1], [0, 0, 1, 1], [], []>} : vector<16x32xbf16>, vector<32x32xbf16>, vector<16x32xf32> -> vector<16x32xf32>
    %c0_24 = arith.constant 0 : index
    %c0_25 = arith.constant 0 : index
    %45 = vector.load %arg9[%c0_24, %c0_25] : memref<1x32xf32, #tpu.memory_space<vmem>>, vector<1x32xf32>
    %46 = vector.broadcast %45 : vector<1x32xf32> to vector<16x32xf32>
    %47 = arith.addf %44, %46 : vector<16x32xf32>
    %48 = arith.truncf %47 : vector<16x32xf32> to vector<16x32xbf16>
    %49 = vector.shape_cast %48 : vector<16x32xbf16> to vector<2x8x32xbf16>
    %50 = tpu.iota {dimensions = array<i32: 0>} : vector<8x8xi32>
    %51 = tpu.iota {dimensions = array<i32: 1>} : vector<8x8xi32>
    %52 = arith.cmpi sgt, %51, %50 : vector<8x8xi32>
    %cst_26 = arith.constant -1.000000e+09 : f32
    %cst_27 = arith.constant 0.000000e+00 : f32
    %53 = vector.broadcast %cst_26 : f32 to vector<8x8xf32>
    %54 = vector.broadcast %cst_27 : f32 to vector<8x8xf32>
    %55 = arith.select %52, %53, %54 : vector<8x8xi1>, vector<8x8xf32>
    %56 = vector.extract_strided_slice %35 {offsets = [0, 0, 0], sizes = [2, 8, 8], strides = [1, 1, 1]} : vector<2x8x32xbf16> to vector<2x8x8xbf16>
    %57 = vector.extract_strided_slice %42 {offsets = [0, 0, 0], sizes = [2, 8, 8], strides = [1, 1, 1]} : vector<2x8x32xbf16> to vector<2x8x8xbf16>
    "tpu.trace_start"() <{level = 10 : i32, message = "bqd,bkd->bqk"}> : () -> ()
    %cst_28 = arith.constant dense<0.000000e+00> : vector<2x8x8xf32>
    %58 = tpu.matmul %56, %57, %cst_28 {dimension_numbers = #tpu.dot_dimension_numbers<[2], [2], [1], [1], [0, 0, 0, 1, 1, 1], [0], [0]>} : vector<2x8x8xbf16>, vector<2x8x8xbf16>, vector<2x8x8xf32> -> vector<2x8x8xf32>
    "tpu.trace_stop"() : () -> ()
    %59 = vector.shape_cast %55 : vector<8x8xf32> to vector<1x8x8xf32>
    %60 = vector.broadcast %59 : vector<1x8x8xf32> to vector<2x8x8xf32>
    %61 = arith.addf %58, %60 : vector<2x8x8xf32>
    %cst_29 = arith.constant dense<0xFF800000> : vector<2x8xf32>
    %62 = vector.multi_reduction <maximumf>, %61, %cst_29 [2] : vector<2x8x8xf32> to vector<2x8xf32>
    %63 = vector.shape_cast %62 : vector<2x8xf32> to vector<2x8x1xf32>
    %64 = vector.broadcast %63 : vector<2x8x1xf32> to vector<2x8x8xf32>
    %65 = arith.subf %61, %64 : vector<2x8x8xf32>
    %66 = math.exp %65 : vector<2x8x8xf32>
    %cst_30 = arith.constant dense<0.000000e+00> : vector<2x8xf32>
    %67 = vector.multi_reduction <add>, %66, %cst_30 [2] : vector<2x8x8xf32> to vector<2x8xf32>
    %68 = vector.shape_cast %67 : vector<2x8xf32> to vector<2x8x1xf32>
    %69 = tpu.reciprocal %68 {approx = true} : vector<2x8x1xf32> -> vector<2x8x1xf32>
    %70 = vector.broadcast %69 : vector<2x8x1xf32> to vector<2x8x8xf32>
    %71 = arith.mulf %66, %70 : vector<2x8x8xf32>
    %72 = arith.truncf %71 : vector<2x8x8xf32> to vector<2x8x8xbf16>
    %73 = vector.extract_strided_slice %49 {offsets = [0, 0, 0], sizes = [2, 8, 8], strides = [1, 1, 1]} : vector<2x8x32xbf16> to vector<2x8x8xbf16>
    "tpu.trace_start"() <{level = 10 : i32, message = "bqk,bkd->bqd"}> : () -> ()
    %cst_31 = arith.constant dense<0.000000e+00> : vector<2x8x8xf32>
    %74 = tpu.matmul %72, %73, %cst_31 {dimension_numbers = #tpu.dot_dimension_numbers<[2], [1], [1], [2], [0, 0, 0, 1, 1, 2], [0], [0]>} : vector<2x8x8xbf16>, vector<2x8x8xbf16>, vector<2x8x8xf32> -> vector<2x8x8xf32>
    "tpu.trace_stop"() : () -> ()
    %75 = vector.extract_strided_slice %35 {offsets = [0, 0, 8], sizes = [2, 8, 8], strides = [1, 1, 1]} : vector<2x8x32xbf16> to vector<2x8x8xbf16>
    %76 = vector.extract_strided_slice %42 {offsets = [0, 0, 8], sizes = [2, 8, 8], strides = [1, 1, 1]} : vector<2x8x32xbf16> to vector<2x8x8xbf16>
    "tpu.trace_start"() <{level = 10 : i32, message = "bqd,bkd->bqk"}> : () -> ()
    %cst_32 = arith.constant dense<0.000000e+00> : vector<2x8x8xf32>
    %77 = tpu.matmul %75, %76, %cst_32 {dimension_numbers = #tpu.dot_dimension_numbers<[2], [2], [1], [1], [0, 0, 0, 1, 1, 1], [0], [0]>} : vector<2x8x8xbf16>, vector<2x8x8xbf16>, vector<2x8x8xf32> -> vector<2x8x8xf32>
    "tpu.trace_stop"() : () -> ()
    %78 = vector.shape_cast %55 : vector<8x8xf32> to vector<1x8x8xf32>
    %79 = vector.broadcast %78 : vector<1x8x8xf32> to vector<2x8x8xf32>
    %80 = arith.addf %77, %79 : vector<2x8x8xf32>
    %cst_33 = arith.constant dense<0xFF800000> : vector<2x8xf32>
    %81 = vector.multi_reduction <maximumf>, %80, %cst_33 [2] : vector<2x8x8xf32> to vector<2x8xf32>
    %82 = vector.shape_cast %81 : vector<2x8xf32> to vector<2x8x1xf32>
    %83 = vector.broadcast %82 : vector<2x8x1xf32> to vector<2x8x8xf32>
    %84 = arith.subf %80, %83 : vector<2x8x8xf32>
    %85 = math.exp %84 : vector<2x8x8xf32>
    %cst_34 = arith.constant dense<0.000000e+00> : vector<2x8xf32>
    %86 = vector.multi_reduction <add>, %85, %cst_34 [2] : vector<2x8x8xf32> to vector<2x8xf32>
    %87 = vector.shape_cast %86 : vector<2x8xf32> to vector<2x8x1xf32>
    %88 = tpu.reciprocal %87 {approx = true} : vector<2x8x1xf32> -> vector<2x8x1xf32>
    %89 = vector.broadcast %88 : vector<2x8x1xf32> to vector<2x8x8xf32>
    %90 = arith.mulf %85, %89 : vector<2x8x8xf32>
    %91 = arith.truncf %90 : vector<2x8x8xf32> to vector<2x8x8xbf16>
    %92 = vector.extract_strided_slice %49 {offsets = [0, 0, 8], sizes = [2, 8, 8], strides = [1, 1, 1]} : vector<2x8x32xbf16> to vector<2x8x8xbf16>
    "tpu.trace_start"() <{level = 10 : i32, message = "bqk,bkd->bqd"}> : () -> ()
    %cst_35 = arith.constant dense<0.000000e+00> : vector<2x8x8xf32>
    %93 = tpu.matmul %91, %92, %cst_35 {dimension_numbers = #tpu.dot_dimension_numbers<[2], [1], [1], [2], [0, 0, 0, 1, 1, 2], [0], [0]>} : vector<2x8x8xbf16>, vector<2x8x8xbf16>, vector<2x8x8xf32> -> vector<2x8x8xf32>
    "tpu.trace_stop"() : () -> ()
    %94 = vector.extract_strided_slice %35 {offsets = [0, 0, 16], sizes = [2, 8, 8], strides = [1, 1, 1]} : vector<2x8x32xbf16> to vector<2x8x8xbf16>
    %95 = vector.extract_strided_slice %42 {offsets = [0, 0, 16], sizes = [2, 8, 8], strides = [1, 1, 1]} : vector<2x8x32xbf16> to vector<2x8x8xbf16>
    "tpu.trace_start"() <{level = 10 : i32, message = "bqd,bkd->bqk"}> : () -> ()
    %cst_36 = arith.constant dense<0.000000e+00> : vector<2x8x8xf32>
    %96 = tpu.matmul %94, %95, %cst_36 {dimension_numbers = #tpu.dot_dimension_numbers<[2], [2], [1], [1], [0, 0, 0, 1, 1, 1], [0], [0]>} : vector<2x8x8xbf16>, vector<2x8x8xbf16>, vector<2x8x8xf32> -> vector<2x8x8xf32>
    "tpu.trace_stop"() : () -> ()
    %97 = vector.shape_cast %55 : vector<8x8xf32> to vector<1x8x8xf32>
    %98 = vector.broadcast %97 : vector<1x8x8xf32> to vector<2x8x8xf32>
    %99 = arith.addf %96, %98 : vector<2x8x8xf32>
    %cst_37 = arith.constant dense<0xFF800000> : vector<2x8xf32>
    %100 = vector.multi_reduction <maximumf>, %99, %cst_37 [2] : vector<2x8x8xf32> to vector<2x8xf32>
    %101 = vector.shape_cast %100 : vector<2x8xf32> to vector<2x8x1xf32>
    %102 = vector.broadcast %101 : vector<2x8x1xf32> to vector<2x8x8xf32>
    %103 = arith.subf %99, %102 : vector<2x8x8xf32>
    %104 = math.exp %103 : vector<2x8x8xf32>
    %cst_38 = arith.constant dense<0.000000e+00> : vector<2x8xf32>
    %105 = vector.multi_reduction <add>, %104, %cst_38 [2] : vector<2x8x8xf32> to vector<2x8xf32>
    %106 = vector.shape_cast %105 : vector<2x8xf32> to vector<2x8x1xf32>
    %107 = tpu.reciprocal %106 {approx = true} : vector<2x8x1xf32> -> vector<2x8x1xf32>
    %108 = vector.broadcast %107 : vector<2x8x1xf32> to vector<2x8x8xf32>
    %109 = arith.mulf %104, %108 : vector<2x8x8xf32>
    %110 = arith.truncf %109 : vector<2x8x8xf32> to vector<2x8x8xbf16>
    %111 = vector.extract_strided_slice %49 {offsets = [0, 0, 16], sizes = [2, 8, 8], strides = [1, 1, 1]} : vector<2x8x32xbf16> to vector<2x8x8xbf16>
    "tpu.trace_start"() <{level = 10 : i32, message = "bqk,bkd->bqd"}> : () -> ()
    %cst_39 = arith.constant dense<0.000000e+00> : vector<2x8x8xf32>
    %112 = tpu.matmul %110, %111, %cst_39 {dimension_numbers = #tpu.dot_dimension_numbers<[2], [1], [1], [2], [0, 0, 0, 1, 1, 2], [0], [0]>} : vector<2x8x8xbf16>, vector<2x8x8xbf16>, vector<2x8x8xf32> -> vector<2x8x8xf32>
    "tpu.trace_stop"() : () -> ()
    %113 = vector.extract_strided_slice %35 {offsets = [0, 0, 24], sizes = [2, 8, 8], strides = [1, 1, 1]} : vector<2x8x32xbf16> to vector<2x8x8xbf16>
    %114 = vector.extract_strided_slice %42 {offsets = [0, 0, 24], sizes = [2, 8, 8], strides = [1, 1, 1]} : vector<2x8x32xbf16> to vector<2x8x8xbf16>
    "tpu.trace_start"() <{level = 10 : i32, message = "bqd,bkd->bqk"}> : () -> ()
    %cst_40 = arith.constant dense<0.000000e+00> : vector<2x8x8xf32>
    %115 = tpu.matmul %113, %114, %cst_40 {dimension_numbers = #tpu.dot_dimension_numbers<[2], [2], [1], [1], [0, 0, 0, 1, 1, 1], [0], [0]>} : vector<2x8x8xbf16>, vector<2x8x8xbf16>, vector<2x8x8xf32> -> vector<2x8x8xf32>
    "tpu.trace_stop"() : () -> ()
    %116 = vector.shape_cast %55 : vector<8x8xf32> to vector<1x8x8xf32>
    %117 = vector.broadcast %116 : vector<1x8x8xf32> to vector<2x8x8xf32>
    %118 = arith.addf %115, %117 : vector<2x8x8xf32>
    %cst_41 = arith.constant dense<0xFF800000> : vector<2x8xf32>
    %119 = vector.multi_reduction <maximumf>, %118, %cst_41 [2] : vector<2x8x8xf32> to vector<2x8xf32>
    %120 = vector.shape_cast %119 : vector<2x8xf32> to vector<2x8x1xf32>
    %121 = vector.broadcast %120 : vector<2x8x1xf32> to vector<2x8x8xf32>
    %122 = arith.subf %118, %121 : vector<2x8x8xf32>
    %123 = math.exp %122 : vector<2x8x8xf32>
    %cst_42 = arith.constant dense<0.000000e+00> : vector<2x8xf32>
    %124 = vector.multi_reduction <add>, %123, %cst_42 [2] : vector<2x8x8xf32> to vector<2x8xf32>
    %125 = vector.shape_cast %124 : vector<2x8xf32> to vector<2x8x1xf32>
    %126 = tpu.reciprocal %125 {approx = true} : vector<2x8x1xf32> -> vector<2x8x1xf32>
    %127 = vector.broadcast %126 : vector<2x8x1xf32> to vector<2x8x8xf32>
    %128 = arith.mulf %123, %127 : vector<2x8x8xf32>
    %129 = arith.truncf %128 : vector<2x8x8xf32> to vector<2x8x8xbf16>
    %130 = vector.extract_strided_slice %49 {offsets = [0, 0, 24], sizes = [2, 8, 8], strides = [1, 1, 1]} : vector<2x8x32xbf16> to vector<2x8x8xbf16>
    "tpu.trace_start"() <{level = 10 : i32, message = "bqk,bkd->bqd"}> : () -> ()
    %cst_43 = arith.constant dense<0.000000e+00> : vector<2x8x8xf32>
    %131 = tpu.matmul %129, %130, %cst_43 {dimension_numbers = #tpu.dot_dimension_numbers<[2], [1], [1], [2], [0, 0, 0, 1, 1, 2], [0], [0]>} : vector<2x8x8xbf16>, vector<2x8x8xbf16>, vector<2x8x8xf32> -> vector<2x8x8xf32>
    "tpu.trace_stop"() : () -> ()
    %132 = tpu.concatenate %74, %93, %112, %131 in 2 : vector<2x8x8xf32>, vector<2x8x8xf32>, vector<2x8x8xf32>, vector<2x8x8xf32> -> vector<2x8x32xf32>
    %133 = vector.shape_cast %132 : vector<2x8x32xf32> to vector<16x32xf32>
    %134 = arith.truncf %133 : vector<16x32xf32> to vector<16x32xbf16>
    %c0_44 = arith.constant 0 : index
    %c0_45 = arith.constant 0 : index
    %135 = vector.load %arg19[%c0_44, %c0_45] : memref<16x32xbf16, #tpu.memory_space<vmem>>, vector<16x32xbf16>
    tpu.vector_store %arg19[%c0_44, %c0_45], %134 {strides = array<i32>} : memref<16x32xbf16, #tpu.memory_space<vmem>>, vector<16x32xbf16>,
    %c0_46 = arith.constant 0 : index
    %c0_47 = arith.constant 0 : index
    %136 = vector.load %arg19[%c0_46, %c0_47] : memref<16x32xbf16, #tpu.memory_space<vmem>>, vector<16x32xbf16>
    %c0_48 = arith.constant 0 : index
    %c0_49 = arith.constant 0 : index
    %137 = vector.load %arg10[%c0_48, %c0_49] : memref<32x32xbf16, #tpu.memory_space<vmem>>, vector<32x32xbf16>
    %cst_50 = arith.constant dense<0.000000e+00> : vector<16x32xf32>
    %138 = tpu.matmul %136, %137, %cst_50 {dimension_numbers = #tpu.dot_dimension_numbers<[1], [0], [0], [1], [0, 0, 1, 1], [], []>} : vector<16x32xbf16>, vector<32x32xbf16>, vector<16x32xf32> -> vector<16x32xf32>
    %c0_51 = arith.constant 0 : index
    %c0_52 = arith.constant 0 : index
    %139 = vector.load %arg11[%c0_51, %c0_52] : memref<1x32xf32, #tpu.memory_space<vmem>>, vector<1x32xf32>
    %140 = vector.broadcast %139 : vector<1x32xf32> to vector<16x32xf32>
    %141 = arith.addf %138, %140 : vector<16x32xf32>
    %142 = arith.addf %141, %1 : vector<16x32xf32>
    %c0_53 = arith.constant 0 : index
    %c0_54 = arith.constant 0 : index
    %143 = vector.load %arg12[%c0_53, %c0_54] : memref<1x32xf32, #tpu.memory_space<vmem>>, vector<1x32xf32>
    %c0_55 = arith.constant 0 : index
    %c0_56 = arith.constant 0 : index
    %144 = vector.load %arg13[%c0_55, %c0_56] : memref<1x32xf32, #tpu.memory_space<vmem>>, vector<1x32xf32>
    %cst_57 = arith.constant dense<0.000000e+00> : vector<16xf32>
    %145 = vector.multi_reduction <add>, %142, %cst_57 [1] : vector<16x32xf32> to vector<16xf32>
    %146 = vector.shape_cast %145 : vector<16xf32> to vector<16x1xf32>
    %cst_58 = arith.constant 3.200000e+01 : f32
    %147 = vector.broadcast %cst_58 : f32 to vector<16x1xf32>
    %148 = arith.divf %146, %147 : vector<16x1xf32>
    %149 = vector.broadcast %148 : vector<16x1xf32> to vector<16x32xf32>
    %150 = arith.subf %142, %149 : vector<16x32xf32>
    %151 = arith.mulf %150, %150 : vector<16x32xf32>
    %cst_59 = arith.constant dense<0.000000e+00> : vector<16xf32>
    %152 = vector.multi_reduction <add>, %151, %cst_59 [1] : vector<16x32xf32> to vector<16xf32>
    %153 = vector.shape_cast %152 : vector<16xf32> to vector<16x1xf32>
    %cst_60 = arith.constant 3.200000e+01 : f32
    %154 = vector.broadcast %cst_60 : f32 to vector<16x1xf32>
    %155 = arith.divf %153, %154 : vector<16x1xf32>
    %156 = vector.broadcast %148 : vector<16x1xf32> to vector<16x32xf32>
    %157 = arith.subf %142, %156 : vector<16x32xf32>
    %cst_61 = arith.constant 9.99999974E-6 : f32
    %158 = vector.broadcast %cst_61 : f32 to vector<16x1xf32>
    %159 = arith.addf %155, %158 : vector<16x1xf32>
    %160 = math.rsqrt %159 : vector<16x1xf32>
    %161 = vector.broadcast %160 : vector<16x1xf32> to vector<16x32xf32>
    %162 = arith.mulf %157, %161 : vector<16x32xf32>
    %163 = vector.broadcast %143 : vector<1x32xf32> to vector<16x32xf32>
    %164 = arith.mulf %162, %163 : vector<16x32xf32>
    %165 = vector.broadcast %144 : vector<1x32xf32> to vector<16x32xf32>
    %166 = arith.addf %164, %165 : vector<16x32xf32>
    %167 = arith.truncf %166 : vector<16x32xf32> to vector<16x32xbf16>
    %c0_62 = arith.constant 0 : index
    %c0_63 = arith.constant 0 : index
    %168 = vector.load %arg17[%c0_62, %c0_63] : memref<1x32xf32, #tpu.memory_space<vmem>>, vector<1x32xf32>
    %169 = vector.broadcast %168 : vector<1x32xf32> to vector<16x32xf32>
    %170 = arith.addf %142, %169 : vector<16x32xf32>
    %c0_64 = arith.constant 0 : index
    %c0_65 = arith.constant 0 : index
    %171 = vector.load %arg14[%c0_64, %c0_65] : memref<32x128xbf16, #tpu.memory_space<vmem>>, vector<32x128xbf16>
    %cst_66 = arith.constant dense<0.000000e+00> : vector<16x128xf32>
    %172 = tpu.matmul %167, %171, %cst_66 {dimension_numbers = #tpu.dot_dimension_numbers<[1], [0], [0], [1], [0, 0, 1, 1], [], []>} : vector<16x32xbf16>, vector<32x128xbf16>, vector<16x128xf32> -> vector<16x128xf32>
    %c0_67 = arith.constant 0 : index
    %c0_68 = arith.constant 0 : index
    %173 = vector.load %arg15[%c0_67, %c0_68] : memref<1x128xf32, #tpu.memory_space<vmem>>, vector<1x128xf32>
    %174 = vector.broadcast %173 : vector<1x128xf32> to vector<16x128xf32>
    %175 = arith.addf %172, %174 : vector<16x128xf32>
    %cst_69 = arith.constant 1.702000e+00 : f32
    %176 = vector.broadcast %cst_69 : f32 to vector<16x128xf32>
    %177 = arith.mulf %176, %175 : vector<16x128xf32>
    %178 = arith.negf %177 : vector<16x128xf32>
    %179 = math.exp %178 : vector<16x128xf32>
    %cst_70 = arith.constant 1.000000e+00 : f32
    %180 = vector.broadcast %cst_70 : f32 to vector<16x128xf32>
    %181 = arith.addf %180, %179 : vector<16x128xf32>
    %182 = arith.divf %180, %181 : vector<16x128xf32>
    %183 = arith.mulf %175, %182 : vector<16x128xf32>
    %184 = arith.truncf %183 : vector<16x128xf32> to vector<16x128xbf16>
    %c0_71 = arith.constant 0 : index
    %c0_72 = arith.constant 0 : index
    %185 = vector.load %arg16[%c0_71, %c0_72] : memref<128x32xbf16, #tpu.memory_space<vmem>>, vector<128x32xbf16>
    %cst_73 = arith.constant dense<0.000000e+00> : vector<16x32xf32>
    %186 = tpu.matmul %184, %185, %cst_73 {dimension_numbers = #tpu.dot_dimension_numbers<[1], [0], [0], [1], [0, 0, 1, 1], [], []>} : vector<16x128xbf16>, vector<128x32xbf16>, vector<16x32xf32> -> vector<16x32xf32>
    %187 = arith.addf %170, %186 : vector<16x32xf32>
    %188 = vector.shape_cast %187 : vector<16x32xf32> to vector<2x8x32xf32>
    %c0_74 = arith.constant 0 : index
    %c0_75 = arith.constant 0 : index
    %c0_76 = arith.constant 0 : index
    %189 = vector.load %arg18[%c0_74, %c0_75, %c0_76] : memref<2x8x32xf32, #tpu.memory_space<vmem>>, vector<2x8x32xf32>
    tpu.vector_store %arg18[%c0_74, %c0_75, %c0_76], %188 {strides = array<i32>} : memref<2x8x32xf32, #tpu.memory_space<vmem>>, vector<2x8x32xf32>,
    return
  }
  func.func @transform_0(%arg0: i32) -> (i32, i32, i32) {
    %c0_i32 = arith.constant 0 : i32
    %c0_i32_0 = arith.constant 0 : i32
    %c0_i32_1 = arith.constant 0 : i32
    return %arg0, %c0_i32, %c0_i32_0 : i32, i32, i32
  }
  func.func @transform_1(%arg0: i32) -> (i32, i32) {
    %c0_i32 = arith.constant 0 : i32
    %c0_i32_0 = arith.constant 0 : i32
    %c0_i32_1 = arith.constant 0 : i32
    return %c0_i32, %c0_i32_0 : i32, i32
  }
  func.func @transform_2(%arg0: i32) -> (i32, i32) {
    %c0_i32 = arith.constant 0 : i32
    %c0_i32_0 = arith.constant 0 : i32
    %c0_i32_1 = arith.constant 0 : i32
    return %c0_i32, %c0_i32_0 : i32, i32
  }
  func.func @transform_3(%arg0: i32) -> (i32, i32) {
    %c0_i32 = arith.constant 0 : i32
    %c0_i32_0 = arith.constant 0 : i32
    %c0_i32_1 = arith.constant 0 : i32
    return %c0_i32, %c0_i32_0 : i32, i32
  }
  func.func @transform_4(%arg0: i32) -> (i32, i32) {
    %c0_i32 = arith.constant 0 : i32
    %c0_i32_0 = arith.constant 0 : i32
    %c0_i32_1 = arith.constant 0 : i32
    return %c0_i32, %c0_i32_0 : i32, i32
  }
  func.func @transform_5(%arg0: i32) -> (i32, i32) {
    %c0_i32 = arith.constant 0 : i32
    %c0_i32_0 = arith.constant 0 : i32
    %c0_i32_1 = arith.constant 0 : i32
    return %c0_i32, %c0_i32_0 : i32, i32
  }
  func.func @transform_6(%arg0: i32) -> (i32, i32) {
    %c0_i32 = arith.constant 0 : i32
    %c0_i32_0 = arith.constant 0 : i32
    %c0_i32_1 = arith.constant 0 : i32
    return %c0_i32, %c0_i32_0 : i32, i32
  }
  func.func @transform_7(%arg0: i32) -> (i32, i32) {
    %c0_i32 = arith.constant 0 : i32
    %c0_i32_0 = arith.constant 0 : i32
    %c0_i32_1 = arith.constant 0 : i32
    return %c0_i32, %c0_i32_0 : i32, i32
  }
  func.func @transform_8(%arg0: i32) -> (i32, i32) {
    %c0_i32 = arith.constant 0 : i32
    %c0_i32_0 = arith.constant 0 : i32
    %c0_i32_1 = arith.constant 0 : i32
    return %c0_i32, %c0_i32_0 : i32, i32
  }
  func.func @transform_9(%arg0: i32) -> (i32, i32) {
    %c0_i32 = arith.constant 0 : i32
    %c0_i32_0 = arith.constant 0 : i32
    %c0_i32_1 = arith.constant 0 : i32
    return %c0_i32, %c0_i32_0 : i32, i32
  }
  func.func @transform_10(%arg0: i32) -> (i32, i32) {
    %c0_i32 = arith.constant 0 : i32
    %c0_i32_0 = arith.constant 0 : i32
    %c0_i32_1 = arith.constant 0 : i32
    return %c0_i32, %c0_i32_0 : i32, i32
  }
  func.func @transform_11(%arg0: i32) -> (i32, i32) {
    %c0_i32 = arith.constant 0 : i32
    %c0_i32_0 = arith.constant 0 : i32
    %c0_i32_1 = arith.constant 0 : i32
    return %c0_i32, %c0_i32_0 : i32, i32
  }
  func.func @transform_12(%arg0: i32) -> (i32, i32) {
    %c0_i32 = arith.constant 0 : i32
    %c0_i32_0 = arith.constant 0 : i32
    %c0_i32_1 = arith.constant 0 : i32
    return %c0_i32, %c0_i32_0 : i32, i32
  }
  func.func @transform_13(%arg0: i32) -> (i32, i32) {
    %c0_i32 = arith.constant 0 : i32
    %c0_i32_0 = arith.constant 0 : i32
    %c0_i32_1 = arith.constant 0 : i32
    return %c0_i32, %c0_i32_0 : i32, i32
  }
  func.func @transform_14(%arg0: i32) -> (i32, i32) {
    %c0_i32 = arith.constant 0 : i32
    %c0_i32_0 = arith.constant 0 : i32
    %c0_i32_1 = arith.constant 0 : i32
    return %c0_i32, %c0_i32_0 : i32, i32
  }
  func.func @transform_15(%arg0: i32) -> (i32, i32) {
    %c0_i32 = arith.constant 0 : i32
    %c0_i32_0 = arith.constant 0 : i32
    %c0_i32_1 = arith.constant 0 : i32
    return %c0_i32, %c0_i32_0 : i32, i32
  }
  func.func @transform_16(%arg0: i32) -> (i32, i32) {
    %c0_i32 = arith.constant 0 : i32
    %c0_i32_0 = arith.constant 0 : i32
    %c0_i32_1 = arith.constant 0 : i32
    return %c0_i32, %c0_i32_0 : i32, i32
  }
  func.func @transform_17(%arg0: i32) -> (i32, i32, i32) {
    %c0_i32 = arith.constant 0 : i32
    %c0_i32_0 = arith.constant 0 : i32
    %c0_i32_1 = arith.constant 0 : i32
    return %arg0, %c0_i32, %c0_i32_0 : i32, i32, i32
  }
}

module attributes {stable_mosaic.version = 11 : i64} {
  func.func @clip_layer_kernel(%arg0: i32, %arg1: memref<2x8x32xf32, #tpu.memory_space<vmem>>, %arg2: memref<1x32xf32, #tpu.memory_space<vmem>>, %arg3: memref<1x32xf32, #tpu.memory_space<vmem>>, %arg4: memref<32x32xbf16, #tpu.memory_space<vmem>>, %arg5: memref<32x32xbf16, #tpu.memory_space<vmem>>, %arg6: memref<32x32xbf16, #tpu.memory_space<vmem>>, %arg7: memref<1x32xf32, #tpu.memory_space<vmem>>, %arg8: memref<1x32xf32, #tpu.memory_space<vmem>>, %arg9: memref<1x32xf32, #tpu.memory_space<vmem>>, %arg10: memref<32x32xbf16, #tpu.memory_space<vmem>>, %arg11: memref<1x32xf32, #tpu.memory_space<vmem>>, %arg12: memref<1x32xf32, #tpu.memory_space<vmem>>, %arg13: memref<1x32xf32, #tpu.memory_space<vmem>>, %arg14: memref<32x128xbf16, #tpu.memory_space<vmem>>, %arg15: memref<1x128xf32, #tpu.memory_space<vmem>>, %arg16: memref<128x32xbf16, #tpu.memory_space<vmem>>, %arg17: memref<1x32xf32, #tpu.memory_space<vmem>>, %arg18: memref<2x8x32xf32, #tpu.memory_space<vmem>>, %arg19: memref<16x32xbf16, #tpu.memory_space<vmem>>) attributes {dimension_semantics = [#tpu.dimension_semantics<parallel>], iteration_bounds = array<i64: 1>, scalar_prefetch = 0 : i64, scratch_operands = 1 : i64, tpu.core_type = #tpu.core_type<tc>, window_params = [{transform_indices = @transform_0, window_bounds = array<i64: 2, 8, 32>}, {pipeline_mode = #tpu.pipeline_mode<synchronous>, transform_indices = @transform_1, window_bounds = array<i64: 1, 32>}, {pipeline_mode = #tpu.pipeline_mode<synchronous>, transform_indices = @transform_2, window_bounds = array<i64: 1, 32>}, {pipeline_mode = #tpu.pipeline_mode<synchronous>, transform_indices = @transform_3, window_bounds = array<i64: 32, 32>}, {pipeline_mode = #tpu.pipeline_mode<synchronous>, transform_indices = @transform_4, window_bounds = array<i64: 32, 32>}, {pipeline_mode = #tpu.pipeline_mode<synchronous>, transform_indices = @transform_5, window_bounds = array<i64: 32, 32>}, {pipeline_mode = #tpu.pipeline_mode<synchronous>, transform_indices = @transform_6, window_bounds = array<i64: 1, 32>}, {pipeline_mode = #tpu.pipeline_mode<synchronous>, transform_indices = @transform_7, window_bounds = array<i64: 1, 32>}, {pipeline_mode = #tpu.pipeline_mode<synchronous>, transform_indices = @transform_8, window_bounds = array<i64: 1, 32>}, {pipeline_mode = #tpu.pipeline_mode<synchronous>, transform_indices = @transform_9, window_bounds = array<i64: 32, 32>}, {pipeline_mode = #tpu.pipeline_mode<synchronous>, transform_indices = @transform_10, window_bounds = array<i64: 1, 32>}, {pipeline_mode = #tpu.pipeline_mode<synchronous>, transform_indices = @transform_11, window_bounds = array<i64: 1, 32>}, {pipeline_mode = #tpu.pipeline_mode<synchronous>, transform_indices = @transform_12, window_bounds = array<i64: 1, 32>}, {pipeline_mode = #tpu.pipeline_mode<synchronous>, transform_indices = @transform_13, window_bounds = array<i64: 32, 128>}, {pipeline_mode = #tpu.pipeline_mode<synchronous>, transform_indices = @transform_14, window_bounds = array<i64: 1, 128>}, {pipeline_mode = #tpu.pipeline_mode<synchronous>, transform_indices = @transform_15, window_bounds = array<i64: 128, 32>}, {pipeline_mode = #tpu.pipeline_mode<synchronous>, transform_indices = @transform_16, window_bounds = array<i64: 1, 32>}, {transform_indices = @transform_17, window_bounds = array<i64: 2, 8, 32>}]} {
    %c0 = arith.constant 0 : index
    %c0_0 = arith.constant 0 : index
    %c0_1 = arith.constant 0 : index
    %0 = vector.load %arg1[%c0, %c0_0, %c0_1] : memref<2x8x32xf32, #tpu.memory_space<vmem>>, vector<2x8x32xf32>
    %1 = vector.shape_cast %0 : vector<2x8x32xf32> to vector<16x32xf32>
    %c0_2 = arith.constant 0 : index
    %c0_3 = arith.constant 0 : index
    %2 = vector.load %arg2[%c0_2, %c0_3] : memref<1x32xf32, #tpu.memory_space<vmem>>, vector<1x32xf32>
    %c0_4 = arith.constant 0 : index
    %c0_5 = arith.constant 0 : index
    %3 = vector.load %arg3[%c0_4, %c0_5] : memref<1x32xf32, #tpu.memory_space<vmem>>, vector<1x32xf32>
    %cst = arith.constant dense<0.000000e+00> : vector<16xf32>
    %4 = vector.multi_reduction <add>, %1, %cst [1] : vector<16x32xf32> to vector<16xf32>
    %5 = vector.shape_cast %4 : vector<16xf32> to vector<16x1xf32>
    %cst_6 = arith.constant 3.200000e+01 : f32
    %6 = vector.broadcast %cst_6 : f32 to vector<16x1xf32>
    %7 = arith.divf %5, %6 : vector<16x1xf32>
    %8 = vector.broadcast %7 : vector<16x1xf32> to vector<16x32xf32>
    %9 = arith.subf %1, %8 : vector<16x32xf32>
    %10 = arith.mulf %9, %9 : vector<16x32xf32>
    %cst_7 = arith.constant dense<0.000000e+00> : vector<16xf32>
    %11 = vector.multi_reduction <add>, %10, %cst_7 [1] : vector<16x32xf32> to vector<16xf32>
    %12 = vector.shape_cast %11 : vector<16xf32> to vector<16x1xf32>
    %cst_8 = arith.constant 3.200000e+01 : f32
    %13 = vector.broadcast %cst_8 : f32 to vector<16x1xf32>
    %14 = arith.divf %12, %13 : vector<16x1xf32>
    %15 = vector.broadcast %7 : vector<16x1xf32> to vector<16x32xf32>
    %16 = arith.subf %1, %15 : vector<16x32xf32>
    %cst_9 = arith.constant 9.99999974E-6 : f32
    %17 = vector.broadcast %cst_9 : f32 to vector<16x1xf32>
    %18 = arith.addf %14, %17 : vector<16x1xf32>
    %19 = math.rsqrt %18 : vector<16x1xf32>
    %20 = vector.broadcast %19 : vector<16x1xf32> to vector<16x32xf32>
    %21 = arith.mulf %16, %20 : vector<16x32xf32>
    %22 = vector.broadcast %2 : vector<1x32xf32> to vector<16x32xf32>
    %23 = arith.mulf %21, %22 : vector<16x32xf32>
    %24 = vector.broadcast %3 : vector<1x32xf32> to vector<16x32xf32>
    %25 = arith.addf %23, %24 : vector<16x32xf32>
    %26 = arith.truncf %25 : vector<16x32xf32> to vector<16x32xbf16>
    %c0_10 = arith.constant 0 : index
    %c0_11 = arith.constant 0 : index
    %27 = vector.load %arg4[%c0_10, %c0_11] : memref<32x32xbf16, #tpu.memory_space<vmem>>, vector<32x32xbf16>
    %cst_12 = arith.constant dense<0.000000e+00> : vector<16x32xf32>
    %28 = tpu.matmul %26, %27, %cst_12 {dimension_numbers = #tpu.dot_dimension_numbers<[1], [0], [0], [1], [0, 0, 1, 1], [], []>} : vector<16x32xbf16>, vector<32x32xbf16>, vector<16x32xf32> -> vector<16x32xf32>
    %c0_13 = arith.constant 0 : index
    %c0_14 = arith.constant 0 : index
    %29 = vector.load %arg7[%c0_13, %c0_14] : memref<1x32xf32, #tpu.memory_space<vmem>>, vector<1x32xf32>
    %30 = vector.broadcast %29 : vector<1x32xf32> to vector<16x32xf32>
    %31 = arith.addf %28, %30 : vector<16x32xf32>
    %cst_15 = arith.constant 0.353553385 : f32
    %32 = vector.broadcast %cst_15 : f32 to vector<16x32xf32>
    %33 = arith.mulf %31, %32 : vector<16x32xf32>
    %34 = arith.truncf %33 : vector<16x32xf32> to vector<16x32xbf16>
    %35 = vector.shape_cast %34 : vector<16x32xbf16> to vector<2x8x32xbf16>
    %c0_16 = arith.constant 0 : index
    %c0_17 = arith.constant 0 : index
    %36 = vector.load %arg5[%c0_16, %c0_17] : memref<32x32xbf16, #tpu.memory_space<vmem>>, vector<32x32xbf16>
    %cst_18 = arith.constant dense<0.000000e+00> : vector<16x32xf32>
    %37 = tpu.matmul %26, %36, %cst_18 {dimension_numbers = #tpu.dot_dimension_numbers<[1], [0], [0], [1], [0, 0, 1, 1], [], []>} : vector<16x32xbf16>, vector<32x32xbf16>, vector<16x32xf32> -> vector<16x32xf32>
    %c0_19 = arith.constant 0 : index
    %c0_20 = arith.constant 0 : index
    %38 = vector.load %arg8[%c0_19, %c0_20] : memref<1x32xf32, #tpu.memory_space<vmem>>, vector<1x32xf32>
    %39 = vector.broadcast %38 : vector<1x32xf32> to vector<16x32xf32>
    %40 = arith.addf %37, %39 : vector<16x32xf32>
    %41 = arith.truncf %40 : vector<16x32xf32> to vector<16x32xbf16>
    %42 = vector.shape_cast %41 : vector<16x32xbf16> to vector<2x8x32xbf16>
    %c0_21 = arith.constant 0 : index
    %c0_22 = arith.constant 0 : index
    %43 = vector.load %arg6[%c0_21, %c0_22] : memref<32x32xbf16, #tpu.memory_space<vmem>>, vector<32x32xbf16>
    %cst_23 = arith.constant dense<0.000000e+00> : vector<16x32xf32>
    %44 = tpu.matmul %26, %43, %cst_23 {dimension_numbers = #tpu.dot_dimension_numbers<[1], [0], [0], [1], [0, 0, 1, 1], [], []>} : vector<16x32xbf16>, vector<32x32xbf16>, vector<16x32xf32> -> vector<16x32xf32>
    %c0_24 = arith.constant 0 : index
    %c0_25 = arith.constant 0 : index
    %45 = vector.load %arg9[%c0_24, %c0_25] : memref<1x32xf32, #tpu.memory_space<vmem>>, vector<1x32xf32>
    %46 = vector.broadcast %45 : vector<1x32xf32> to vector<16x32xf32>
    %47 = arith.addf %44, %46 : vector<16x32xf32>
    %48 = arith.truncf %47 : vector<16x32xf32> to vector<16x32xbf16>
    %49 = vector.shape_cast %48 : vector<16x32xbf16> to vector<2x8x32xbf16>
    %50 = tpu.iota {dimensions = array<i32: 0>} : vector<8x8xi32>
    %51 = tpu.iota {dimensions = array<i32: 1>} : vector<8x8xi32>
    %52 = arith.cmpi sgt, %51, %50 : vector<8x8xi32>
    %cst_26 = arith.constant -1.000000e+09 : f32
    %cst_27 = arith.constant 0.000000e+00 : f32
    %53 = vector.broadcast %cst_26 : f32 to vector<8x8xf32>
    %54 = vector.broadcast %cst_27 : f32 to vector<8x8xf32>
    %55 = arith.select %52, %53, %54 : vector<8x8xi1>, vector<8x8xf32>
    %56 = vector.extract_strided_slice %35 {offsets = [0, 0, 0], sizes = [2, 8, 8], strides = [1, 1, 1]} : vector<2x8x32xbf16> to vector<2x8x8xbf16>
    %57 = vector.extract_strided_slice %42 {offsets = [0, 0, 0], sizes = [2, 8, 8], strides = [1, 1, 1]} : vector<2x8x32xbf16> to vector<2x8x8xbf16>
    "tpu.trace_start"() <{level = 10 : i32, message = "bqd,bkd->bqk"}> : () -> ()
    %cst_28 = arith.constant dense<0.000000e+00> : vector<2x8x8xf32>
    %58 = tpu.matmul %56, %57, %cst_28 {dimension_numbers = #tpu.dot_dimension_numbers<[2], [2], [1], [1], [0, 0, 0, 1, 1, 1], [0], [0]>} : vector<2x8x8xbf16>, vector<2x8x8xbf16>, vector<2x8x8xf32> -> vector<2x8x8xf32>
    "tpu.trace_stop"() : () -> ()
    %59 = vector.shape_cast %55 : vector<8x8xf32> to vector<1x8x8xf32>
    %60 = vector.broadcast %59 : vector<1x8x8xf32> to vector<2x8x8xf32>
    %61 = arith.addf %58, %60 : vector<2x8x8xf32>
    %cst_29 = arith.constant dense<0xFF800000> : vector<2x8xf32>
    %62 = vector.multi_reduction <maximumf>, %61, %cst_29 [2] : vector<2x8x8xf32> to vector<2x8xf32>
    %63 = vector.shape_cast %62 : vector<2x8xf32> to vector<2x8x1xf32>
    %64 = vector.broadcast %63 : vector<2x8x1xf32> to vector<2x8x8xf32>
    %65 = arith.subf %61, %64 : vector<2x8x8xf32>
    %66 = math.exp %65 : vector<2x8x8xf32>
    %cst_30 = arith.constant dense<0.000000e+00> : vector<2x8xf32>
    %67 = vector.multi_reduction <add>, %66, %cst_30 [2] : vector<2x8x8xf32> to vector<2x8xf32>
    %68 = vector.shape_cast %67 : vector<2x8xf32> to vector<2x8x1xf32>
    %69 = tpu.reciprocal %68 {approx = true} : vector<2x8x1xf32> -> vector<2x8x1xf32>
    %70 = vector.broadcast %69 : vector<2x8x1xf32> to vector<2x8x8xf32>
    %71 = arith.mulf %66, %70 : vector<2x8x8xf32>
    %72 = arith.truncf %71 : vector<2x8x8xf32> to vector<2x8x8xbf16>
    %73 = vector.extract_strided_slice %49 {offsets = [0, 0, 0], sizes = [2, 8, 8], strides = [1, 1, 1]} : vector<2x8x32xbf16> to vector<2x8x8xbf16>
    "tpu.trace_start"() <{level = 10 : i32, message = "bqk,bkd->bqd"}> : () -> ()
    %cst_31 = arith.constant dense<0.000000e+00> : vector<2x8x8xf32>
    %74 = tpu.matmul %72, %73, %cst_31 {dimension_numbers = #tpu.dot_dimension_numbers<[2], [1], [1], [2], [0, 0, 0, 1, 1, 2], [0], [0]>} : vector<2x8x8xbf16>, vector<2x8x8xbf16>, vector<2x8x8xf32> -> vector<2x8x8xf32>
    "tpu.trace_stop"() : () -> ()
    %75 = vector.extract_strided_slice %35 {offsets = [0, 0, 8], sizes = [2, 8, 8], strides = [1, 1, 1]} : vector<2x8x32xbf16> to vector<2x8x8xbf16>
    %76 = vector.extract_strided_slice %42 {offsets = [0, 0, 8], sizes = [2, 8, 8], strides = [1, 1, 1]} : vector<2x8x32xbf16> to vector<2x8x8xbf16>
    "tpu.trace_start"() <{level = 10 : i32, message = "bqd,bkd->bqk"}> : () -> ()
    %cst_32 = arith.constant dense<0.000000e+00> : vector<2x8x8xf32>
    %77 = tpu.matmul %75, %76, %cst_32 {dimension_numbers = #tpu.dot_dimension_numbers<[2], [2], [1], [1], [0, 0, 0, 1, 1, 1], [0], [0]>} : vector<2x8x8xbf16>, vector<2x8x8xbf16>, vector<2x8x8xf32> -> vector<2x8x8xf32>
    "tpu.trace_stop"() : () -> ()
    %78 = vector.shape_cast %55 : vector<8x8xf32> to vector<1x8x8xf32>
    %79 = vector.broadcast %78 : vector<1x8x8xf32> to vector<2x8x8xf32>
    %80 = arith.addf %77, %79 : vector<2x8x8xf32>
    %cst_33 = arith.constant dense<0xFF800000> : vector<2x8xf32>
    %81 = vector.multi_reduction <maximumf>, %80, %cst_33 [2] : vector<2x8x8xf32> to vector<2x8xf32>
    %82 = vector.shape_cast %81 : vector<2x8xf32> to vector<2x8x1xf32>
    %83 = vector.broadcast %82 : vector<2x8x1xf32> to vector<2x8x8xf32>
    %84 = arith.subf %80, %83 : vector<2x8x8xf32>
    %85 = math.exp %84 : vector<2x8x8xf32>
    %cst_34 = arith.constant dense<0.000000e+00> : vector<2x8xf32>
    %86 = vector.multi_reduction <add>, %85, %cst_34 [2] : vector<2x8x8xf32> to vector<2x8xf32>
    %87 = vector.shape_cast %86 : vector<2x8xf32> to vector<2x8x1xf32>
    %88 = tpu.reciprocal %87 {approx = true} : vector<2x8x1xf32> -> vector<2x8x1xf32>
    %89 = vector.broadcast %88 : vector<2x8x1xf32> to vector<2x8x8xf32>
    %90 = arith.mulf %85, %89 : vector<2x8x8xf32>
    %91 = arith.truncf %90 : vector<2x8x8xf32> to vector<2x8x8xbf16>
    %92 = vector.extract_strided_slice %49 {offsets = [0, 0, 8], sizes = [2, 8, 8], strides = [1, 1, 1]} : vector<2x8x32xbf16> to vector<2x8x8xbf16>
    "tpu.trace_start"() <{level = 10 : i32, message = "bqk,bkd->bqd"}> : () -> ()
    %cst_35 = arith.constant dense<0.000000e+00> : vector<2x8x8xf32>
    %93 = tpu.matmul %91, %92, %cst_35 {dimension_numbers = #tpu.dot_dimension_numbers<[2], [1], [1], [2], [0, 0, 0, 1, 1, 2], [0], [0]>} : vector<2x8x8xbf16>, vector<2x8x8xbf16>, vector<2x8x8xf32> -> vector<2x8x8xf32>
    "tpu.trace_stop"() : () -> ()
    %94 = vector.extract_strided_slice %35 {offsets = [0, 0, 16], sizes = [2, 8, 8], strides = [1, 1, 1]} : vector<2x8x32xbf16> to vector<2x8x8xbf16>
    %95 = vector.extract_strided_slice %42 {offsets = [0, 0, 16], sizes = [2, 8, 8], strides = [1, 1, 1]} : vector<2x8x32xbf16> to vector<2x8x8xbf16>
    "tpu.trace_start"() <{level = 10 : i32, message = "bqd,bkd->bqk"}> : () -> ()
    %cst_36 = arith.constant dense<0.000000e+00> : vector<2x8x8xf32>
    %96 = tpu.matmul %94, %95, %cst_36 {dimension_numbers = #tpu.dot_dimension_numbers<[2], [2], [1], [1], [0, 0, 0, 1, 1, 1], [0], [0]>} : vector<2x8x8xbf16>, vector<2x8x8xbf16>, vector<2x8x8xf32> -> vector<2x8x8xf32>
    "tpu.trace_stop"() : () -> ()
    %97 = vector.shape_cast %55 : vector<8x8xf32> to vector<1x8x8xf32>
    %98 = vector.broadcast %97 : vector<1x8x8xf32> to vector<2x8x8xf32>
    %99 = arith.addf %96, %98 : vector<2x8x8xf32>
    %cst_37 = arith.constant dense<0xFF800000> : vector<2x8xf32>
    %100 = vector.multi_reduction <maximumf>, %99, %cst_37 [2] : vector<2x8x8xf32> to vector<2x8xf32>
    %101 = vector.shape_cast %100 : vector<2x8xf32> to vector<2x8x1xf32>
    %102 = vector.broadcast %101 : vector<2x8x1xf32> to vector<2x8x8xf32>
    %103 = arith.subf %99, %102 : vector<2x8x8xf32>
    %104 = math.exp %103 : vector<2x8x8xf32>
    %cst_38 = arith.constant dense<0.000000e+00> : vector<2x8xf32>
    %105 = vector.multi_reduction <add>, %104, %cst_38 [2] : vector<2x8x8xf32> to vector<2x8xf32>
    %106 = vector.shape_cast %105 : vector<2x8xf32> to vector<2x8x1xf32>
    %107 = tpu.reciprocal %106 {approx = true} : vector<2x8x1xf32> -> vector<2x8x1xf32>
    %108 = vector.broadcast %107 : vector<2x8x1xf32> to vector<2x8x8xf32>
    %109 = arith.mulf %104, %108 : vector<2x8x8xf32>
    %110 = arith.truncf %109 : vector<2x8x8xf32> to vector<2x8x8xbf16>
    %111 = vector.extract_strided_slice %49 {offsets = [0, 0, 16], sizes = [2, 8, 8], strides = [1, 1, 1]} : vector<2x8x32xbf16> to vector<2x8x8xbf16>
    "tpu.trace_start"() <{level = 10 : i32, message = "bqk,bkd->bqd"}> : () -> ()
    %cst_39 = arith.constant dense<0.000000e+00> : vector<2x8x8xf32>
    %112 = tpu.matmul %110, %111, %cst_39 {dimension_numbers = #tpu.dot_dimension_numbers<[2], [1], [1], [2], [0, 0, 0, 1, 1, 2], [0], [0]>} : vector<2x8x8xbf16>, vector<2x8x8xbf16>, vector<2x8x8xf32> -> vector<2x8x8xf32>
    "tpu.trace_stop"() : () -> ()
    %113 = vector.extract_strided_slice %35 {offsets = [0, 0, 24], sizes = [2, 8, 8], strides = [1, 1, 1]} : vector<2x8x32xbf16> to vector<2x8x8xbf16>
    %114 = vector.extract_strided_slice %42 {offsets = [0, 0, 24], sizes = [2, 8, 8], strides = [1, 1, 1]} : vector<2x8x32xbf16> to vector<2x8x8xbf16>
    "tpu.trace_start"() <{level = 10 : i32, message = "bqd,bkd->bqk"}> : () -> ()
    %cst_40 = arith.constant dense<0.000000e+00> : vector<2x8x8xf32>
    %115 = tpu.matmul %113, %114, %cst_40 {dimension_numbers = #tpu.dot_dimension_numbers<[2], [2], [1], [1], [0, 0, 0, 1, 1, 1], [0], [0]>} : vector<2x8x8xbf16>, vector<2x8x8xbf16>, vector<2x8x8xf32> -> vector<2x8x8xf32>
    "tpu.trace_stop"() : () -> ()
    %116 = vector.shape_cast %55 : vector<8x8xf32> to vector<1x8x8xf32>
    %117 = vector.broadcast %116 : vector<1x8x8xf32> to vector<2x8x8xf32>
    %118 = arith.addf %115, %117 : vector<2x8x8xf32>
    %cst_41 = arith.constant dense<0xFF800000> : vector<2x8xf32>
    %119 = vector.multi_reduction <maximumf>, %118, %cst_41 [2] : vector<2x8x8xf32> to vector<2x8xf32>
    %120 = vector.shape_cast %119 : vector<2x8xf32> to vector<2x8x1xf32>
    %121 = vector.broadcast %120 : vector<2x8x1xf32> to vector<2x8x8xf32>
    %122 = arith.subf %118, %121 : vector<2x8x8xf32>
    %123 = math.exp %122 : vector<2x8x8xf32>
    %cst_42 = arith.constant dense<0.000000e+00> : vector<2x8xf32>
    %124 = vector.multi_reduction <add>, %123, %cst_42 [2] : vector<2x8x8xf32> to vector<2x8xf32>
    %125 = vector.shape_cast %124 : vector<2x8xf32> to vector<2x8x1xf32>
    %126 = tpu.reciprocal %125 {approx = true} : vector<2x8x1xf32> -> vector<2x8x1xf32>
    %127 = vector.broadcast %126 : vector<2x8x1xf32> to vector<2x8x8xf32>
    %128 = arith.mulf %123, %127 : vector<2x8x8xf32>
    %129 = arith.truncf %128 : vector<2x8x8xf32> to vector<2x8x8xbf16>
    %130 = vector.extract_strided_slice %49 {offsets = [0, 0, 24], sizes = [2, 8, 8], strides = [1, 1, 1]} : vector<2x8x32xbf16> to vector<2x8x8xbf16>
    "tpu.trace_start"() <{level = 10 : i32, message = "bqk,bkd->bqd"}> : () -> ()
    %cst_43 = arith.constant dense<0.000000e+00> : vector<2x8x8xf32>
    %131 = tpu.matmul %129, %130, %cst_43 {dimension_numbers = #tpu.dot_dimension_numbers<[2], [1], [1], [2], [0, 0, 0, 1, 1, 2], [0], [0]>} : vector<2x8x8xbf16>, vector<2x8x8xbf16>, vector<2x8x8xf32> -> vector<2x8x8xf32>
    "tpu.trace_stop"() : () -> ()
    %132 = tpu.concatenate %74, %93, %112, %131 in 2 : vector<2x8x8xf32>, vector<2x8x8xf32>, vector<2x8x8xf32>, vector<2x8x8xf32> -> vector<2x8x32xf32>
    %133 = vector.shape_cast %132 : vector<2x8x32xf32> to vector<16x32xf32>
    %134 = arith.truncf %133 : vector<16x32xf32> to vector<16x32xbf16>
    %c0_44 = arith.constant 0 : index
    %c0_45 = arith.constant 0 : index
    %135 = vector.load %arg19[%c0_44, %c0_45] : memref<16x32xbf16, #tpu.memory_space<vmem>>, vector<16x32xbf16>
    tpu.vector_store %arg19[%c0_44, %c0_45], %134 {strides = array<i32>} : memref<16x32xbf16, #tpu.memory_space<vmem>>, vector<16x32xbf16>,
    %c0_46 = arith.constant 0 : index
    %c0_47 = arith.constant 0 : index
    %136 = vector.load %arg19[%c0_46, %c0_47] : memref<16x32xbf16, #tpu.memory_space<vmem>>, vector<16x32xbf16>
    %c0_48 = arith.constant 0 : index
    %c0_49 = arith.constant 0 : index
    %137 = vector.load %arg10[%c0_48, %c0_49] : memref<32x32xbf16, #tpu.memory_space<vmem>>, vector<32x32xbf16>
    %cst_50 = arith.constant dense<0.000000e+00> : vector<16x32xf32>
    %138 = tpu.matmul %136, %137, %cst_50 {dimension_numbers = #tpu.dot_dimension_numbers<[1], [0], [0], [1], [0, 0, 1, 1], [], []>} : vector<16x32xbf16>, vector<32x32xbf16>, vector<16x32xf32> -> vector<16x32xf32>
    %c0_51 = arith.constant 0 : index
    %c0_52 = arith.constant 0 : index
    %139 = vector.load %arg11[%c0_51, %c0_52] : memref<1x32xf32, #tpu.memory_space<vmem>>, vector<1x32xf32>
    %140 = vector.broadcast %139 : vector<1x32xf32> to vector<16x32xf32>
    %141 = arith.addf %138, %140 : vector<16x32xf32>
    %142 = arith.addf %141, %1 : vector<16x32xf32>
    %c0_53 = arith.constant 0 : index
    %c0_54 = arith.constant 0 : index
    %143 = vector.load %arg12[%c0_53, %c0_54] : memref<1x32xf32, #tpu.memory_space<vmem>>, vector<1x32xf32>
    %c0_55 = arith.constant 0 : index
    %c0_56 = arith.constant 0 : index
    %144 = vector.load %arg13[%c0_55, %c0_56] : memref<1x32xf32, #tpu.memory_space<vmem>>, vector<1x32xf32>
    %cst_57 = arith.constant dense<0.000000e+00> : vector<16xf32>
    %145 = vector.multi_reduction <add>, %142, %cst_57 [1] : vector<16x32xf32> to vector<16xf32>
    %146 = vector.shape_cast %145 : vector<16xf32> to vector<16x1xf32>
    %cst_58 = arith.constant 3.200000e+01 : f32
    %147 = vector.broadcast %cst_58 : f32 to vector<16x1xf32>
    %148 = arith.divf %146, %147 : vector<16x1xf32>
    %149 = vector.broadcast %148 : vector<16x1xf32> to vector<16x32xf32>
    %150 = arith.subf %142, %149 : vector<16x32xf32>
    %151 = arith.mulf %150, %150 : vector<16x32xf32>
    %cst_59 = arith.constant dense<0.000000e+00> : vector<16xf32>
    %152 = vector.multi_reduction <add>, %151, %cst_59 [1] : vector<16x32xf32> to vector<16xf32>
    %153 = vector.shape_cast %152 : vector<16xf32> to vector<16x1xf32>
    %cst_60 = arith.constant 3.200000e+01 : f32
    %154 = vector.broadcast %cst_60 : f32 to vector<16x1xf32>
    %155 = arith.divf %153, %154 : vector<16x1xf32>
    %156 = vector.broadcast %148 : vector<16x1xf32> to vector<16x32xf32>
    %157 = arith.subf %142, %156 : vector<16x32xf32>
    %cst_61 = arith.constant 9.99999974E-6 : f32
    %158 = vector.broadcast %cst_61 : f32 to vector<16x1xf32>
    %159 = arith.addf %155, %158 : vector<16x1xf32>
    %160 = math.rsqrt %159 : vector<16x1xf32>
    %161 = vector.broadcast %160 : vector<16x1xf32> to vector<16x32xf32>
    %162 = arith.mulf %157, %161 : vector<16x32xf32>
    %163 = vector.broadcast %143 : vector<1x32xf32> to vector<16x32xf32>
    %164 = arith.mulf %162, %163 : vector<16x32xf32>
    %165 = vector.broadcast %144 : vector<1x32xf32> to vector<16x32xf32>
    %166 = arith.addf %164, %165 : vector<16x32xf32>
    %167 = arith.truncf %166 : vector<16x32xf32> to vector<16x32xbf16>
    %c0_62 = arith.constant 0 : index
    %c0_63 = arith.constant 0 : index
    %168 = vector.load %arg17[%c0_62, %c0_63] : memref<1x32xf32, #tpu.memory_space<vmem>>, vector<1x32xf32>
    %169 = vector.broadcast %168 : vector<1x32xf32> to vector<16x32xf32>
    %170 = arith.addf %142, %169 : vector<16x32xf32>
    %c0_64 = arith.constant 0 : index
    %c0_65 = arith.constant 0 : index
    %171 = vector.load %arg14[%c0_64, %c0_65] : memref<32x128xbf16, #tpu.memory_space<vmem>>, vector<32x128xbf16>
    %cst_66 = arith.constant dense<0.000000e+00> : vector<16x128xf32>
    %172 = tpu.matmul %167, %171, %cst_66 {dimension_numbers = #tpu.dot_dimension_numbers<[1], [0], [0], [1], [0, 0, 1, 1], [], []>} : vector<16x32xbf16>, vector<32x128xbf16>, vector<16x128xf32> -> vector<16x128xf32>
    %c0_67 = arith.constant 0 : index
    %c0_68 = arith.constant 0 : index
    %173 = vector.load %arg15[%c0_67, %c0_68] : memref<1x128xf32, #tpu.memory_space<vmem>>, vector<1x128xf32>
    %174 = vector.broadcast %173 : vector<1x128xf32> to vector<16x128xf32>
    %175 = arith.addf %172, %174 : vector<16x128xf32>
    %cst_69 = arith.constant 1.702000e+00 : f32
    %176 = vector.broadcast %cst_69 : f32 to vector<16x128xf32>
    %177 = arith.mulf %176, %175 : vector<16x128xf32>
    %178 = arith.negf %177 : vector<16x128xf32>
    %179 = math.exp %178 : vector<16x128xf32>
    %cst_70 = arith.constant 1.000000e+00 : f32
    %180 = vector.broadcast %cst_70 : f32 to vector<16x128xf32>
    %181 = arith.addf %180, %179 : vector<16x128xf32>
    %182 = arith.divf %180, %181 : vector<16x128xf32>
    %183 = arith.mulf %175, %182 : vector<16x128xf32>
    %184 = arith.truncf %183 : vector<16x128xf32> to vector<16x128xbf16>
    %c0_71 = arith.constant 0 : index
    %c0_72 = arith.constant 0 : index
    %185 = vector.load %arg16[%c0_71, %c0_72] : memref<128x32xbf16, #tpu.memory_space<vmem>>, vector<128x32xbf16>
    %cst_73 = arith.constant dense<0.000000e+00> : vector<16x32xf32>
    %186 = tpu.matmul %184, %185, %cst_73 {dimension_numbers = #tpu.dot_dimension_numbers<[1], [0], [0], [1], [0, 0, 1, 1], [], []>} : vector<16x128xbf16>, vector<128x32xbf16>, vector<16x32xf32> -> vector<16x32xf32>
    %187 = arith.addf %170, %186 : vector<16x32xf32>
    %188 = vector.shape_cast %187 : vector<16x32xf32> to vector<2x8x32xf32>
    %c0_74 = arith.constant 0 : index
    %c0_75 = arith.constant 0 : index
    %c0_76 = arith.constant 0 : index
    %189 = vector.load %arg18[%c0_74, %c0_75, %c0_76] : memref<2x8x32xf32, #tpu.memory_space<vmem>>, vector<2x8x32xf32>
    tpu.vector_store %arg18[%c0_74, %c0_75, %c0_76], %188 {strides = array<i32>} : memref<2x8x32xf32, #tpu.memory_space<vmem>>, vector<2x8x32xf32>,
    return
  }
  func.func @transform_0(%arg0: i32) -> (i32, i32, i32) {
    %c0_i32 = arith.constant 0 : i32
    %c0_i32_0 = arith.constant 0 : i32
    %c0_i32_1 = arith.constant 0 : i32
    return %arg0, %c0_i32, %c0_i32_0 : i32, i32, i32
  }
  func.func @transform_1(%arg0: i32) -> (i32, i32) {
    %c0_i32 = arith.constant 0 : i32
    %c0_i32_0 = arith.constant 0 : i32
    %c0_i32_1 = arith.constant 0 : i32
    return %c0_i32, %c0_i32_0 : i32, i32
  }
  func.func @transform_2(%arg0: i32) -> (i32, i32) {
    %c0_i32 = arith.constant 0 : i32
    %c0_i32_0 = arith.constant 0 : i32
    %c0_i32_1 = arith.constant 0 : i32
    return %c0_i32, %c0_i32_0 : i32, i32
  }
  func.func @transform_3(%arg0: i32) -> (i32, i32) {
    %c0_i32 = arith.constant 0 : i32
    %c0_i32_0 = arith.constant 0 : i32
    %c0_i32_1 = arith.constant 0 : i32
    return %c0_i32, %c0_i32_0 : i32, i32
  }
  func.func @transform_4(%arg0: i32) -> (i32, i32) {
    %c0_i32 = arith.constant 0 : i32
    %c0_i32_0 = arith.constant 0 : i32
    %c0_i32_1 = arith.constant 0 : i32
    return %c0_i32, %c0_i32_0 : i32, i32
  }
  func.func @transform_5(%arg0: i32) -> (i32, i32) {
    %c0_i32 = arith.constant 0 : i32
    %c0_i32_0 = arith.constant 0 : i32
    %c0_i32_1 = arith.constant 0 : i32
    return %c0_i32, %c0_i32_0 : i32, i32
  }
  func.func @transform_6(%arg0: i32) -> (i32, i32) {
    %c0_i32 = arith.constant 0 : i32
    %c0_i32_0 = arith.constant 0 : i32
    %c0_i32_1 = arith.constant 0 : i32
    return %c0_i32, %c0_i32_0 : i32, i32
  }
  func.func @transform_7(%arg0: i32) -> (i32, i32) {
    %c0_i32 = arith.constant 0 : i32
    %c0_i32_0 = arith.constant 0 : i32
    %c0_i32_1 = arith.constant 0 : i32
    return %c0_i32, %c0_i32_0 : i32, i32
  }
  func.func @transform_8(%arg0: i32) -> (i32, i32) {
    %c0_i32 = arith.constant 0 : i32
    %c0_i32_0 = arith.constant 0 : i32
    %c0_i32_1 = arith.constant 0 : i32
    return %c0_i32, %c0_i32_0 : i32, i32
  }
  func.func @transform_9(%arg0: i32) -> (i32, i32) {
    %c0_i32 = arith.constant 0 : i32
    %c0_i32_0 = arith.constant 0 : i32
    %c0_i32_1 = arith.constant 0 : i32
    return %c0_i32, %c0_i32_0 : i32, i32
  }
  func.func @transform_10(%arg0: i32) -> (i32, i32) {
    %c0_i32 = arith.constant 0 : i32
    %c0_i32_0 = arith.constant 0 : i32
    %c0_i32_1 = arith.constant 0 : i32
    return %c0_i32, %c0_i32_0 : i32, i32
  }
  func.func @transform_11(%arg0: i32) -> (i32, i32) {
    %c0_i32 = arith.constant 0 : i32
    %c0_i32_0 = arith.constant 0 : i32
    %c0_i32_1 = arith.constant 0 : i32
    return %c0_i32, %c0_i32_0 : i32, i32
  }
  func.func @transform_12(%arg0: i32) -> (i32, i32) {
    %c0_i32 = arith.constant 0 : i32
    %c0_i32_0 = arith.constant 0 : i32
    %c0_i32_1 = arith.constant 0 : i32
    return %c0_i32, %c0_i32_0 : i32, i32
  }
  func.func @transform_13(%arg0: i32) -> (i32, i32) {
    %c0_i32 = arith.constant 0 : i32
    %c0_i32_0 = arith.constant 0 : i32
    %c0_i32_1 = arith.constant 0 : i32
    return %c0_i32, %c0_i32_0 : i32, i32
  }
  func.func @transform_14(%arg0: i32) -> (i32, i32) {
    %c0_i32 = arith.constant 0 : i32
    %c0_i32_0 = arith.constant 0 : i32
    %c0_i32_1 = arith.constant 0 : i32
    return %c0_i32, %c0_i32_0 : i32, i32
  }
  func.func @transform_15(%arg0: i32) -> (i32, i32) {
    %c0_i32 = arith.constant 0 : i32
    %c0_i32_0 = arith.constant 0 : i32
    %c0_i32_1 = arith.constant 0 : i32
    return %c0_i32, %c0_i32_0 : i32, i32
  }
  func.func @transform_16(%arg0: i32) -> (i32, i32) {
    %c0_i32 = arith.constant 0 : i32
    %c0_i32_0 = arith.constant 0 : i32
    %c0_i32_1 = arith.constant 0 : i32
    return %c0_i32, %c0_i32_0 : i32, i32
  }
  func.func @transform_17(%arg0: i32) -> (i32, i32, i32) {
    %c0_i32 = arith.constant 0 : i32
    %c0_i32_0 = arith.constant 0 : i32
    %c0_i32_1 = arith.constant 0 : i32
    return %arg0, %c0_i32, %c0_i32_0 : i32, i32, i32
  }
}

</mosaic_0001>

<bundles_post_ra>
// kernel: tpu_custom_call.1
= control target key start
LH: loop header
LB: loop body
LE: loop exit
PB: predicated region body
PF: predicated region fallthrough
CT: control target
= control target key end

     0   :  { %s2543_s0 = inlined_call_operand.vmem [shape: f32[2,8,32], index: 0, kind: input, shape index: {}]   ;;  %s2544_s1 = inlined_call_operand.vmem [shape: f32[1,32], index: 1, kind: input, shape index: {}]   ;;  %s2545_s2 = inlined_call_operand.vmem [shape: f32[1,32], index: 2, kind: input, shape index: {}]   ;;  %s2546_s3 = inlined_call_operand.vmem [shape: bf16[32,32], index: 3, kind: input, shape index: {}]   ;;  %s2547_s4 = inlined_call_operand.vmem [shape: bf16[32,32], index: 4, kind: input, shape index: {}]   ;;  %s2548_s5 = inlined_call_operand.vmem [shape: bf16[32,32], index: 5, kind: input, shape index: {}]   ;;  %s2549_s6 = inlined_call_operand.hbm [shape: f32[1,32], index: 6, kind: input, shape index: {}]   ;;  %s2550_s7 = inlined_call_operand.hbm [shape: f32[1,32], index: 7, kind: input, shape index: {}]   ;;  %s2551_s8 = inlined_call_operand.hbm [shape: f32[1,32], index: 8, kind: input, shape index: {}]   ;;  %s2552_s9 = inlined_call_operand.vmem [shape: bf16[32,32], index: 9, kind: input, shape index: {}]   ;;  %s2553_s10 = inlined_call_operand.vmem [shape: f32[1,32], index: 10, kind: input, shape index: {}]   ;;  %s2554_s11 = inlined_call_operand.vmem [shape: f32[1,32], index: 11, kind: input, shape index: {}]   ;;  %s2555_s12 = inlined_call_operand.vmem [shape: f32[1,32], index: 12, kind: input, shape index: {}]   ;;  %s2556_s13 = inlined_call_operand.vmem [shape: bf16[32,128], index: 13, kind: input, shape index: {}]   ;;  %s2557_s14 = inlined_call_operand.vmem [shape: f32[1,128], index: 14, kind: input, shape index: {}]   ;;  %s2558_s15 = inlined_call_operand.vmem [shape: bf16[128,32], index: 15, kind: input, shape index: {}]   ;;  %s2559_s16 = inlined_call_operand.vmem [shape: f32[1,32], index: 16, kind: input, shape index: {}]   ;;  %s2560_s17 = inlined_call_operand.hbm [shape: f32[2,8,32], index: 17, kind: output, shape index: {}]  }
   0x1   :  { %2562 = sst [smem:[#allocation13_spill]] %s2543_s0 }
   0x2   :  { %2563 = sst [smem:[#allocation14_spill]] %s2544_s1 }
   0x3   :  { %22 = vsyncpa [#allocation4], 0 }
   0x4   :  { %23 = vsyncpa [#allocation7], 0 }
   0x5   :  { %24 = vsyncpa [#allocation5], 0  ;;  %s2065_s24 = smov [#allocation6]   ;;  %s2066_s26 = smov [#allocation3]  }
   0x6   :  { %s53_s25 = sshll.u32 %s2065_s24, 4  ;;  %s43_s27 = sshll.u32 %s2066_s26, 4  ;;  %s54_s25 = int_to_ptr.vmem [resolvable:$true] %s53_s25  ;;  %s44_s27 = int_to_ptr.vmem [resolvable:$true] %s43_s27 }
   0x7   :  { %s1971_s0 = scalar_lea.hbm %s2550_s7, 16 }
   0x8   :  { %p1972_p0 = scmp.ne.s32.totalorder %s2550_s7, %s1971_s0  ;;  %p1975_p1 = scmp.lt.u32.totalorder %s1971_s0, %s2550_s7 }
   0xa   :  { %p1977_p2 = pnand %p1975_p1, %p1972_p0 }
   0xc   :  { %1980 = shalt.err (!%p1977_p2)
}
   0xd   :  { %s1981_s20 = scalar_lea.vmem %s54_s25, 16  ;;  %s1985_s21 = scalar_lea.vmem %s54_s25, 32 }
   0xe   :  { %p1982_p3 = scmp.ne.s32.totalorder %s54_s25, %s1981_s20  ;;  %p1986_p4 = scmp.lt.s32.totalorder %s54_s25, %s54_s25 }
   0xf   :  { %p1987_p5 = scmp.lt.s32.totalorder %s1985_s21, %s1981_s20 }
  0x11   :  { %p1988_p6 = por %p1987_p5, %p1986_p4 }
  0x13   :  { %p1989_p7 = pnand %p1988_p6, %p1982_p3 }
  0x15   :  { %1992 = shalt.err (!%p1989_p7)
}
  0x16   :  { %56 = dma.hbm_to_vmem [thread:$0]  %s2550_s7, 16, %s54_s25, [#allocation7]  }
  0x17   :  { %s1993_s28 = scalar_lea.hbm %s2549_s6, 16 }
  0x18   :  { %p1994_p8 = scmp.ne.s32.totalorder %s2549_s6, %s1993_s28  ;;  %p1997_p9 = scmp.lt.u32.totalorder %s1993_s28, %s2549_s6 }
  0x1a   :  { %p1999_p10 = pnand %p1997_p9, %p1994_p8 }
  0x1c   :  { %2002 = shalt.err (!%p1999_p10)
}
  0x1d   :  { %s2003_s19 = scalar_lea.vmem %s44_s27, 16  ;;  %s2007_s1 = scalar_lea.vmem %s44_s27, 32 }
  0x1e   :  { %p2004_p11 = scmp.ne.s32.totalorder %s44_s27, %s2003_s19  ;;  %p2008_p12 = scmp.lt.s32.totalorder %s44_s27, %s44_s27 }
  0x1f   :  { %p2009_p13 = scmp.lt.s32.totalorder %s2007_s1, %s2003_s19 }
  0x21   :  { %p2010_p0 = por %p2009_p13, %p2008_p12 }
  0x23   :  { %p2011_p1 = pnand %p2010_p0, %p2004_p11 }
  0x25   :  { %2014 = shalt.err (!%p2011_p1)
}
  0x26   :  { %46 = dma.hbm_to_vmem [thread:$0]  %s2549_s6, 16, %s44_s27, [#allocation4]  }
  0x27   :  { %s2067_s20 = smov [#allocation8]   ;;  %s2015_s24 = scalar_lea.hbm %s2551_s8, 16 }
  0x28   :  { %s63_s21 = sshll.u32 %s2067_s20, 4  ;;  %p2016_p2 = scmp.ne.s32.totalorder %s2551_s8, %s2015_s24  ;;  %s64_s21 = int_to_ptr.vmem [resolvable:$true] %s63_s21 }
  0x29   :  { %p2019_p3 = scmp.lt.u32.totalorder %s2015_s24, %s2551_s8 }
  0x2b   :  { %p2021_p4 = pnand %p2019_p3, %p2016_p2 }
  0x2d   :  { %2024 = shalt.err (!%p2021_p4)
}
  0x2e   :  { %s2025_s30 = scalar_lea.vmem %s64_s21, 16  ;;  %s2029_s6 = scalar_lea.vmem %s64_s21, 32 }
  0x2f   :  { %p2026_p5 = scmp.ne.s32.totalorder %s64_s21, %s2025_s30  ;;  %p2030_p6 = scmp.lt.s32.totalorder %s64_s21, %s64_s21 }
  0x30   :  { %p2031_p7 = scmp.lt.s32.totalorder %s2029_s6, %s2025_s30 }
  0x32   :  { %p2032_p8 = por %p2031_p7, %p2030_p6 }
  0x34   :  { %p2033_p9 = pnand %p2032_p8, %p2026_p5 }
  0x36   :  { %2036 = shalt.err (!%p2033_p9)
}
  0x37   :  { %66 = dma.hbm_to_vmem [thread:$0]  %s2551_s8, 16, %s64_s21, [#allocation7]  }
  0x38   :  { %2059 = dma.done.wait [#allocation4], 16  }
  0x39   :  { %2060 = vsyncadd [#allocation4], 4294967280 }
  0x3a   :  { %2061 = dma.done.wait [#allocation7], 32  }
  0x3b   :  { %2062 = vsyncadd [#allocation7], 4294967264  ;;  %vm97_vm0 = vcmask 261120   ;;  %s2564_s7 = sld [smem:[#allocation13_spill]]  ;;  %v1905_v14 = vld [vmem:[%s2546_s3] sm:$0xff]   ;;  %v2068_v15 = vmov 0.0  }
  0x3c   :  { %1721 = vmatprep.subr.bf16.mxu0 %v2068_v15  ;;  %1745 = vmatprep.subr.bf16.mxu1 %v2068_v15  ;;  %v1906_v16 = vld [vmem:[%s2546_s3 + $0x8] sm:$0xff]   ;;  %vm2069_vm1 = vmmov 0   ;;  %s2565_s26 = sld [smem:[#allocation14_spill]]  ;;  %v1603_v29 = vld [vmem:[%s2545_s2] ss:$0 sm:$0xff]  ;;  %vm363_vm2 = vcmask 64512  }
  0x3d   :  { %1722 = vmatpush3.bf16.msra.mxu0 %v1905_v14  ;;  %1725 = vmatprep.mubr.msk.bf16.mxu0 %vm2069_vm1, %v2068_v15  ;;  %v1907_v33 = vld [vmem:[%s2547_s4] sm:$0xff]   ;;  %v1908_v35 = vld [vmem:[%s2547_s4 + $0x8] sm:$0xff]   ;;  %vm483_vm3 = vcmask 1043456   ;;  %s2070_s4 = smov 120   ;;  %s2073_s25 = smov 8   ;;  %vm1259_vm5 = vcmask 130048  }
  0x3e   :  { %1723 = vmatprep.subr.bf16.mxu0 %v2068_v15  ;;  %1747 = vmatprep.mubr.msk.bf16.mxu1 %vm2069_vm1, %v2068_v15  ;;  %v1909_v36 = vld [vmem:[%s2548_s5] sm:$0xff]   ;;  %v1910_v37 = vld [vmem:[%s2548_s5 + $0x8] sm:$0xff]   ;;  %s2071_s5 = smov 112   ;;  %s2074_s20 = smov 16   ;;  %vm1262_vm6 = vcmask 195584  }
  0x3f   :  { %v1610_v42 = vld [vmem:[#allocation6] ss:$0 sm:$0xff]  ;;  %v1604_v43 = vld [vmem:[#allocation3] ss:$0 sm:$0xff]  ;;  %v1616_v55 = vld [vmem:[#allocation8] ss:$0 sm:$0xff] }
  0x40   :  { %s2075_s3 = smov 24  }
  0x41   :  { %v2207_v0 = vld [vmem:[%s2564_s7] sm:$0xff]  ;;  %v2212_v1 = vld [vmem:[%s2564_s7 + $0x8] sm:$0xff]  ;;  %1724 = vmatpush3.bf16.msra.mxu0 %v1906_v16  ;;  %s2072_s7 = smov 104  }
  0x42   :  { %v98_v2 = vsel %vm97_vm0, %v2207_v0, 0.0  ;;  %v101_v3 = vsel %vm97_vm0, %v2212_v1, 0.0  ;;  %1729 = vmatprep.subr.bf16.mxu0 %v2068_v15  ;;  %v1602_v25 = vld [vmem:[%s2565_s26] ss:$0 sm:$0xff] }
  0x43   :  { %99 = vadd.xlane.f32.xlu0 %v98_v2 }
  0x47   :  { %102 = vadd.xlane.f32.xlu0 %v101_v3 }
  0xd0   :  { %v100_v4 = vpop.xlane.xlu0 %99 }
  0xd1   :  { %v105_v5 = vmul.f32 0.03125, %v100_v4 }
  0xd3   :  { %v107_v6 = vsub.f32 %v2207_v0, %v105_v5 }
  0xd4   :  { %v103_v7 = vpop.xlane.xlu0 %102 }
  0xd5   :  { %v106_v8 = vmul.f32 0.03125, %v103_v7  ;;  %v109_v9 = vmul.f32 %v107_v6, %v107_v6 }
  0xd7   :  { %v108_v10 = vsub.f32 %v2212_v1, %v106_v8  ;;  %v111_v11 = vsel %vm97_vm0, %v109_v9, 0.0  ;;  %v357_v9 = vlaneseq }
  0xd8   :  { %112 = vadd.xlane.f32.xlu1 %v111_v11 }
  0xd9   :  { %v110_v12 = vmul.f32 %v108_v10, %v108_v10  ;;  %v360_v11 = vand.u32 127, %v357_v9 }
  0xdb   :  { %v114_v13 = vsel %vm97_vm0, %v110_v12, 0.0 }
  0xdc   :  { %115 = vadd.xlane.f32.xlu1 %v114_v13 }
 0x165   :  { %v113_v17 = vpop.xlane.xlu1 %112 }
 0x166   :  { %v117_v18 = vmul.f32 0.03125, %v113_v17 }
 0x168   :  { %v119_v19 = vadd.f32 1e-05, %v117_v18 }
 0x169   :  { %v116_v20 = vpop.xlane.xlu1 %115 }
 0x16a   :  { %1923 = vrsqrt.f32 %v119_v19  ;;  %v118_v21 = vmul.f32 0.03125, %v116_v20 }
 0x16c   :  { %v120_v22 = vadd.f32 1e-05, %v118_v21 }
 0x16e   :  { %1925 = vrsqrt.f32 %v120_v22 }
 0x174   :  { %v1924_v23 = vpop.eup %1923 }
 0x175   :  { %v123_v24 = vmul.f32 %v1924_v23, %v107_v6 }
 0x177   :  { %v131_v28 = vmul.f32 %v1602_v25, %v123_v24 }
 0x178   :  { %v1926_v26 = vpop.eup %1925 }
 0x179   :  { %v124_v27 = vmul.f32 %v1926_v26, %v108_v10  ;;  %v139_v31 = vadd.f32 %v1603_v29, %v131_v28  ;;  %v358_v10 = vshrl.u32 %v357_v9, 7 }
 0x17b   :  { %v132_v30 = vmul.f32 %v1602_v25, %v124_v27  ;;  %vm361_vm4 = vcmp.gt.s32.totalorder %v360_v11, %v358_v10 }
 0x17c   :  { %v2300_v12 = vsel %vm361_vm4, -1e+09, %v2068_v15 }
 0x17d   :  { %v140_v32 = vadd.f32 %v1603_v29, %v132_v30 }
 0x17f   :  { %v141_v34 = vpack.c.bf16 %v140_v32, %v139_v31 }
 0x181   :  { %1726 = vmatmul.mubr.msk.bf16.vlgmr.msra.gmra.mrb[0].mxu0 %vm97_vm0, %v141_v34 }
 0x182   :  { %1730 = vmatpush3.bf16.msra.mxu0 %v1907_v33  ;;  %1733 = vmatprep.mubr.msk.bf16.mxu0 %vm2069_vm1, %v2068_v15 }
 0x183   :  { %1731 = vmatprep.subr.bf16.mxu0 %v2068_v15 }
 0x186   :  { %1732 = vmatpush3.bf16.msra.mxu0 %v1908_v35 }
 0x187   :  { %1737 = vmatprep.subr.bf16.mxu0 %v2068_v15 }
 0x189   :  { %1734 = vmatmul.mubr.msk.bf16.vlgmr.msra.gmra.mrb[4].mxu0 %vm97_vm0, %v141_v34 }
 0x18a   :  { %1738 = vmatpush3.bf16.msra.mxu0 %v1909_v36  ;;  %1741 = vmatprep.mubr.msk.bf16.mxu0 %vm2069_vm1, %v2068_v15 }
 0x18b   :  { %1739 = vmatprep.subr.bf16.mxu0 %v2068_v15 }
 0x18e   :  { %1740 = vmatpush3.bf16.msra.mxu0 %v1910_v37 }
 0x18f   :  { %1751 = vmatprep.subr.bf16.mxu0 %v2068_v15 }
 0x191   :  { %1742 = vmatmul.mubr.msk.bf16.vlgmr.msra.gmra.mrb[8].mxu0 %vm97_vm0, %v141_v34 }
 0x192   :  { %1753 = vmatprep.mubr.msk.bf16.mxu0 %vm2069_vm1, %v2068_v15 }
 0x254   :  { %v202_v38 = vpop.f32.mrb[0].mxu0 }
 0x255   :  { %v1727_v39 = vpop.f32.mrb[1].mxu0  ;;  %v203_v48 = vadd.f32 %v1604_v43, %v202_v38 }
 0x256   :  { %v205_v40 = vpop.f32.mrb[2].mxu0 }
 0x257   :  { %v1728_v41 = vpop.f32.mrb[3].mxu0  ;;  %v206_v52 = vadd.f32 %v1604_v43, %v205_v40  ;;  %v209_v56 = vmul.f32 0.35355338, %v203_v48 }
 0x259   :  { %v210_v59 = vmul.f32 0.35355338, %v206_v52  ;;  %v2277_v63 = vpack.c.bf16 %v209_v56, %v209_v56 }
 0x25b   :  { %v2281_v5 = vpack.c.bf16 %v210_v59, %v210_v59 }
 0x25c   :  { %v274_v44 = vpop.f32.mrb[4].mxu0 }
 0x25d   :  { %v275_v45 = vadd.f32 %v1610_v42, %v274_v44  ;;  %v1735_v46 = vpop.f32.mrb[5].mxu0 }
 0x25e   :  { %v277_v47 = vpop.f32.mrb[6].mxu0 }
 0x25f   :  { %v2267_v49 = vpack.c.bf16 %v275_v45, %v275_v45  ;;  %v278_v50 = vadd.f32 %v1610_v42, %v277_v47  ;;  %v1736_v51 = vpop.f32.mrb[7].mxu0 }
 0x261   :  { %v2269_v53 = vpack.c.bf16 %v278_v50, %v278_v50  ;;  %v368_v54 = vsel %vm363_vm2, %v2267_v49, 0 }
 0x262   :  { %1746 = vmatpush3.bf16.xpose.msra.mxu1 %v368_v54 }
 0x263   :  { %v414_v57 = vsel %vm363_vm2, %v2269_v53, 0  ;;  %1757 = vmatprep.subr.bf16.mxu1 %v2068_v15 }
 0x264   :  { %v344_v58 = vpop.f32.mrb[8].mxu0  ;;  %1752 = vmatpush3.bf16.xpose.msra.mxu0 %v414_v57 }
 0x265   :  { %v345_v60 = vadd.f32 %v1616_v55, %v344_v58  ;;  %v1743_v61 = vpop.f32.mrb[9].mxu0  ;;  %1763 = vmatprep.subr.bf16.mxu0 %v2068_v15 }
 0x266   :  { %v347_v62 = vpop.f32.mrb[10].mxu0 }
 0x267   :  { %v2279_v2 = vpack.c.bf16 %v345_v60, %v345_v60  ;;  %v348_v3 = vadd.f32 %v1616_v55, %v347_v62  ;;  %v1744_v4 = vpop.f32.mrb[11].mxu0 }
 0x269   :  { %v2283_v6 = vpack.c.bf16 %v348_v3, %v348_v3  ;;  %1748 = vmatmul.mubr.msk.bf16.vlgmr.msra.gmra.mrb[0].mxu1 %vm363_vm2, %v2277_v63  ;;  %v485_v7 = vsel %vm483_vm3, %v2279_v2, 0 }
 0x26a   :  { %1758 = vmatpush3.bf16.msra.mxu1 %v485_v7  ;;  %1759 = vmatprep.mubr.msk.bf16.mxu1 %vm2069_vm1, %v2068_v15 }
 0x26b   :  { %1754 = vmatmul.mubr.msk.bf16.vlgmr.msra.gmra.mrb[12].mxu0 %vm363_vm2, %v2281_v5  ;;  %v531_v8 = vsel %vm483_vm3, %v2283_v6, 0  ;;  %1769 = vmatprep.subr.bf16.mxu1 %v2068_v15 }
 0x26c   :  { %1764 = vmatpush3.bf16.msra.mxu0 %v531_v8  ;;  %1765 = vmatprep.mubr.msk.bf16.mxu0 %vm2069_vm1, %v2068_v15 }
 0x26d   :  { %1775 = vmatprep.subr.bf16.mxu0 %v2068_v15 }
 0x33c   :  { %v404_v13 = vpop.f32.mrb[0].mxu1 }
 0x33d   :  { %v405_v14 = vadd.f32 %v404_v13, %v2300_v12  ;;  %v1749_v16 = vpop.f32.mrb[1].mxu1 }
 0x33e   :  { %v407_v17 = vpop.f32.mrb[2].mxu1  ;;  %v450_v18 = vpop.f32.mrb[12].mxu0 }
 0x33f   :  { %v451_v19 = vadd.f32 %v450_v18, %v2300_v12  ;;  %v1750_v20 = vpop.f32.mrb[3].mxu1  ;;  %v1755_v21 = vpop.f32.mrb[13].mxu0  ;;  %v456_v22 = vsel %vm363_vm2, %v405_v14, -inf }
 0x340   :  { %457 = vmax.xlane.f32.xlu0 %v456_v22  ;;  %v453_v23 = vpop.f32.mrb[14].mxu0 }
 0x341   :  { %v1756_v24 = vpop.f32.mrb[15].mxu0  ;;  %v459_v25 = vsel %vm363_vm2, %v451_v19, -inf }
 0x342   :  { %460 = vmax.xlane.f32.xlu1 %v459_v25 }
 0x353   :  { %625 = vrot.lane.b32.xlu1 %v2269_v53, %s2070_s4 }
 0x3cd   :  { %v458_v26 = vpop.xlane.xlu0 %457 }
 0x3ce   :  { %v462_v27 = vsub.f32 %v405_v14, %v458_v26 }
 0x3cf   :  { %v461_v28 = vpop.xlane.xlu1 %460 }
 0x3d0   :  { %v464_v29 = vmul.f32 1.442695, %v462_v27  ;;  %v463_v30 = vsub.f32 %v451_v19, %v461_v28 }
 0x3d2   :  { %1927 = vpow2.f32 %v464_v29  ;;  %v466_v31 = vmul.f32 1.442695, %v463_v30 }
 0x3d3   :  { %v626_v36 = vpop.permute.xlu1 %625 }
 0x3d4   :  { %1929 = vpow2.f32 %v466_v31  ;;  %v631_v47 = vsel %vm363_vm2, %v626_v36, 0 }
 0x3dc   :  { %v1928_v32 = vpop.eup %1927 }
 0x3dd   :  { %v468_v33 = vsel %vm363_vm2, %v1928_v32, 0.0 }
 0x3de   :  { %v1930_v34 = vpop.eup %1929  ;;  %469 = vadd.xlane.f32.xlu0 %v468_v33 }
 0x3df   :  { %v471_v35 = vsel %vm363_vm2, %v1930_v34, 0.0 }
 0x3e0   :  { %472 = vadd.xlane.f32.xlu1 %v471_v35 }
 0x3f1   :  { %573 = vrot.lane.b32.xlu1 %v2277_v63, %s2070_s4 }
 0x3f4   :  { %575 = vrot.lane.b32.xlu0 %v2267_v49, %s2070_s4 }
 0x3f5   :  { %623 = vrot.lane.b32.xlu1 %v2281_v5, %s2070_s4 }
 0x46b   :  { %v470_v37 = vpop.xlane.xlu0 %469 }
 0x46c   :  { %1931 = vrcp.f32 %v470_v37 }
 0x46d   :  { %v473_v38 = vpop.xlane.xlu1 %472 }
 0x46e   :  { %1933 = vrcp.f32 %v473_v38 }
 0x46f   :  { %v576_v42 = vpop.permute.xlu0 %575 }
 0x470   :  { %v581_v45 = vsel %vm363_vm2, %v576_v42, 0 }
 0x471   :  { %v574_v48 = vpop.permute.xlu1 %573 }
 0x475   :  { %v624_v50 = vpop.permute.xlu1 %623 }
 0x476   :  { %v1932_v39 = vpop.eup %1931 }
 0x477   :  { %v476_v40 = vmul.f32 %v1932_v39, %v1928_v32 }
 0x478   :  { %v1934_v41 = vpop.eup %1933 }
 0x479   :  { %v477_v43 = vmul.f32 %v1934_v41, %v1930_v34  ;;  %v478_v44 = vpack.c.bf16 %v476_v40, %v476_v40 }
 0x47b   :  { %1760 = vmatmul.mubr.msk.bf16.vlgmr.msra.gmra.mrb[4].mxu1 %vm363_vm2, %v478_v44  ;;  %v479_v46 = vpack.c.bf16 %v477_v43, %v477_v43 }
 0x47c   :  { %1770 = vmatpush3.bf16.xpose.msra.mxu1 %v581_v45  ;;  %1771 = vmatprep.mubr.msk.bf16.mxu1 %vm2069_vm1, %v2068_v15 }
 0x47d   :  { %1766 = vmatmul.mubr.msk.bf16.vlgmr.msra.gmra.mrb[16].mxu0 %vm363_vm2, %v479_v46  ;;  %1781 = vmatprep.subr.bf16.mxu1 %v2068_v15 }
 0x47e   :  { %1776 = vmatpush3.bf16.xpose.msra.mxu0 %v631_v47  ;;  %1777 = vmatprep.mubr.msk.bf16.mxu0 %vm2069_vm1, %v2068_v15 }
 0x47f   :  { %1787 = vmatprep.subr.bf16.mxu0 %v2068_v15 }
 0x483   :  { %1772 = vmatmul.mubr.msk.bf16.vlgmr.msra.gmra.mrb[8].mxu1 %vm363_vm2, %v574_v48 }
 0x484   :  { %1783 = vmatprep.mubr.msk.bf16.mxu1 %vm2069_vm1, %v2068_v15 }
 0x485   :  { %1778 = vmatmul.mubr.msk.bf16.vlgmr.msra.gmra.mrb[20].mxu0 %vm363_vm2, %v624_v50 }
 0x486   :  { %1789 = vmatprep.mubr.msk.bf16.mxu0 %vm2069_vm1, %v2068_v15 }
 0x54e   :  { %v2332_v51 = vpop.f32.mrb[4].mxu1 }
 0x54f   :  { %v1761_v52 = vpop.f32.mrb[5].mxu1 }
 0x550   :  { %v524_v54 = vpop.f32.mrb[6].mxu1  ;;  %v2334_v55 = vpop.f32.mrb[16].mxu0 }
 0x551   :  { %v1762_v56 = vpop.f32.mrb[7].mxu1  ;;  %v1767_v57 = vpop.f32.mrb[17].mxu0 }
 0x552   :  { %v570_v58 = vpop.f32.mrb[18].mxu0 }
 0x553   :  { %v1768_v59 = vpop.f32.mrb[19].mxu0 }
 0x556   :  { %v617_v60 = vpop.f32.mrb[8].mxu1 }
 0x557   :  { %v618_v61 = vadd.f32 %v617_v60, %v2300_v12  ;;  %v1773_v62 = vpop.f32.mrb[9].mxu1 }
 0x558   :  { %v620_v3 = vpop.f32.mrb[10].mxu1  ;;  %v667_v4 = vpop.f32.mrb[20].mxu0 }
 0x559   :  { %v668_v7 = vadd.f32 %v667_v4, %v2300_v12  ;;  %v1774_v8 = vpop.f32.mrb[11].mxu1  ;;  %v1779_v9 = vpop.f32.mrb[21].mxu0  ;;  %v673_v10 = vsel %vm363_vm2, %v618_v61, -inf }
 0x55a   :  { %674 = vmax.xlane.f32.xlu0 %v673_v10  ;;  %v670_v11 = vpop.f32.mrb[22].mxu0 }
 0x55b   :  { %v1780_v13 = vpop.f32.mrb[23].mxu0  ;;  %v676_v14 = vsel %vm363_vm2, %v668_v7, -inf }
 0x55c   :  { %677 = vmax.xlane.f32.xlu1 %v676_v14 }
 0x56d   :  { %745 = vrot.lane.b32.xlu1 %v2283_v6, %s2070_s4 }
 0x571   :  { %795 = vrot.lane.b32.xlu1 %v2267_v49, %s2071_s5 }
 0x575   :  { %845 = vrot.lane.b32.xlu1 %v2269_v53, %s2071_s5 }
 0x579   :  { %843 = vrot.lane.b32.xlu1 %v2281_v5, %s2071_s5 }
 0x5e7   :  { %v675_v16 = vpop.xlane.xlu0 %674 }
 0x5e8   :  { %v679_v17 = vsub.f32 %v618_v61, %v675_v16 }
 0x5e9   :  { %v678_v18 = vpop.xlane.xlu1 %677 }
 0x5ea   :  { %v681_v19 = vmul.f32 1.442695, %v679_v17  ;;  %v680_v20 = vsub.f32 %v668_v7, %v678_v18 }
 0x5ec   :  { %1935 = vpow2.f32 %v681_v19  ;;  %v683_v21 = vmul.f32 1.442695, %v680_v20 }
 0x5ed   :  { %v746_v22 = vpop.permute.xlu1 %745 }
 0x5ee   :  { %1937 = vpow2.f32 %v683_v21  ;;  %v751_v23 = vsel %vm483_vm3, %v746_v22, 0 }
 0x5ef   :  { %1788 = vmatpush3.bf16.msra.mxu0 %v751_v23 }
 0x5f0   :  { %1799 = vmatprep.subr.bf16.mxu0 %v2068_v15 }
 0x5f1   :  { %v796_v33 = vpop.permute.xlu1 %795 }
 0x5f2   :  { %v801_v39 = vsel %vm363_vm2, %v796_v33, 0 }
 0x5f5   :  { %v846_v38 = vpop.permute.xlu1 %845 }
 0x5f6   :  { %v1936_v24 = vpop.eup %1935  ;;  %v851_v41 = vsel %vm363_vm2, %v846_v38, 0 }
 0x5f7   :  { %v685_v25 = vsel %vm363_vm2, %v1936_v24, 0.0 }
 0x5f8   :  { %v1938_v26 = vpop.eup %1937  ;;  %686 = vadd.xlane.f32.xlu0 %v685_v25 }
 0x5f9   :  { %v688_v27 = vsel %vm363_vm2, %v1938_v26, 0.0  ;;  %v844_v43 = vpop.permute.xlu1 %843 }
 0x5fc   :  { %689 = vadd.xlane.f32.xlu0 %v688_v27 }
 0x612   :  { %697 = vrot.lane.b32.xlu0 %v2279_v2, %s2070_s4 }
 0x616   :  { %793 = vrot.lane.b32.xlu0 %v2277_v63, %s2071_s5 }
 0x685   :  { %v687_v28 = vpop.xlane.xlu0 %686 }
 0x686   :  { %1939 = vrcp.f32 %v687_v28 }
 0x689   :  { %v690_v29 = vpop.xlane.xlu0 %689 }
 0x68a   :  { %1941 = vrcp.f32 %v690_v29 }
 0x68d   :  { %v698_v30 = vpop.permute.xlu0 %697 }
 0x68e   :  { %v703_v31 = vsel %vm483_vm3, %v698_v30, 0 }
 0x68f   :  { %1782 = vmatpush3.bf16.msra.mxu1 %v703_v31 }
 0x690   :  { %v1940_v32 = vpop.eup %1939  ;;  %1793 = vmatprep.subr.bf16.mxu1 %v2068_v15 }
 0x691   :  { %v693_v34 = vmul.f32 %v1940_v32, %v1936_v24  ;;  %v794_v42 = vpop.permute.xlu0 %793 }
 0x693   :  { %v695_v35 = vpack.c.bf16 %v693_v34, %v693_v34 }
 0x694   :  { %v1942_v36 = vpop.eup %1941 }
 0x695   :  { %v694_v37 = vmul.f32 %v1942_v36, %v1938_v26  ;;  %1784 = vmatmul.mubr.msk.bf16.vlgmr.msra.gmra.mrb[12].mxu1 %vm363_vm2, %v695_v35 }
 0x696   :  { %1795 = vmatprep.mubr.msk.bf16.mxu1 %vm2069_vm1, %v2068_v15 }
 0x697   :  { %v696_v40 = vpack.c.bf16 %v694_v37, %v694_v37 }
 0x698   :  { %1794 = vmatpush3.bf16.xpose.msra.mxu1 %v801_v39 }
 0x699   :  { %1790 = vmatmul.mubr.msk.bf16.vlgmr.msra.gmra.mrb[24].mxu0 %vm363_vm2, %v696_v40  ;;  %1805 = vmatprep.subr.bf16.mxu1 %v2068_v15 }
 0x69a   :  { %1800 = vmatpush3.bf16.xpose.msra.mxu0 %v851_v41  ;;  %1801 = vmatprep.mubr.msk.bf16.mxu0 %vm2069_vm1, %v2068_v15 }
 0x69b   :  { %1811 = vmatprep.subr.bf16.mxu0 %v2068_v15 }
 0x69f   :  { %1796 = vmatmul.mubr.msk.bf16.vlgmr.msra.gmra.mrb[16].mxu1 %vm363_vm2, %v794_v42 }
 0x6a0   :  { %1807 = vmatprep.mubr.msk.bf16.mxu1 %vm2069_vm1, %v2068_v15 }
 0x6a1   :  { %1802 = vmatmul.mubr.msk.bf16.vlgmr.msra.gmra.mrb[28].mxu0 %vm363_vm2, %v844_v43 }
 0x6a2   :  { %1813 = vmatprep.mubr.msk.bf16.mxu0 %vm2069_vm1, %v2068_v15 }
 0x768   :  { %v2374_v44 = vpop.f32.mrb[12].mxu1 }
 0x769   :  { %v1785_v45 = vpop.f32.mrb[13].mxu1 }
 0x76a   :  { %v742_v46 = vpop.f32.mrb[14].mxu1 }
 0x76b   :  { %v1786_v47 = vpop.f32.mrb[15].mxu1 }
 0x76c   :  { %v2376_v48 = vpop.f32.mrb[24].mxu0 }
 0x76d   :  { %v1890_v50 = vpack.i.bf16 %v2376_v48, %v2374_v44  ;;  %v1791_v52 = vpop.f32.mrb[25].mxu0 }
 0x76e   :  { %v790_v54 = vpop.f32.mrb[26].mxu0 }
 0x76f   :  { %v1792_v56 = vpop.f32.mrb[27].mxu0 }
 0x772   :  { %v837_v57 = vpop.f32.mrb[16].mxu1 }
 0x773   :  { %v838_v58 = vadd.f32 %v837_v57, %v2300_v12  ;;  %v1797_v59 = vpop.f32.mrb[17].mxu1 }
 0x774   :  { %v840_v60 = vpop.f32.mrb[18].mxu1  ;;  %v887_v61 = vpop.f32.mrb[28].mxu0 }
 0x775   :  { %v888_v62 = vadd.f32 %v887_v61, %v2300_v12  ;;  %v1798_v3 = vpop.f32.mrb[19].mxu1  ;;  %v1803_v4 = vpop.f32.mrb[29].mxu0  ;;  %v893_v7 = vsel %vm363_vm2, %v838_v58, -inf }
 0x776   :  { %894 = vmax.xlane.f32.xlu0 %v893_v7  ;;  %v890_v8 = vpop.f32.mrb[30].mxu0 }
 0x777   :  { %v1804_v9 = vpop.f32.mrb[31].mxu0  ;;  %v896_v10 = vsel %vm363_vm2, %v888_v62, -inf }
 0x778   :  { %897 = vmax.xlane.f32.xlu1 %v896_v10 }
 0x789   :  { %965 = vrot.lane.b32.xlu1 %v2283_v6, %s2071_s5 }
 0x78d   :  { %1015 = vrot.lane.b32.xlu1 %v2267_v49, %s2072_s7 }
 0x791   :  { %1065 = vrot.lane.b32.xlu1 %v2269_v53, %s2072_s7 }
 0x795   :  { %1063 = vrot.lane.b32.xlu1 %v2281_v5, %s2072_s7 }
 0x803   :  { %v895_v11 = vpop.xlane.xlu0 %894 }
 0x804   :  { %v899_v13 = vsub.f32 %v838_v58, %v895_v11 }
 0x805   :  { %v898_v14 = vpop.xlane.xlu1 %897 }
 0x806   :  { %v901_v16 = vmul.f32 1.442695, %v899_v13  ;;  %v900_v17 = vsub.f32 %v888_v62, %v898_v14 }
 0x808   :  { %1943 = vpow2.f32 %v901_v16  ;;  %v903_v18 = vmul.f32 1.442695, %v900_v17 }
 0x809   :  { %v966_v19 = vpop.permute.xlu1 %965 }
 0x80a   :  { %1945 = vpow2.f32 %v903_v18  ;;  %v971_v20 = vsel %vm483_vm3, %v966_v19, 0 }
 0x80b   :  { %1812 = vmatpush3.bf16.msra.mxu0 %v971_v20 }
 0x80c   :  { %1823 = vmatprep.subr.bf16.mxu0 %v2068_v15 }
 0x80d   :  { %v1016_v27 = vpop.permute.xlu1 %1015 }
 0x811   :  { %v1066_v32 = vpop.permute.xlu1 %1065 }
 0x812   :  { %v1944_v49 = vpop.eup %1943  ;;  %v1071_v34 = vsel %vm363_vm2, %v1066_v32, 0 }
 0x813   :  { %v905_v53 = vsel %vm363_vm2, %v1944_v49, 0.0 }
 0x814   :  { %v1946_v21 = vpop.eup %1945  ;;  %906 = vadd.xlane.f32.xlu0 %v905_v53 }
 0x815   :  { %v908_v5 = vsel %vm363_vm2, %v1946_v21, 0.0  ;;  %v1064_v36 = vpop.permute.xlu1 %1063 }
 0x818   :  { %909 = vadd.xlane.f32.xlu0 %v908_v5 }
 0x82e   :  { %917 = vrot.lane.b32.xlu0 %v2279_v2, %s2071_s5 }
 0x832   :  { %1013 = vrot.lane.b32.xlu0 %v2277_v63, %s2072_s7  ;;  %v1021_v63 = vsel %vm363_vm2, %v1016_v27, 0 }
 0x8a1   :  { %v907_v22 = vpop.xlane.xlu0 %906 }
 0x8a2   :  { %1947 = vrcp.f32 %v907_v22  ;;  %v1911_v22 = vld [vmem:[%s2552_s9] sm:$0xff]  }
 0x8a5   :  { %v910_v23 = vpop.xlane.xlu0 %909 }
 0x8a6   :  { %1949 = vrcp.f32 %v910_v23 }
 0x8a9   :  { %v918_v24 = vpop.permute.xlu0 %917 }
 0x8aa   :  { %v923_v25 = vsel %vm483_vm3, %v918_v24, 0 }
 0x8ab   :  { %1806 = vmatpush3.bf16.msra.mxu1 %v923_v25  ;;  %v1912_v25 = vld [vmem:[%s2552_s9 + $0x8] sm:$0xff]  }
 0x8ac   :  { %v1948_v26 = vpop.eup %1947  ;;  %1817 = vmatprep.subr.bf16.mxu1 %v2068_v15 }
 0x8ad   :  { %v913_v28 = vmul.f32 %v1948_v26, %v1944_v49  ;;  %v1014_v35 = vpop.permute.xlu0 %1013 }
 0x8af   :  { %v915_v29 = vpack.c.bf16 %v913_v28, %v913_v28 }
 0x8b0   :  { %v1950_v30 = vpop.eup %1949 }
 0x8b1   :  { %v914_v31 = vmul.f32 %v1950_v30, %v1946_v21  ;;  %1808 = vmatmul.mubr.msk.bf16.vlgmr.msra.gmra.mrb[20].mxu1 %vm363_vm2, %v915_v29 }
 0x8b2   :  { %1819 = vmatprep.mubr.msk.bf16.mxu1 %vm2069_vm1, %v2068_v15 }
 0x8b3   :  { %v916_v33 = vpack.c.bf16 %v914_v31, %v914_v31 }
 0x8b4   :  { %1818 = vmatpush3.bf16.xpose.msra.mxu1 %v1021_v63 }
 0x8b5   :  { %1814 = vmatmul.mubr.msk.bf16.vlgmr.msra.gmra.mrb[32].mxu0 %vm363_vm2, %v916_v33  ;;  %1829 = vmatprep.subr.bf16.mxu1 %v2068_v15 }
 0x8b6   :  { %1824 = vmatpush3.bf16.xpose.msra.mxu0 %v1071_v34  ;;  %1825 = vmatprep.mubr.msk.bf16.mxu0 %vm2069_vm1, %v2068_v15 }
 0x8b7   :  { %1835 = vmatprep.subr.bf16.mxu0 %v2068_v15 }
 0x8bb   :  { %1820 = vmatmul.mubr.msk.bf16.vlgmr.msra.gmra.mrb[24].mxu1 %vm363_vm2, %v1014_v35 }
 0x8bc   :  { %1831 = vmatprep.mubr.msk.bf16.mxu1 %vm2069_vm1, %v2068_v15 }
 0x8bd   :  { %1826 = vmatmul.mubr.msk.bf16.vlgmr.msra.gmra.mrb[36].mxu0 %vm363_vm2, %v1064_v36 }
 0x8be   :  { %1837 = vmatprep.mubr.msk.bf16.mxu0 %vm2069_vm1, %v2068_v15 }
 0x984   :  { %v959_v37 = vpop.f32.mrb[20].mxu1 }
 0x985   :  { %v1809_v38 = vpop.f32.mrb[21].mxu1 }
 0x986   :  { %v962_v39 = vpop.f32.mrb[22].mxu1 }
 0x987   :  { %v1810_v40 = vpop.f32.mrb[23].mxu1 }
 0x988   :  { %v1007_v41 = vpop.f32.mrb[32].mxu0 }
 0x989   :  { %v1895_v42 = vpack.i.bf16 %v1007_v41, %v959_v37  ;;  %v1815_v43 = vpop.f32.mrb[33].mxu0 }
 0x98a   :  { %v1010_v45 = vpop.f32.mrb[34].mxu0 }
 0x98b   :  { %v1816_v46 = vpop.f32.mrb[35].mxu0 }
 0x98e   :  { %v1057_v47 = vpop.f32.mrb[24].mxu1 }
 0x98f   :  { %v1058_v52 = vadd.f32 %v1057_v47, %v2300_v12  ;;  %v1821_v54 = vpop.f32.mrb[25].mxu1 }
 0x990   :  { %v1060_v56 = vpop.f32.mrb[26].mxu1  ;;  %v1107_v57 = vpop.f32.mrb[36].mxu0 }
 0x991   :  { %v1108_v58 = vadd.f32 %v1107_v57, %v2300_v12  ;;  %v1822_v59 = vpop.f32.mrb[27].mxu1  ;;  %v1827_v60 = vpop.f32.mrb[37].mxu0  ;;  %v1113_v61 = vsel %vm363_vm2, %v1058_v52, -inf }
 0x992   :  { %1114 = vmax.xlane.f32.xlu0 %v1113_v61  ;;  %v1110_v62 = vpop.f32.mrb[38].mxu0 }
 0x993   :  { %v1828_v3 = vpop.f32.mrb[39].mxu0  ;;  %v1116_v4 = vsel %vm363_vm2, %v1108_v58, -inf }
 0x994   :  { %1117 = vmax.xlane.f32.xlu1 %v1116_v4 }
 0x9a5   :  { %1185 = vrot.lane.b32.xlu1 %v2283_v6, %s2072_s7 }
 0x9a9   :  { %1891 = vrot.lane.b32.xlu1 %v1890_v50, %s2073_s25 }
 0x9ad   :  { %1896 = vrot.lane.b32.xlu1 %v1895_v42, %s2074_s20 }
 0xa1f   :  { %v1115_v12 = vpop.xlane.xlu0 %1114 }
 0xa20   :  { %v1119_v7 = vsub.f32 %v1058_v52, %v1115_v12 }
 0xa21   :  { %v1118_v8 = vpop.xlane.xlu1 %1117 }
 0xa22   :  { %v1121_v9 = vmul.f32 1.442695, %v1119_v7  ;;  %v1120_v10 = vsub.f32 %v1108_v58, %v1118_v8 }
 0xa24   :  { %1951 = vpow2.f32 %v1121_v9  ;;  %v1123_v11 = vmul.f32 1.442695, %v1120_v10 }
 0xa25   :  { %v1186_v13 = vpop.permute.xlu1 %1185 }
 0xa26   :  { %1953 = vpow2.f32 %v1123_v11  ;;  %v1191_v14 = vsel %vm483_vm3, %v1186_v13, 0 }
 0xa27   :  { %1836 = vmatpush3.bf16.msra.mxu0 %v1191_v14 }
 0xa28   :  { %1849 = vmatprep.subr.bf16.mxu0 %v2068_v15 }
 0xa29   :  { %v1892_v63 = vpop.permute.xlu1 %1891 }
 0xa2a   :  { %v1894_v34 = vunpack.i.h.bf16 %v1892_v63  ;;  %v1893_v35 = vunpack.i.l.bf16 %v1892_v63  ;;  %v1921_v63 = vld [vmem:[%s2558_s15 + $0x30] sm:$0xff]  }
 0xa2c   :  { %v1258_v39 = vsel %vm363_vm2, %v2334_v55, %v1894_v34  ;;  %v1257_v40 = vsel %vm363_vm2, %v2332_v51, %v1893_v35  ;;  %v1638_v55 = vld [vmem:[%s2553_s10] ss:$0 sm:$0xff]  ;;  %s2076_s10 = smov [#allocation9]  }
 0xa2d   :  { %v1897_v33 = vpop.permute.xlu1 %1896  ;;  %v1645_v34 = vld [vmem:[%s2557_s14] ss:$0 sm:$0xff]  ;;  %s1589_s26 = sshll.u32 %s2076_s10, 4  ;;  %s1590_s26 = int_to_ptr.vmem [resolvable:$true] %s1589_s26 }
 0xa2e   :  { %v1952_v6 = vpop.eup %1951  ;;  %v1899_v36 = vunpack.i.h.bf16 %v1897_v33  ;;  %v1898_v37 = vunpack.i.l.bf16 %v1897_v33  ;;  %v1922_v33 = vld [vmem:[%s2558_s15 + $0x38] sm:$0xff]   ;;  %s2037_s28 = scalar_lea.vmem %s1590_s26, 256  ;;  %p2042_p11 = scmp.lt.s32.totalorder %s1590_s26, %s1590_s26 }
 0xa2f   :  { %v1125_v44 = vsel %vm363_vm2, %v1952_v6, 0.0  ;;  %p2038_p10 = scmp.ne.s32.totalorder %s1590_s26, %s2037_s28  ;;  %p2043_p12 = scmp.lt.s32.totalorder %s2037_s28, %s2037_s28 }
 0xa30   :  { %v1954_v48 = vpop.eup %1953  ;;  %1126 = vadd.xlane.f32.xlu0 %v1125_v44  ;;  %v1260_v43 = vsel %vm1259_vm5, %v1257_v40, %v1898_v37  ;;  %v1261_v45 = vsel %vm1259_vm5, %v1258_v39, %v1899_v36  ;;  %v1914_v44 = vld [vmem:[%s2556_s13 + $0x8] sm:$0xff]  }
 0xa31   :  { %v1128_v50 = vsel %vm363_vm2, %v1954_v48, 0.0  ;;  %p2044_p13 = por %p2043_p12, %p2042_p11 }
 0xa33   :  { %p2045_p0 = pnand %p2044_p13, %p2038_p10 }
 0xa34   :  { %1129 = vadd.xlane.f32.xlu0 %v1128_v50 }
 0xa4a   :  { %1137 = vrot.lane.b32.xlu0 %v2279_v2, %s2072_s7 }
 0xabd   :  { %v1127_v16 = vpop.xlane.xlu0 %1126 }
 0xabe   :  { %1955 = vrcp.f32 %v1127_v16 }
 0xac1   :  { %v1130_v17 = vpop.xlane.xlu0 %1129 }
 0xac2   :  { %1957 = vrcp.f32 %v1130_v17 }
 0xac5   :  { %v1138_v18 = vpop.permute.xlu0 %1137 }
 0xac6   :  { %v1143_v19 = vsel %vm483_vm3, %v1138_v18, 0 }
 0xac7   :  { %1830 = vmatpush3.bf16.msra.mxu1 %v1143_v19 }
 0xac8   :  { %v1956_v20 = vpop.eup %1955  ;;  %1841 = vmatprep.subr.bf16.mxu1 %v2068_v15 }
 0xac9   :  { %v1133_v49 = vmul.f32 %v1956_v20, %v1952_v6  ;;  %v1913_v6 = vld [vmem:[%s2556_s13] sm:$0xff]  }
 0xacb   :  { %v1135_v53 = vpack.c.bf16 %v1133_v49, %v1133_v49 }
 0xacc   :  { %v1958_v21 = vpop.eup %1957 }
 0xacd   :  { %v1134_v5 = vmul.f32 %v1958_v21, %v1954_v48  ;;  %1832 = vmatmul.mubr.msk.bf16.vlgmr.msra.gmra.mrb[28].mxu1 %vm363_vm2, %v1135_v53  ;;  %v1642_v53 = vld [vmem:[%s2554_s11] ss:$0 sm:$0xff] }
 0xace   :  { %1845 = vmatprep.mubr.msk.bf16.mxu1 %vm2069_vm1, %v2068_v15  ;;  %1842 = vmatpush3.bf16.msra.mxu1 %v1911_v22  ;;  %v1643_v22 = vld [vmem:[%s2555_s12] ss:$0 sm:$0xff] }
 0xacf   :  { %v1136_v2 = vpack.c.bf16 %v1134_v5, %v1134_v5  ;;  %1843 = vmatprep.subr.bf16.mxu1 %v2068_v15 }
 0xad1   :  { %1838 = vmatmul.mubr.msk.bf16.vlgmr.msra.gmra.mrb[40].mxu0 %vm363_vm2, %v1136_v2 }
 0xad2   :  { %1853 = vmatprep.mubr.msk.bf16.mxu0 %vm2069_vm1, %v2068_v15  ;;  %1844 = vmatpush3.bf16.msra.mxu1 %v1912_v25 }
 0xad3   :  { %1857 = vmatprep.subr.bf16.mxu1 %v2068_v15  ;;  %1850 = vmatpush3.bf16.msra.mxu0 %v1913_v6 }
 0xad4   :  { %1851 = vmatprep.subr.bf16.mxu0 %v2068_v15 }
 0xad7   :  { %1852 = vmatpush3.bf16.msra.mxu0 %v1914_v44 }
 0xba0   :  { %v1179_v23 = vpop.f32.mrb[28].mxu1 }
 0xba1   :  { %v1833_v24 = vpop.f32.mrb[29].mxu1 }
 0xba2   :  { %v1182_v26 = vpop.f32.mrb[30].mxu1 }
 0xba3   :  { %v1834_v27 = vpop.f32.mrb[31].mxu1 }
 0xba4   :  { %v1227_v28 = vpop.f32.mrb[40].mxu0  ;;  %v1915_v27 = vld [vmem:[%s2558_s15] sm:$0xff]  }
 0xba5   :  { %v1900_v29 = vpack.i.bf16 %v1227_v28, %v1179_v23  ;;  %v1839_v30 = vpop.f32.mrb[41].mxu0  ;;  %v1916_v28 = vld [vmem:[%s2558_s15 + $0x8] sm:$0xff]  }
 0xba6   :  { %v1230_v31 = vpop.f32.mrb[42].mxu0  ;;  %v1918_v30 = vld [vmem:[%s2558_s15 + $0x18] sm:$0xff]  }
 0xba7   :  { %1901 = vrot.lane.b32.xlu0 %v1900_v29, %s2075_s3  ;;  %v1840_v32 = vpop.f32.mrb[43].mxu0  ;;  %v1917_v29 = vld [vmem:[%s2558_s15 + $0x10] sm:$0xff]   ;;  %v1919_v31 = vld [vmem:[%s2558_s15 + $0x20] sm:$0xff]  }
 0xba8   :  { %v1920_v32 = vld [vmem:[%s2558_s15 + $0x28] sm:$0xff]  }
 0xc19   :  { %v1902_v38 = vpop.permute.xlu0 %1901 }
 0xc1a   :  { %v1904_v41 = vunpack.i.h.bf16 %v1902_v38  ;;  %v1903_v42 = vunpack.i.l.bf16 %v1902_v38 }
 0xc1c   :  { %v1264_v46 = vsel %vm1262_vm6, %v1261_v45, %v1904_v41  ;;  %v1263_v47 = vsel %vm1262_vm6, %v1260_v43, %v1903_v42 }
 0xc1d   :  { %v1265_v52 = vpack.c.bf16 %v1264_v46, %v1263_v47 }
 0xc1f   :  { %1266 = vst.msk [vmem:[#allocation2] sm:$0xff] %vm97_vm0, %v1265_v52 }
 0xc26   :  { %v1267_v54 = vld [vmem:[#allocation2] sm:$0xff] }
 0xc27   :  { %1846 = vmatmul.mubr.msk.bf16.vlgmr.msra.gmra.mrb[32].mxu1 %vm97_vm0, %v1267_v54 }
 0xc28   :  { %1873 = vmatprep.mubr.msk.bf16.mxu1 %vm2069_vm1, %v2068_v15  ;;  %1858 = vmatpush3.bf16.msra.mxu1 %v1915_v27 }
 0xc29   :  { %1859 = vmatprep.subr.bf16.mxu1 %v2068_v15 }
 0xc2c   :  { %1860 = vmatpush3.bf16.msra.mxu1 %v1916_v28 }
 0xc2d   :  { %1861 = vmatprep.subr.bf16.mxu1 %v2068_v15 }
 0xc30   :  { %1862 = vmatpush3.bf16.msra.mxu1 %v1917_v29 }
 0xc31   :  { %1863 = vmatprep.subr.bf16.mxu1 %v2068_v15 }
 0xc34   :  { %1864 = vmatpush3.bf16.msra.mxu1 %v1918_v30 }
 0xc35   :  { %1865 = vmatprep.subr.bf16.mxu1 %v2068_v15 }
 0xc38   :  { %1866 = vmatpush3.bf16.msra.mxu1 %v1919_v31 }
 0xc39   :  { %1867 = vmatprep.subr.bf16.mxu1 %v2068_v15 }
 0xc3c   :  { %1868 = vmatpush3.bf16.msra.mxu1 %v1920_v32 }
 0xc3d   :  { %1869 = vmatprep.subr.bf16.mxu1 %v2068_v15 }
 0xc40   :  { %1870 = vmatpush3.bf16.msra.mxu1 %v1921_v63 }
 0xc41   :  { %1871 = vmatprep.subr.bf16.mxu1 %v2068_v15 }
 0xc44   :  { %1872 = vmatpush3.bf16.msra.mxu1 %v1922_v33 }
 0xcfa   :  { %v1328_v51 = vpop.f32.mrb[32].mxu1 }
 0xcfb   :  { %v1329_v56 = vadd.f32 %v1638_v55, %v1328_v51  ;;  %v1847_v57 = vpop.f32.mrb[33].mxu1 }
 0xcfc   :  { %v1331_v58 = vpop.f32.mrb[34].mxu1 }
 0xcfd   :  { %v2462_v59 = vadd.f32 %v1329_v56, %v2207_v0  ;;  %v1332_v60 = vadd.f32 %v1638_v55, %v1331_v58  ;;  %v1848_v61 = vpop.f32.mrb[35].mxu1  ;;  %v1644_v58 = vld [vmem:[%s2559_s16] ss:$0 sm:$0xff] }
 0xcff   :  { %v2465_v62 = vadd.f32 %v1332_v60, %v2212_v1  ;;  %v1339_v3 = vsel %vm97_vm0, %v2462_v59, 0.0  ;;  %v1389_v60 = vadd.f32 %v1644_v58, %v2462_v59 }
 0xd00   :  { %1340 = vadd.xlane.f32.xlu1 %v1339_v3 }
 0xd01   :  { %v1342_v4 = vsel %vm97_vm0, %v2465_v62, 0.0 }
 0xd02   :  { %1343 = vadd.xlane.f32.xlu0 %v1342_v4 }
 0xd8d   :  { %v1341_v12 = vpop.xlane.xlu1 %1340 }
 0xd8e   :  { %v1345_v7 = vmul.f32 0.03125, %v1341_v12  ;;  %v1390_v12 = vadd.f32 %v1644_v58, %v2465_v62 }
 0xd8f   :  { %v1344_v8 = vpop.xlane.xlu0 %1343 }
 0xd90   :  { %v1347_v9 = vsub.f32 %v2462_v59, %v1345_v7  ;;  %v1346_v0 = vmul.f32 0.03125, %v1344_v8 }
 0xd92   :  { %v1348_v10 = vsub.f32 %v2465_v62, %v1346_v0  ;;  %v1349_v11 = vmul.f32 %v1347_v9, %v1347_v9 }
 0xd94   :  { %v1351_v1 = vsel %vm97_vm0, %v1349_v11, 0.0  ;;  %v1350_v13 = vmul.f32 %v1348_v10, %v1348_v10 }
 0xd95   :  { %1352 = vadd.xlane.f32.xlu0 %v1351_v1 }
 0xd96   :  { %v1354_v14 = vsel %vm97_vm0, %v1350_v13, 0.0 }
 0xd99   :  { %1355 = vadd.xlane.f32.xlu0 %v1354_v14 }
 0xe22   :  { %v1353_v48 = vpop.xlane.xlu0 %1352 }
 0xe23   :  { %v1357_v50 = vmul.f32 0.03125, %v1353_v48 }
 0xe25   :  { %v1359_v16 = vadd.f32 1e-05, %v1357_v50 }
 0xe26   :  { %v1356_v17 = vpop.xlane.xlu0 %1355 }
 0xe27   :  { %1959 = vrsqrt.f32 %v1359_v16  ;;  %v1358_v18 = vmul.f32 0.03125, %v1356_v17 }
 0xe29   :  { %v1360_v19 = vadd.f32 1e-05, %v1358_v18 }
 0xe2b   :  { %1961 = vrsqrt.f32 %v1360_v19 }
 0xe31   :  { %v1960_v20 = vpop.eup %1959 }
 0xe32   :  { %v1363_v49 = vmul.f32 %v1960_v20, %v1347_v9 }
 0xe34   :  { %v1371_v5 = vmul.f32 %v1642_v53, %v1363_v49 }
 0xe35   :  { %v1962_v21 = vpop.eup %1961 }
 0xe36   :  { %v1364_v2 = vmul.f32 %v1962_v21, %v1348_v10  ;;  %v1379_v24 = vadd.f32 %v1643_v22, %v1371_v5 }
 0xe38   :  { %v1372_v23 = vmul.f32 %v1642_v53, %v1364_v2 }
 0xe3a   :  { %v1380_v25 = vadd.f32 %v1643_v22, %v1372_v23 }
 0xe3c   :  { %v1381_v26 = vpack.c.bf16 %v1380_v25, %v1379_v24 }
 0xe3e   :  { %1854 = vmatmul.mubr.msk.bf16.vlgmr.msra.gmra.mrb[44].mxu0 %vm97_vm0, %v1381_v26 }
 0xf11   :  { %v1451_v35 = vpop.f32.mrb[44].mxu0 }
 0xf12   :  { %v1452_v36 = vadd.f32 %v1645_v34, %v1451_v35  ;;  %v1855_v37 = vpop.f32.mrb[45].mxu0 }
 0xf13   :  { %v1454_v38 = vpop.f32.mrb[46].mxu0 }
 0xf14   :  { %v1649_v39 = vmul.f32 -1.702, %v1452_v36  ;;  %v1455_v40 = vadd.f32 %v1645_v34, %v1454_v38  ;;  %v1856_v41 = vpop.f32.mrb[47].mxu0 }
 0xf16   :  { %v1462_v42 = vmul.f32 1.442695, %v1649_v39  ;;  %v1650_v43 = vmul.f32 -1.702, %v1455_v40 }
 0xf18   :  { %1963 = vpow2.f32 %v1462_v42  ;;  %v1464_v15 = vmul.f32 1.442695, %v1650_v43 }
 0xf1a   :  { %1965 = vpow2.f32 %v1464_v15 }
 0xf22   :  { %v1964_v45 = vpop.eup %1963 }
 0xf23   :  { %v1466_v46 = vadd.f32 1.0, %v1964_v45 }
 0xf24   :  { %v1966_v47 = vpop.eup %1965 }
 0xf25   :  { %1967 = vrcp.f32 %v1466_v46  ;;  %v1467_v52 = vadd.f32 1.0, %v1966_v47 }
 0xf27   :  { %1969 = vrcp.f32 %v1467_v52 }
 0xf2f   :  { %v1968_v54 = vpop.eup %1967 }
 0xf30   :  { %v1472_v51 = vmul.f32 %v1968_v54, %v1452_v36 }
 0xf31   :  { %v1970_v55 = vpop.eup %1969 }
 0xf32   :  { %v1473_v56 = vmul.f32 %v1970_v55, %v1455_v40 }
 0xf34   :  { %v1474_v57 = vpack.c.bf16 %v1473_v56, %v1472_v51 }
 0xf36   :  { %1874 = vmatmul.mubr.bf16.vlgmr.msra.gmra.mrb[36].mxu1 %v1474_v57 }
0x1009   :  { %v1573_v61 = vpop.f32.mrb[36].mxu1 }
0x100a   :  { %v1580_v3 = vadd.f32 %v1573_v61, %v1389_v60  ;;  %v1875_v4 = vpop.f32.mrb[37].mxu1 }
0x100b   :  { %v1576_v7 = vpop.f32.mrb[38].mxu1 }
0x100c   :  { %1582 = vst.msk [vmem:[#allocation9] sm:$0xff] %vm97_vm0, %v1580_v3  ;;  %v1581_v8 = vadd.f32 %v1576_v7, %v1390_v12  ;;  %v1876_v9 = vpop.f32.mrb[39].mxu1 }
0x100e   :  { %1583 = vst.msk [vmem:[#allocation9 + $0x8] sm:$0xff] %vm97_vm0, %v1581_v8 }
0x100f   :  { %2048 = shalt.err (!%p2045_p0)
}
0x1010   :  { %s2049_s0 = scalar_lea.hbm %s2560_s17, 256 }
0x1011   :  { %p2050_p1 = scmp.ne.s32.totalorder %s2560_s17, %s2049_s0  ;;  %p2053_p2 = scmp.lt.u32.totalorder %s2049_s0, %s2560_s17 }
0x1013   :  { %p2055_p3 = pnand %p2053_p2, %p2050_p1 }
0x1015   :  { %2058 = shalt.err (!%p2055_p3)
}
0x1016   :  { %s2077_s2 = smov 128  }
0x1017   :  { %1595 = dma.vmem_to_hbm [thread:$0]  %s1590_s26, 256, %s2560_s17, [#allocation5], %s2077_s2, %s2077_s2, %s2073_s25  }
0x1018   :  { %2063 = dma.done.wait [#allocation5], 256  }
0x1019   :  { %2064 = vsyncadd [#allocation5], 4294967040 }
0x101a   :  { %1599 = vsyncpa [#allocation4], 1 }
0x101b   :  { %1600 = vsyncpa [#allocation7], 1 }
0x101c   :  { %1601 = vsyncpa [#allocation5], 1 }

// kernel: tpu_custom_call.1
= control target key start
LH: loop header
LB: loop body
LE: loop exit
PB: predicated region body
PF: predicated region fallthrough
CT: control target
= control target key end

     0   :  { %s2543_s0 = inlined_call_operand.vmem [shape: f32[2,8,32], index: 0, kind: input, shape index: {}]   ;;  %s2544_s1 = inlined_call_operand.vmem [shape: f32[1,32], index: 1, kind: input, shape index: {}]   ;;  %s2545_s2 = inlined_call_operand.vmem [shape: f32[1,32], index: 2, kind: input, shape index: {}]   ;;  %s2546_s3 = inlined_call_operand.vmem [shape: bf16[32,32], index: 3, kind: input, shape index: {}]   ;;  %s2547_s4 = inlined_call_operand.vmem [shape: bf16[32,32], index: 4, kind: input, shape index: {}]   ;;  %s2548_s5 = inlined_call_operand.vmem [shape: bf16[32,32], index: 5, kind: input, shape index: {}]   ;;  %s2549_s6 = inlined_call_operand.hbm [shape: f32[1,32], index: 6, kind: input, shape index: {}]   ;;  %s2550_s7 = inlined_call_operand.hbm [shape: f32[1,32], index: 7, kind: input, shape index: {}]   ;;  %s2551_s8 = inlined_call_operand.hbm [shape: f32[1,32], index: 8, kind: input, shape index: {}]   ;;  %s2552_s9 = inlined_call_operand.vmem [shape: bf16[32,32], index: 9, kind: input, shape index: {}]   ;;  %s2553_s10 = inlined_call_operand.vmem [shape: f32[1,32], index: 10, kind: input, shape index: {}]   ;;  %s2554_s11 = inlined_call_operand.vmem [shape: f32[1,32], index: 11, kind: input, shape index: {}]   ;;  %s2555_s12 = inlined_call_operand.vmem [shape: f32[1,32], index: 12, kind: input, shape index: {}]   ;;  %s2556_s13 = inlined_call_operand.vmem [shape: bf16[32,128], index: 13, kind: input, shape index: {}]   ;;  %s2557_s14 = inlined_call_operand.vmem [shape: f32[1,128], index: 14, kind: input, shape index: {}]   ;;  %s2558_s15 = inlined_call_operand.vmem [shape: bf16[128,32], index: 15, kind: input, shape index: {}]   ;;  %s2559_s16 = inlined_call_operand.vmem [shape: f32[1,32], index: 16, kind: input, shape index: {}]   ;;  %s2560_s17 = inlined_call_operand.hbm [shape: f32[2,8,32], index: 17, kind: output, shape index: {}]  }
   0x1   :  { %2562 = sst [smem:[#allocation13_spill]] %s2543_s0 }
   0x2   :  { %2563 = sst [smem:[#allocation14_spill]] %s2544_s1 }
   0x3   :  { %22 = vsyncpa [#allocation4], 0 }
   0x4   :  { %23 = vsyncpa [#allocation7], 0 }
   0x5   :  { %24 = vsyncpa [#allocation5], 0  ;;  %s2065_s24 = smov [#allocation6]   ;;  %s2066_s26 = smov [#allocation3]  }
   0x6   :  { %s53_s25 = sshll.u32 %s2065_s24, 4  ;;  %s43_s27 = sshll.u32 %s2066_s26, 4  ;;  %s54_s25 = int_to_ptr.vmem [resolvable:$true] %s53_s25  ;;  %s44_s27 = int_to_ptr.vmem [resolvable:$true] %s43_s27 }
   0x7   :  { %s1971_s0 = scalar_lea.hbm %s2550_s7, 16 }
   0x8   :  { %p1972_p0 = scmp.ne.s32.totalorder %s2550_s7, %s1971_s0  ;;  %p1975_p1 = scmp.lt.u32.totalorder %s1971_s0, %s2550_s7 }
   0xa   :  { %p1977_p2 = pnand %p1975_p1, %p1972_p0 }
   0xc   :  { %1980 = shalt.err (!%p1977_p2)
}
   0xd   :  { %s1981_s20 = scalar_lea.vmem %s54_s25, 16  ;;  %s1985_s21 = scalar_lea.vmem %s54_s25, 32 }
   0xe   :  { %p1982_p3 = scmp.ne.s32.totalorder %s54_s25, %s1981_s20  ;;  %p1986_p4 = scmp.lt.s32.totalorder %s54_s25, %s54_s25 }
   0xf   :  { %p1987_p5 = scmp.lt.s32.totalorder %s1985_s21, %s1981_s20 }
  0x11   :  { %p1988_p6 = por %p1987_p5, %p1986_p4 }
  0x13   :  { %p1989_p7 = pnand %p1988_p6, %p1982_p3 }
  0x15   :  { %1992 = shalt.err (!%p1989_p7)
}
  0x16   :  { %56 = dma.hbm_to_vmem [thread:$0]  %s2550_s7, 16, %s54_s25, [#allocation7]  }
  0x17   :  { %s1993_s28 = scalar_lea.hbm %s2549_s6, 16 }
  0x18   :  { %p1994_p8 = scmp.ne.s32.totalorder %s2549_s6, %s1993_s28  ;;  %p1997_p9 = scmp.lt.u32.totalorder %s1993_s28, %s2549_s6 }
  0x1a   :  { %p1999_p10 = pnand %p1997_p9, %p1994_p8 }
  0x1c   :  { %2002 = shalt.err (!%p1999_p10)
}
  0x1d   :  { %s2003_s19 = scalar_lea.vmem %s44_s27, 16  ;;  %s2007_s1 = scalar_lea.vmem %s44_s27, 32 }
  0x1e   :  { %p2004_p11 = scmp.ne.s32.totalorder %s44_s27, %s2003_s19  ;;  %p2008_p12 = scmp.lt.s32.totalorder %s44_s27, %s44_s27 }
  0x1f   :  { %p2009_p13 = scmp.lt.s32.totalorder %s2007_s1, %s2003_s19 }
  0x21   :  { %p2010_p0 = por %p2009_p13, %p2008_p12 }
  0x23   :  { %p2011_p1 = pnand %p2010_p0, %p2004_p11 }
  0x25   :  { %2014 = shalt.err (!%p2011_p1)
}
  0x26   :  { %46 = dma.hbm_to_vmem [thread:$0]  %s2549_s6, 16, %s44_s27, [#allocation4]  }
  0x27   :  { %s2067_s20 = smov [#allocation8]   ;;  %s2015_s24 = scalar_lea.hbm %s2551_s8, 16 }
  0x28   :  { %s63_s21 = sshll.u32 %s2067_s20, 4  ;;  %p2016_p2 = scmp.ne.s32.totalorder %s2551_s8, %s2015_s24  ;;  %s64_s21 = int_to_ptr.vmem [resolvable:$true] %s63_s21 }
  0x29   :  { %p2019_p3 = scmp.lt.u32.totalorder %s2015_s24, %s2551_s8 }
  0x2b   :  { %p2021_p4 = pnand %p2019_p3, %p2016_p2 }
  0x2d   :  { %2024 = shalt.err (!%p2021_p4)
}
  0x2e   :  { %s2025_s30 = scalar_lea.vmem %s64_s21, 16  ;;  %s2029_s6 = scalar_lea.vmem %s64_s21, 32 }
  0x2f   :  { %p2026_p5 = scmp.ne.s32.totalorder %s64_s21, %s2025_s30  ;;  %p2030_p6 = scmp.lt.s32.totalorder %s64_s21, %s64_s21 }
  0x30   :  { %p2031_p7 = scmp.lt.s32.totalorder %s2029_s6, %s2025_s30 }
  0x32   :  { %p2032_p8 = por %p2031_p7, %p2030_p6 }
  0x34   :  { %p2033_p9 = pnand %p2032_p8, %p2026_p5 }
  0x36   :  { %2036 = shalt.err (!%p2033_p9)
}
  0x37   :  { %66 = dma.hbm_to_vmem [thread:$0]  %s2551_s8, 16, %s64_s21, [#allocation7]  }
  0x38   :  { %2059 = dma.done.wait [#allocation4], 16  }
  0x39   :  { %2060 = vsyncadd [#allocation4], 4294967280 }
  0x3a   :  { %2061 = dma.done.wait [#allocation7], 32  }
  0x3b   :  { %2062 = vsyncadd [#allocation7], 4294967264  ;;  %vm97_vm0 = vcmask 261120   ;;  %s2564_s7 = sld [smem:[#allocation13_spill]]  ;;  %v1905_v14 = vld [vmem:[%s2546_s3] sm:$0xff]   ;;  %v2068_v15 = vmov 0.0  }
  0x3c   :  { %1721 = vmatprep.subr.bf16.mxu0 %v2068_v15  ;;  %1745 = vmatprep.subr.bf16.mxu1 %v2068_v15  ;;  %v1906_v16 = vld [vmem:[%s2546_s3 + $0x8] sm:$0xff]   ;;  %vm2069_vm1 = vmmov 0   ;;  %s2565_s26 = sld [smem:[#allocation14_spill]]  ;;  %v1603_v29 = vld [vmem:[%s2545_s2] ss:$0 sm:$0xff]  ;;  %vm363_vm2 = vcmask 64512  }
  0x3d   :  { %1722 = vmatpush3.bf16.msra.mxu0 %v1905_v14  ;;  %1725 = vmatprep.mubr.msk.bf16.mxu0 %vm2069_vm1, %v2068_v15  ;;  %v1907_v33 = vld [vmem:[%s2547_s4] sm:$0xff]   ;;  %v1908_v35 = vld [vmem:[%s2547_s4 + $0x8] sm:$0xff]   ;;  %vm483_vm3 = vcmask 1043456   ;;  %s2070_s4 = smov 120   ;;  %s2073_s25 = smov 8   ;;  %vm1259_vm5 = vcmask 130048  }
  0x3e   :  { %1723 = vmatprep.subr.bf16.mxu0 %v2068_v15  ;;  %1747 = vmatprep.mubr.msk.bf16.mxu1 %vm2069_vm1, %v2068_v15  ;;  %v1909_v36 = vld [vmem:[%s2548_s5] sm:$0xff]   ;;  %v1910_v37 = vld [vmem:[%s2548_s5 + $0x8] sm:$0xff]   ;;  %s2071_s5 = smov 112   ;;  %s2074_s20 = smov 16   ;;  %vm1262_vm6 = vcmask 195584  }
  0x3f   :  { %v1610_v42 = vld [vmem:[#allocation6] ss:$0 sm:$0xff]  ;;  %v1604_v43 = vld [vmem:[#allocation3] ss:$0 sm:$0xff]  ;;  %v1616_v55 = vld [vmem:[#allocation8] ss:$0 sm:$0xff] }
  0x40   :  { %s2075_s3 = smov 24  }
  0x41   :  { %v2207_v0 = vld [vmem:[%s2564_s7] sm:$0xff]  ;;  %v2212_v1 = vld [vmem:[%s2564_s7 + $0x8] sm:$0xff]  ;;  %1724 = vmatpush3.bf16.msra.mxu0 %v1906_v16  ;;  %s2072_s7 = smov 104  }
  0x42   :  { %v98_v2 = vsel %vm97_vm0, %v2207_v0, 0.0  ;;  %v101_v3 = vsel %vm97_vm0, %v2212_v1, 0.0  ;;  %1729 = vmatprep.subr.bf16.mxu0 %v2068_v15  ;;  %v1602_v25 = vld [vmem:[%s2565_s26] ss:$0 sm:$0xff] }
  0x43   :  { %99 = vadd.xlane.f32.xlu0 %v98_v2 }
  0x47   :  { %102 = vadd.xlane.f32.xlu0 %v101_v3 }
  0xd0   :  { %v100_v4 = vpop.xlane.xlu0 %99 }
  0xd1   :  { %v105_v5 = vmul.f32 0.03125, %v100_v4 }
  0xd3   :  { %v107_v6 = vsub.f32 %v2207_v0, %v105_v5 }
  0xd4   :  { %v103_v7 = vpop.xlane.xlu0 %102 }
  0xd5   :  { %v106_v8 = vmul.f32 0.03125, %v103_v7  ;;  %v109_v9 = vmul.f32 %v107_v6, %v107_v6 }
  0xd7   :  { %v108_v10 = vsub.f32 %v2212_v1, %v106_v8  ;;  %v111_v11 = vsel %vm97_vm0, %v109_v9, 0.0  ;;  %v357_v9 = vlaneseq }
  0xd8   :  { %112 = vadd.xlane.f32.xlu1 %v111_v11 }
  0xd9   :  { %v110_v12 = vmul.f32 %v108_v10, %v108_v10  ;;  %v360_v11 = vand.u32 127, %v357_v9 }
  0xdb   :  { %v114_v13 = vsel %vm97_vm0, %v110_v12, 0.0 }
  0xdc   :  { %115 = vadd.xlane.f32.xlu1 %v114_v13 }
 0x165   :  { %v113_v17 = vpop.xlane.xlu1 %112 }
 0x166   :  { %v117_v18 = vmul.f32 0.03125, %v113_v17 }
 0x168   :  { %v119_v19 = vadd.f32 1e-05, %v117_v18 }
 0x169   :  { %v116_v20 = vpop.xlane.xlu1 %115 }
 0x16a   :  { %1923 = vrsqrt.f32 %v119_v19  ;;  %v118_v21 = vmul.f32 0.03125, %v116_v20 }
 0x16c   :  { %v120_v22 = vadd.f32 1e-05, %v118_v21 }
 0x16e   :  { %1925 = vrsqrt.f32 %v120_v22 }
 0x174   :  { %v1924_v23 = vpop.eup %1923 }
 0x175   :  { %v123_v24 = vmul.f32 %v1924_v23, %v107_v6 }
 0x177   :  { %v131_v28 = vmul.f32 %v1602_v25, %v123_v24 }
 0x178   :  { %v1926_v26 = vpop.eup %1925 }
 0x179   :  { %v124_v27 = vmul.f32 %v1926_v26, %v108_v10  ;;  %v139_v31 = vadd.f32 %v1603_v29, %v131_v28  ;;  %v358_v10 = vshrl.u32 %v357_v9, 7 }
 0x17b   :  { %v132_v30 = vmul.f32 %v1602_v25, %v124_v27  ;;  %vm361_vm4 = vcmp.gt.s32.totalorder %v360_v11, %v358_v10 }
 0x17c   :  { %v2300_v12 = vsel %vm361_vm4, -1e+09, %v2068_v15 }
 0x17d   :  { %v140_v32 = vadd.f32 %v1603_v29, %v132_v30 }
 0x17f   :  { %v141_v34 = vpack.c.bf16 %v140_v32, %v139_v31 }
 0x181   :  { %1726 = vmatmul.mubr.msk.bf16.vlgmr.msra.gmra.mrb[0].mxu0 %vm97_vm0, %v141_v34 }
 0x182   :  { %1730 = vmatpush3.bf16.msra.mxu0 %v1907_v33  ;;  %1733 = vmatprep.mubr.msk.bf16.mxu0 %vm2069_vm1, %v2068_v15 }
 0x183   :  { %1731 = vmatprep.subr.bf16.mxu0 %v2068_v15 }
 0x186   :  { %1732 = vmatpush3.bf16.msra.mxu0 %v1908_v35 }
 0x187   :  { %1737 = vmatprep.subr.bf16.mxu0 %v2068_v15 }
 0x189   :  { %1734 = vmatmul.mubr.msk.bf16.vlgmr.msra.gmra.mrb[4].mxu0 %vm97_vm0, %v141_v34 }
 0x18a   :  { %1738 = vmatpush3.bf16.msra.mxu0 %v1909_v36  ;;  %1741 = vmatprep.mubr.msk.bf16.mxu0 %vm2069_vm1, %v2068_v15 }
 0x18b   :  { %1739 = vmatprep.subr.bf16.mxu0 %v2068_v15 }
 0x18e   :  { %1740 = vmatpush3.bf16.msra.mxu0 %v1910_v37 }
 0x18f   :  { %1751 = vmatprep.subr.bf16.mxu0 %v2068_v15 }
 0x191   :  { %1742 = vmatmul.mubr.msk.bf16.vlgmr.msra.gmra.mrb[8].mxu0 %vm97_vm0, %v141_v34 }
 0x192   :  { %1753 = vmatprep.mubr.msk.bf16.mxu0 %vm2069_vm1, %v2068_v15 }
 0x254   :  { %v202_v38 = vpop.f32.mrb[0].mxu0 }
 0x255   :  { %v1727_v39 = vpop.f32.mrb[1].mxu0  ;;  %v203_v48 = vadd.f32 %v1604_v43, %v202_v38 }
 0x256   :  { %v205_v40 = vpop.f32.mrb[2].mxu0 }
 0x257   :  { %v1728_v41 = vpop.f32.mrb[3].mxu0  ;;  %v206_v52 = vadd.f32 %v1604_v43, %v205_v40  ;;  %v209_v56 = vmul.f32 0.35355338, %v203_v48 }
 0x259   :  { %v210_v59 = vmul.f32 0.35355338, %v206_v52  ;;  %v2277_v63 = vpack.c.bf16 %v209_v56, %v209_v56 }
 0x25b   :  { %v2281_v5 = vpack.c.bf16 %v210_v59, %v210_v59 }
 0x25c   :  { %v274_v44 = vpop.f32.mrb[4].mxu0 }
 0x25d   :  { %v275_v45 = vadd.f32 %v1610_v42, %v274_v44  ;;  %v1735_v46 = vpop.f32.mrb[5].mxu0 }
 0x25e   :  { %v277_v47 = vpop.f32.mrb[6].mxu0 }
 0x25f   :  { %v2267_v49 = vpack.c.bf16 %v275_v45, %v275_v45  ;;  %v278_v50 = vadd.f32 %v1610_v42, %v277_v47  ;;  %v1736_v51 = vpop.f32.mrb[7].mxu0 }
 0x261   :  { %v2269_v53 = vpack.c.bf16 %v278_v50, %v278_v50  ;;  %v368_v54 = vsel %vm363_vm2, %v2267_v49, 0 }
 0x262   :  { %1746 = vmatpush3.bf16.xpose.msra.mxu1 %v368_v54 }
 0x263   :  { %v414_v57 = vsel %vm363_vm2, %v2269_v53, 0  ;;  %1757 = vmatprep.subr.bf16.mxu1 %v2068_v15 }
 0x264   :  { %v344_v58 = vpop.f32.mrb[8].mxu0  ;;  %1752 = vmatpush3.bf16.xpose.msra.mxu0 %v414_v57 }
 0x265   :  { %v345_v60 = vadd.f32 %v1616_v55, %v344_v58  ;;  %v1743_v61 = vpop.f32.mrb[9].mxu0  ;;  %1763 = vmatprep.subr.bf16.mxu0 %v2068_v15 }
 0x266   :  { %v347_v62 = vpop.f32.mrb[10].mxu0 }
 0x267   :  { %v2279_v2 = vpack.c.bf16 %v345_v60, %v345_v60  ;;  %v348_v3 = vadd.f32 %v1616_v55, %v347_v62  ;;  %v1744_v4 = vpop.f32.mrb[11].mxu0 }
 0x269   :  { %v2283_v6 = vpack.c.bf16 %v348_v3, %v348_v3  ;;  %1748 = vmatmul.mubr.msk.bf16.vlgmr.msra.gmra.mrb[0].mxu1 %vm363_vm2, %v2277_v63  ;;  %v485_v7 = vsel %vm483_vm3, %v2279_v2, 0 }
 0x26a   :  { %1758 = vmatpush3.bf16.msra.mxu1 %v485_v7  ;;  %1759 = vmatprep.mubr.msk.bf16.mxu1 %vm2069_vm1, %v2068_v15 }
 0x26b   :  { %1754 = vmatmul.mubr.msk.bf16.vlgmr.msra.gmra.mrb[12].mxu0 %vm363_vm2, %v2281_v5  ;;  %v531_v8 = vsel %vm483_vm3, %v2283_v6, 0  ;;  %1769 = vmatprep.subr.bf16.mxu1 %v2068_v15 }
 0x26c   :  { %1764 = vmatpush3.bf16.msra.mxu0 %v531_v8  ;;  %1765 = vmatprep.mubr.msk.bf16.mxu0 %vm2069_vm1, %v2068_v15 }
 0x26d   :  { %1775 = vmatprep.subr.bf16.mxu0 %v2068_v15 }
 0x33c   :  { %v404_v13 = vpop.f32.mrb[0].mxu1 }
 0x33d   :  { %v405_v14 = vadd.f32 %v404_v13, %v2300_v12  ;;  %v1749_v16 = vpop.f32.mrb[1].mxu1 }
 0x33e   :  { %v407_v17 = vpop.f32.mrb[2].mxu1  ;;  %v450_v18 = vpop.f32.mrb[12].mxu0 }
 0x33f   :  { %v451_v19 = vadd.f32 %v450_v18, %v2300_v12  ;;  %v1750_v20 = vpop.f32.mrb[3].mxu1  ;;  %v1755_v21 = vpop.f32.mrb[13].mxu0  ;;  %v456_v22 = vsel %vm363_vm2, %v405_v14, -inf }
 0x340   :  { %457 = vmax.xlane.f32.xlu0 %v456_v22  ;;  %v453_v23 = vpop.f32.mrb[14].mxu0 }
 0x341   :  { %v1756_v24 = vpop.f32.mrb[15].mxu0  ;;  %v459_v25 = vsel %vm363_vm2, %v451_v19, -inf }
 0x342   :  { %460 = vmax.xlane.f32.xlu1 %v459_v25 }
 0x353   :  { %625 = vrot.lane.b32.xlu1 %v2269_v53, %s2070_s4 }
 0x3cd   :  { %v458_v26 = vpop.xlane.xlu0 %457 }
 0x3ce   :  { %v462_v27 = vsub.f32 %v405_v14, %v458_v26 }
 0x3cf   :  { %v461_v28 = vpop.xlane.xlu1 %460 }
 0x3d0   :  { %v464_v29 = vmul.f32 1.442695, %v462_v27  ;;  %v463_v30 = vsub.f32 %v451_v19, %v461_v28 }
 0x3d2   :  { %1927 = vpow2.f32 %v464_v29  ;;  %v466_v31 = vmul.f32 1.442695, %v463_v30 }
 0x3d3   :  { %v626_v36 = vpop.permute.xlu1 %625 }
 0x3d4   :  { %1929 = vpow2.f32 %v466_v31  ;;  %v631_v47 = vsel %vm363_vm2, %v626_v36, 0 }
 0x3dc   :  { %v1928_v32 = vpop.eup %1927 }
 0x3dd   :  { %v468_v33 = vsel %vm363_vm2, %v1928_v32, 0.0 }
 0x3de   :  { %v1930_v34 = vpop.eup %1929  ;;  %469 = vadd.xlane.f32.xlu0 %v468_v33 }
 0x3df   :  { %v471_v35 = vsel %vm363_vm2, %v1930_v34, 0.0 }
 0x3e0   :  { %472 = vadd.xlane.f32.xlu1 %v471_v35 }
 0x3f1   :  { %573 = vrot.lane.b32.xlu1 %v2277_v63, %s2070_s4 }
 0x3f4   :  { %575 = vrot.lane.b32.xlu0 %v2267_v49, %s2070_s4 }
 0x3f5   :  { %623 = vrot.lane.b32.xlu1 %v2281_v5, %s2070_s4 }
 0x46b   :  { %v470_v37 = vpop.xlane.xlu0 %469 }
 0x46c   :  { %1931 = vrcp.f32 %v470_v37 }
 0x46d   :  { %v473_v38 = vpop.xlane.xlu1 %472 }
 0x46e   :  { %1933 = vrcp.f32 %v473_v38 }
 0x46f   :  { %v576_v42 = vpop.permute.xlu0 %575 }
 0x470   :  { %v581_v45 = vsel %vm363_vm2, %v576_v42, 0 }
 0x471   :  { %v574_v48 = vpop.permute.xlu1 %573 }
 0x475   :  { %v624_v50 = vpop.permute.xlu1 %623 }
 0x476   :  { %v1932_v39 = vpop.eup %1931 }
 0x477   :  { %v476_v40 = vmul.f32 %v1932_v39, %v1928_v32 }
 0x478   :  { %v1934_v41 = vpop.eup %1933 }
 0x479   :  { %v477_v43 = vmul.f32 %v1934_v41, %v1930_v34  ;;  %v478_v44 = vpack.c.bf16 %v476_v40, %v476_v40 }
 0x47b   :  { %1760 = vmatmul.mubr.msk.bf16.vlgmr.msra.gmra.mrb[4].mxu1 %vm363_vm2, %v478_v44  ;;  %v479_v46 = vpack.c.bf16 %v477_v43, %v477_v43 }
 0x47c   :  { %1770 = vmatpush3.bf16.xpose.msra.mxu1 %v581_v45  ;;  %1771 = vmatprep.mubr.msk.bf16.mxu1 %vm2069_vm1, %v2068_v15 }
 0x47d   :  { %1766 = vmatmul.mubr.msk.bf16.vlgmr.msra.gmra.mrb[16].mxu0 %vm363_vm2, %v479_v46  ;;  %1781 = vmatprep.subr.bf16.mxu1 %v2068_v15 }
 0x47e   :  { %1776 = vmatpush3.bf16.xpose.msra.mxu0 %v631_v47  ;;  %1777 = vmatprep.mubr.msk.bf16.mxu0 %vm2069_vm1, %v2068_v15 }
 0x47f   :  { %1787 = vmatprep.subr.bf16.mxu0 %v2068_v15 }
 0x483   :  { %1772 = vmatmul.mubr.msk.bf16.vlgmr.msra.gmra.mrb[8].mxu1 %vm363_vm2, %v574_v48 }
 0x484   :  { %1783 = vmatprep.mubr.msk.bf16.mxu1 %vm2069_vm1, %v2068_v15 }
 0x485   :  { %1778 = vmatmul.mubr.msk.bf16.vlgmr.msra.gmra.mrb[20].mxu0 %vm363_vm2, %v624_v50 }
 0x486   :  { %1789 = vmatprep.mubr.msk.bf16.mxu0 %vm2069_vm1, %v2068_v15 }
 0x54e   :  { %v2332_v51 = vpop.f32.mrb[4].mxu1 }
 0x54f   :  { %v1761_v52 = vpop.f32.mrb[5].mxu1 }
 0x550   :  { %v524_v54 = vpop.f32.mrb[6].mxu1  ;;  %v2334_v55 = vpop.f32.mrb[16].mxu0 }
 0x551   :  { %v1762_v56 = vpop.f32.mrb[7].mxu1  ;;  %v1767_v57 = vpop.f32.mrb[17].mxu0 }
 0x552   :  { %v570_v58 = vpop.f32.mrb[18].mxu0 }
 0x553   :  { %v1768_v59 = vpop.f32.mrb[19].mxu0 }
 0x556   :  { %v617_v60 = vpop.f32.mrb[8].mxu1 }
 0x557   :  { %v618_v61 = vadd.f32 %v617_v60, %v2300_v12  ;;  %v1773_v62 = vpop.f32.mrb[9].mxu1 }
 0x558   :  { %v620_v3 = vpop.f32.mrb[10].mxu1  ;;  %v667_v4 = vpop.f32.mrb[20].mxu0 }
 0x559   :  { %v668_v7 = vadd.f32 %v667_v4, %v2300_v12  ;;  %v1774_v8 = vpop.f32.mrb[11].mxu1  ;;  %v1779_v9 = vpop.f32.mrb[21].mxu0  ;;  %v673_v10 = vsel %vm363_vm2, %v618_v61, -inf }
 0x55a   :  { %674 = vmax.xlane.f32.xlu0 %v673_v10  ;;  %v670_v11 = vpop.f32.mrb[22].mxu0 }
 0x55b   :  { %v1780_v13 = vpop.f32.mrb[23].mxu0  ;;  %v676_v14 = vsel %vm363_vm2, %v668_v7, -inf }
 0x55c   :  { %677 = vmax.xlane.f32.xlu1 %v676_v14 }
 0x56d   :  { %745 = vrot.lane.b32.xlu1 %v2283_v6, %s2070_s4 }
 0x571   :  { %795 = vrot.lane.b32.xlu1 %v2267_v49, %s2071_s5 }
 0x575   :  { %845 = vrot.lane.b32.xlu1 %v2269_v53, %s2071_s5 }
 0x579   :  { %843 = vrot.lane.b32.xlu1 %v2281_v5, %s2071_s5 }
 0x5e7   :  { %v675_v16 = vpop.xlane.xlu0 %674 }
 0x5e8   :  { %v679_v17 = vsub.f32 %v618_v61, %v675_v16 }
 0x5e9   :  { %v678_v18 = vpop.xlane.xlu1 %677 }
 0x5ea   :  { %v681_v19 = vmul.f32 1.442695, %v679_v17  ;;  %v680_v20 = vsub.f32 %v668_v7, %v678_v18 }
 0x5ec   :  { %1935 = vpow2.f32 %v681_v19  ;;  %v683_v21 = vmul.f32 1.442695, %v680_v20 }
 0x5ed   :  { %v746_v22 = vpop.permute.xlu1 %745 }
 0x5ee   :  { %1937 = vpow2.f32 %v683_v21  ;;  %v751_v23 = vsel %vm483_vm3, %v746_v22, 0 }
 0x5ef   :  { %1788 = vmatpush3.bf16.msra.mxu0 %v751_v23 }
 0x5f0   :  { %1799 = vmatprep.subr.bf16.mxu0 %v2068_v15 }
 0x5f1   :  { %v796_v33 = vpop.permute.xlu1 %795 }
 0x5f2   :  { %v801_v39 = vsel %vm363_vm2, %v796_v33, 0 }
 0x5f5   :  { %v846_v38 = vpop.permute.xlu1 %845 }
 0x5f6   :  { %v1936_v24 = vpop.eup %1935  ;;  %v851_v41 = vsel %vm363_vm2, %v846_v38, 0 }
 0x5f7   :  { %v685_v25 = vsel %vm363_vm2, %v1936_v24, 0.0 }
 0x5f8   :  { %v1938_v26 = vpop.eup %1937  ;;  %686 = vadd.xlane.f32.xlu0 %v685_v25 }
 0x5f9   :  { %v688_v27 = vsel %vm363_vm2, %v1938_v26, 0.0  ;;  %v844_v43 = vpop.permute.xlu1 %843 }
 0x5fc   :  { %689 = vadd.xlane.f32.xlu0 %v688_v27 }
 0x612   :  { %697 = vrot.lane.b32.xlu0 %v2279_v2, %s2070_s4 }
 0x616   :  { %793 = vrot.lane.b32.xlu0 %v2277_v63, %s2071_s5 }
 0x685   :  { %v687_v28 = vpop.xlane.xlu0 %686 }
 0x686   :  { %1939 = vrcp.f32 %v687_v28 }
 0x689   :  { %v690_v29 = vpop.xlane.xlu0 %689 }
 0x68a   :  { %1941 = vrcp.f32 %v690_v29 }
 0x68d   :  { %v698_v30 = vpop.permute.xlu0 %697 }
 0x68e   :  { %v703_v31 = vsel %vm483_vm3, %v698_v30, 0 }
 0x68f   :  { %1782 = vmatpush3.bf16.msra.mxu1 %v703_v31 }
 0x690   :  { %v1940_v32 = vpop.eup %1939  ;;  %1793 = vmatprep.subr.bf16.mxu1 %v2068_v15 }
 0x691   :  { %v693_v34 = vmul.f32 %v1940_v32, %v1936_v24  ;;  %v794_v42 = vpop.permute.xlu0 %793 }
 0x693   :  { %v695_v35 = vpack.c.bf16 %v693_v34, %v693_v34 }
 0x694   :  { %v1942_v36 = vpop.eup %1941 }
 0x695   :  { %v694_v37 = vmul.f32 %v1942_v36, %v1938_v26  ;;  %1784 = vmatmul.mubr.msk.bf16.vlgmr.msra.gmra.mrb[12].mxu1 %vm363_vm2, %v695_v35 }
 0x696   :  { %1795 = vmatprep.mubr.msk.bf16.mxu1 %vm2069_vm1, %v2068_v15 }
 0x697   :  { %v696_v40 = vpack.c.bf16 %v694_v37, %v694_v37 }
 0x698   :  { %1794 = vmatpush3.bf16.xpose.msra.mxu1 %v801_v39 }
 0x699   :  { %1790 = vmatmul.mubr.msk.bf16.vlgmr.msra.gmra.mrb[24].mxu0 %vm363_vm2, %v696_v40  ;;  %1805 = vmatprep.subr.bf16.mxu1 %v2068_v15 }
 0x69a   :  { %1800 = vmatpush3.bf16.xpose.msra.mxu0 %v851_v41  ;;  %1801 = vmatprep.mubr.msk.bf16.mxu0 %vm2069_vm1, %v2068_v15 }
 0x69b   :  { %1811 = vmatprep.subr.bf16.mxu0 %v2068_v15 }
 0x69f   :  { %1796 = vmatmul.mubr.msk.bf16.vlgmr.msra.gmra.mrb[16].mxu1 %vm363_vm2, %v794_v42 }
 0x6a0   :  { %1807 = vmatprep.mubr.msk.bf16.mxu1 %vm2069_vm1, %v2068_v15 }
 0x6a1   :  { %1802 = vmatmul.mubr.msk.bf16.vlgmr.msra.gmra.mrb[28].mxu0 %vm363_vm2, %v844_v43 }
 0x6a2   :  { %1813 = vmatprep.mubr.msk.bf16.mxu0 %vm2069_vm1, %v2068_v15 }
 0x768   :  { %v2374_v44 = vpop.f32.mrb[12].mxu1 }
 0x769   :  { %v1785_v45 = vpop.f32.mrb[13].mxu1 }
 0x76a   :  { %v742_v46 = vpop.f32.mrb[14].mxu1 }
 0x76b   :  { %v1786_v47 = vpop.f32.mrb[15].mxu1 }
 0x76c   :  { %v2376_v48 = vpop.f32.mrb[24].mxu0 }
 0x76d   :  { %v1890_v50 = vpack.i.bf16 %v2376_v48, %v2374_v44  ;;  %v1791_v52 = vpop.f32.mrb[25].mxu0 }
 0x76e   :  { %v790_v54 = vpop.f32.mrb[26].mxu0 }
 0x76f   :  { %v1792_v56 = vpop.f32.mrb[27].mxu0 }
 0x772   :  { %v837_v57 = vpop.f32.mrb[16].mxu1 }
 0x773   :  { %v838_v58 = vadd.f32 %v837_v57, %v2300_v12  ;;  %v1797_v59 = vpop.f32.mrb[17].mxu1 }
 0x774   :  { %v840_v60 = vpop.f32.mrb[18].mxu1  ;;  %v887_v61 = vpop.f32.mrb[28].mxu0 }
 0x775   :  { %v888_v62 = vadd.f32 %v887_v61, %v2300_v12  ;;  %v1798_v3 = vpop.f32.mrb[19].mxu1  ;;  %v1803_v4 = vpop.f32.mrb[29].mxu0  ;;  %v893_v7 = vsel %vm363_vm2, %v838_v58, -inf }
 0x776   :  { %894 = vmax.xlane.f32.xlu0 %v893_v7  ;;  %v890_v8 = vpop.f32.mrb[30].mxu0 }
 0x777   :  { %v1804_v9 = vpop.f32.mrb[31].mxu0  ;;  %v896_v10 = vsel %vm363_vm2, %v888_v62, -inf }
 0x778   :  { %897 = vmax.xlane.f32.xlu1 %v896_v10 }
 0x789   :  { %965 = vrot.lane.b32.xlu1 %v2283_v6, %s2071_s5 }
 0x78d   :  { %1015 = vrot.lane.b32.xlu1 %v2267_v49, %s2072_s7 }
 0x791   :  { %1065 = vrot.lane.b32.xlu1 %v2269_v53, %s2072_s7 }
 0x795   :  { %1063 = vrot.lane.b32.xlu1 %v2281_v5, %s2072_s7 }
 0x803   :  { %v895_v11 = vpop.xlane.xlu0 %894 }
 0x804   :  { %v899_v13 = vsub.f32 %v838_v58, %v895_v11 }
 0x805   :  { %v898_v14 = vpop.xlane.xlu1 %897 }
 0x806   :  { %v901_v16 = vmul.f32 1.442695, %v899_v13  ;;  %v900_v17 = vsub.f32 %v888_v62, %v898_v14 }
 0x808   :  { %1943 = vpow2.f32 %v901_v16  ;;  %v903_v18 = vmul.f32 1.442695, %v900_v17 }
 0x809   :  { %v966_v19 = vpop.permute.xlu1 %965 }
 0x80a   :  { %1945 = vpow2.f32 %v903_v18  ;;  %v971_v20 = vsel %vm483_vm3, %v966_v19, 0 }
 0x80b   :  { %1812 = vmatpush3.bf16.msra.mxu0 %v971_v20 }
 0x80c   :  { %1823 = vmatprep.subr.bf16.mxu0 %v2068_v15 }
 0x80d   :  { %v1016_v27 = vpop.permute.xlu1 %1015 }
 0x811   :  { %v1066_v32 = vpop.permute.xlu1 %1065 }
 0x812   :  { %v1944_v49 = vpop.eup %1943  ;;  %v1071_v34 = vsel %vm363_vm2, %v1066_v32, 0 }
 0x813   :  { %v905_v53 = vsel %vm363_vm2, %v1944_v49, 0.0 }
 0x814   :  { %v1946_v21 = vpop.eup %1945  ;;  %906 = vadd.xlane.f32.xlu0 %v905_v53 }
 0x815   :  { %v908_v5 = vsel %vm363_vm2, %v1946_v21, 0.0  ;;  %v1064_v36 = vpop.permute.xlu1 %1063 }
 0x818   :  { %909 = vadd.xlane.f32.xlu0 %v908_v5 }
 0x82e   :  { %917 = vrot.lane.b32.xlu0 %v2279_v2, %s2071_s5 }
 0x832   :  { %1013 = vrot.lane.b32.xlu0 %v2277_v63, %s2072_s7  ;;  %v1021_v63 = vsel %vm363_vm2, %v1016_v27, 0 }
 0x8a1   :  { %v907_v22 = vpop.xlane.xlu0 %906 }
 0x8a2   :  { %1947 = vrcp.f32 %v907_v22  ;;  %v1911_v22 = vld [vmem:[%s2552_s9] sm:$0xff]  }
 0x8a5   :  { %v910_v23 = vpop.xlane.xlu0 %909 }
 0x8a6   :  { %1949 = vrcp.f32 %v910_v23 }
 0x8a9   :  { %v918_v24 = vpop.permute.xlu0 %917 }
 0x8aa   :  { %v923_v25 = vsel %vm483_vm3, %v918_v24, 0 }
 0x8ab   :  { %1806 = vmatpush3.bf16.msra.mxu1 %v923_v25  ;;  %v1912_v25 = vld [vmem:[%s2552_s9 + $0x8] sm:$0xff]  }
 0x8ac   :  { %v1948_v26 = vpop.eup %1947  ;;  %1817 = vmatprep.subr.bf16.mxu1 %v2068_v15 }
 0x8ad   :  { %v913_v28 = vmul.f32 %v1948_v26, %v1944_v49  ;;  %v1014_v35 = vpop.permute.xlu0 %1013 }
 0x8af   :  { %v915_v29 = vpack.c.bf16 %v913_v28, %v913_v28 }
 0x8b0   :  { %v1950_v30 = vpop.eup %1949 }
 0x8b1   :  { %v914_v31 = vmul.f32 %v1950_v30, %v1946_v21  ;;  %1808 = vmatmul.mubr.msk.bf16.vlgmr.msra.gmra.mrb[20].mxu1 %vm363_vm2, %v915_v29 }
 0x8b2   :  { %1819 = vmatprep.mubr.msk.bf16.mxu1 %vm2069_vm1, %v2068_v15 }
 0x8b3   :  { %v916_v33 = vpack.c.bf16 %v914_v31, %v914_v31 }
 0x8b4   :  { %1818 = vmatpush3.bf16.xpose.msra.mxu1 %v1021_v63 }
 0x8b5   :  { %1814 = vmatmul.mubr.msk.bf16.vlgmr.msra.gmra.mrb[32].mxu0 %vm363_vm2, %v916_v33  ;;  %1829 = vmatprep.subr.bf16.mxu1 %v2068_v15 }
 0x8b6   :  { %1824 = vmatpush3.bf16.xpose.msra.mxu0 %v1071_v34  ;;  %1825 = vmatprep.mubr.msk.bf16.mxu0 %vm2069_vm1, %v2068_v15 }
 0x8b7   :  { %1835 = vmatprep.subr.bf16.mxu0 %v2068_v15 }
 0x8bb   :  { %1820 = vmatmul.mubr.msk.bf16.vlgmr.msra.gmra.mrb[24].mxu1 %vm363_vm2, %v1014_v35 }
 0x8bc   :  { %1831 = vmatprep.mubr.msk.bf16.mxu1 %vm2069_vm1, %v2068_v15 }
 0x8bd   :  { %1826 = vmatmul.mubr.msk.bf16.vlgmr.msra.gmra.mrb[36].mxu0 %vm363_vm2, %v1064_v36 }
 0x8be   :  { %1837 = vmatprep.mubr.msk.bf16.mxu0 %vm2069_vm1, %v2068_v15 }
 0x984   :  { %v959_v37 = vpop.f32.mrb[20].mxu1 }
 0x985   :  { %v1809_v38 = vpop.f32.mrb[21].mxu1 }
 0x986   :  { %v962_v39 = vpop.f32.mrb[22].mxu1 }
 0x987   :  { %v1810_v40 = vpop.f32.mrb[23].mxu1 }
 0x988   :  { %v1007_v41 = vpop.f32.mrb[32].mxu0 }
 0x989   :  { %v1895_v42 = vpack.i.bf16 %v1007_v41, %v959_v37  ;;  %v1815_v43 = vpop.f32.mrb[33].mxu0 }
 0x98a   :  { %v1010_v45 = vpop.f32.mrb[34].mxu0 }
 0x98b   :  { %v1816_v46 = vpop.f32.mrb[35].mxu0 }
 0x98e   :  { %v1057_v47 = vpop.f32.mrb[24].mxu1 }
 0x98f   :  { %v1058_v52 = vadd.f32 %v1057_v47, %v2300_v12  ;;  %v1821_v54 = vpop.f32.mrb[25].mxu1 }
 0x990   :  { %v1060_v56 = vpop.f32.mrb[26].mxu1  ;;  %v1107_v57 = vpop.f32.mrb[36].mxu0 }
 0x991   :  { %v1108_v58 = vadd.f32 %v1107_v57, %v2300_v12  ;;  %v1822_v59 = vpop.f32.mrb[27].mxu1  ;;  %v1827_v60 = vpop.f32.mrb[37].mxu0  ;;  %v1113_v61 = vsel %vm363_vm2, %v1058_v52, -inf }
 0x992   :  { %1114 = vmax.xlane.f32.xlu0 %v1113_v61  ;;  %v1110_v62 = vpop.f32.mrb[38].mxu0 }
 0x993   :  { %v1828_v3 = vpop.f32.mrb[39].mxu0  ;;  %v1116_v4 = vsel %vm363_vm2, %v1108_v58, -inf }
 0x994   :  { %1117 = vmax.xlane.f32.xlu1 %v1116_v4 }
 0x9a5   :  { %1185 = vrot.lane.b32.xlu1 %v2283_v6, %s2072_s7 }
 0x9a9   :  { %1891 = vrot.lane.b32.xlu1 %v1890_v50, %s2073_s25 }
 0x9ad   :  { %1896 = vrot.lane.b32.xlu1 %v1895_v42, %s2074_s20 }
 0xa1f   :  { %v1115_v12 = vpop.xlane.xlu0 %1114 }
 0xa20   :  { %v1119_v7 = vsub.f32 %v1058_v52, %v1115_v12 }
 0xa21   :  { %v1118_v8 = vpop.xlane.xlu1 %1117 }
 0xa22   :  { %v1121_v9 = vmul.f32 1.442695, %v1119_v7  ;;  %v1120_v10 = vsub.f32 %v1108_v58, %v1118_v8 }
 0xa24   :  { %1951 = vpow2.f32 %v1121_v9  ;;  %v1123_v11 = vmul.f32 1.442695, %v1120_v10 }
 0xa25   :  { %v1186_v13 = vpop.permute.xlu1 %1185 }
 0xa26   :  { %1953 = vpow2.f32 %v1123_v11  ;;  %v1191_v14 = vsel %vm483_vm3, %v1186_v13, 0 }
 0xa27   :  { %1836 = vmatpush3.bf16.msra.mxu0 %v1191_v14 }
 0xa28   :  { %1849 = vmatprep.subr.bf16.mxu0 %v2068_v15 }
 0xa29   :  { %v1892_v63 = vpop.permute.xlu1 %1891 }
 0xa2a   :  { %v1894_v34 = vunpack.i.h.bf16 %v1892_v63  ;;  %v1893_v35 = vunpack.i.l.bf16 %v1892_v63  ;;  %v1921_v63 = vld [vmem:[%s2558_s15 + $0x30] sm:$0xff]  }
 0xa2c   :  { %v1258_v39 = vsel %vm363_vm2, %v2334_v55, %v1894_v34  ;;  %v1257_v40 = vsel %vm363_vm2, %v2332_v51, %v1893_v35  ;;  %v1638_v55 = vld [vmem:[%s2553_s10] ss:$0 sm:$0xff]  ;;  %s2076_s10 = smov [#allocation9]  }
 0xa2d   :  { %v1897_v33 = vpop.permute.xlu1 %1896  ;;  %v1645_v34 = vld [vmem:[%s2557_s14] ss:$0 sm:$0xff]  ;;  %s1589_s26 = sshll.u32 %s2076_s10, 4  ;;  %s1590_s26 = int_to_ptr.vmem [resolvable:$true] %s1589_s26 }
 0xa2e   :  { %v1952_v6 = vpop.eup %1951  ;;  %v1899_v36 = vunpack.i.h.bf16 %v1897_v33  ;;  %v1898_v37 = vunpack.i.l.bf16 %v1897_v33  ;;  %v1922_v33 = vld [vmem:[%s2558_s15 + $0x38] sm:$0xff]   ;;  %s2037_s28 = scalar_lea.vmem %s1590_s26, 256  ;;  %p2042_p11 = scmp.lt.s32.totalorder %s1590_s26, %s1590_s26 }
 0xa2f   :  { %v1125_v44 = vsel %vm363_vm2, %v1952_v6, 0.0  ;;  %p2038_p10 = scmp.ne.s32.totalorder %s1590_s26, %s2037_s28  ;;  %p2043_p12 = scmp.lt.s32.totalorder %s2037_s28, %s2037_s28 }
 0xa30   :  { %v1954_v48 = vpop.eup %1953  ;;  %1126 = vadd.xlane.f32.xlu0 %v1125_v44  ;;  %v1260_v43 = vsel %vm1259_vm5, %v1257_v40, %v1898_v37  ;;  %v1261_v45 = vsel %vm1259_vm5, %v1258_v39, %v1899_v36  ;;  %v1914_v44 = vld [vmem:[%s2556_s13 + $0x8] sm:$0xff]  }
 0xa31   :  { %v1128_v50 = vsel %vm363_vm2, %v1954_v48, 0.0  ;;  %p2044_p13 = por %p2043_p12, %p2042_p11 }
 0xa33   :  { %p2045_p0 = pnand %p2044_p13, %p2038_p10 }
 0xa34   :  { %1129 = vadd.xlane.f32.xlu0 %v1128_v50 }
 0xa4a   :  { %1137 = vrot.lane.b32.xlu0 %v2279_v2, %s2072_s7 }
 0xabd   :  { %v1127_v16 = vpop.xlane.xlu0 %1126 }
 0xabe   :  { %1955 = vrcp.f32 %v1127_v16 }
 0xac1   :  { %v1130_v17 = vpop.xlane.xlu0 %1129 }
 0xac2   :  { %1957 = vrcp.f32 %v1130_v17 }
 0xac5   :  { %v1138_v18 = vpop.permute.xlu0 %1137 }
 0xac6   :  { %v1143_v19 = vsel %vm483_vm3, %v1138_v18, 0 }
 0xac7   :  { %1830 = vmatpush3.bf16.msra.mxu1 %v1143_v19 }
 0xac8   :  { %v1956_v20 = vpop.eup %1955  ;;  %1841 = vmatprep.subr.bf16.mxu1 %v2068_v15 }
 0xac9   :  { %v1133_v49 = vmul.f32 %v1956_v20, %v1952_v6  ;;  %v1913_v6 = vld [vmem:[%s2556_s13] sm:$0xff]  }
 0xacb   :  { %v1135_v53 = vpack.c.bf16 %v1133_v49, %v1133_v49 }
 0xacc   :  { %v1958_v21 = vpop.eup %1957 }
 0xacd   :  { %v1134_v5 = vmul.f32 %v1958_v21, %v1954_v48  ;;  %1832 = vmatmul.mubr.msk.bf16.vlgmr.msra.gmra.mrb[28].mxu1 %vm363_vm2, %v1135_v53  ;;  %v1642_v53 = vld [vmem:[%s2554_s11] ss:$0 sm:$0xff] }
 0xace   :  { %1845 = vmatprep.mubr.msk.bf16.mxu1 %vm2069_vm1, %v2068_v15  ;;  %1842 = vmatpush3.bf16.msra.mxu1 %v1911_v22  ;;  %v1643_v22 = vld [vmem:[%s2555_s12] ss:$0 sm:$0xff] }
 0xacf   :  { %v1136_v2 = vpack.c.bf16 %v1134_v5, %v1134_v5  ;;  %1843 = vmatprep.subr.bf16.mxu1 %v2068_v15 }
 0xad1   :  { %1838 = vmatmul.mubr.msk.bf16.vlgmr.msra.gmra.mrb[40].mxu0 %vm363_vm2, %v1136_v2 }
 0xad2   :  { %1853 = vmatprep.mubr.msk.bf16.mxu0 %vm2069_vm1, %v2068_v15  ;;  %1844 = vmatpush3.bf16.msra.mxu1 %v1912_v25 }
 0xad3   :  { %1857 = vmatprep.subr.bf16.mxu1 %v2068_v15  ;;  %1850 = vmatpush3.bf16.msra.mxu0 %v1913_v6 }
 0xad4   :  { %1851 = vmatprep.subr.bf16.mxu0 %v2068_v15 }
 0xad7   :  { %1852 = vmatpush3.bf16.msra.mxu0 %v1914_v44 }
 0xba0   :  { %v1179_v23 = vpop.f32.mrb[28].mxu1 }
 0xba1   :  { %v1833_v24 = vpop.f32.mrb[29].mxu1 }
 0xba2   :  { %v1182_v26 = vpop.f32.mrb[30].mxu1 }
 0xba3   :  { %v1834_v27 = vpop.f32.mrb[31].mxu1 }
 0xba4   :  { %v1227_v28 = vpop.f32.mrb[40].mxu0  ;;  %v1915_v27 = vld [vmem:[%s2558_s15] sm:$0xff]  }
 0xba5   :  { %v1900_v29 = vpack.i.bf16 %v1227_v28, %v1179_v23  ;;  %v1839_v30 = vpop.f32.mrb[41].mxu0  ;;  %v1916_v28 = vld [vmem:[%s2558_s15 + $0x8] sm:$0xff]  }
 0xba6   :  { %v1230_v31 = vpop.f32.mrb[42].mxu0  ;;  %v1918_v30 = vld [vmem:[%s2558_s15 + $0x18] sm:$0xff]  }
 0xba7   :  { %1901 = vrot.lane.b32.xlu0 %v1900_v29, %s2075_s3  ;;  %v1840_v32 = vpop.f32.mrb[43].mxu0  ;;  %v1917_v29 = vld [vmem:[%s2558_s15 + $0x10] sm:$0xff]   ;;  %v1919_v31 = vld [vmem:[%s2558_s15 + $0x20] sm:$0xff]  }
 0xba8   :  { %v1920_v32 = vld [vmem:[%s2558_s15 + $0x28] sm:$0xff]  }
 0xc19   :  { %v1902_v38 = vpop.permute.xlu0 %1901 }
 0xc1a   :  { %v1904_v41 = vunpack.i.h.bf16 %v1902_v38  ;;  %v1903_v42 = vunpack.i.l.bf16 %v1902_v38 }
 0xc1c   :  { %v1264_v46 = vsel %vm1262_vm6, %v1261_v45, %v1904_v41  ;;  %v1263_v47 = vsel %vm1262_vm6, %v1260_v43, %v1903_v42 }
 0xc1d   :  { %v1265_v52 = vpack.c.bf16 %v1264_v46, %v1263_v47 }
 0xc1f   :  { %1266 = vst.msk [vmem:[#allocation2] sm:$0xff] %vm97_vm0, %v1265_v52 }
 0xc26   :  { %v1267_v54 = vld [vmem:[#allocation2] sm:$0xff] }
 0xc27   :  { %1846 = vmatmul.mubr.msk.bf16.vlgmr.msra.gmra.mrb[32].mxu1 %vm97_vm0, %v1267_v54 }
 0xc28   :  { %1873 = vmatprep.mubr.msk.bf16.mxu1 %vm2069_vm1, %v2068_v15  ;;  %1858 = vmatpush3.bf16.msra.mxu1 %v1915_v27 }
 0xc29   :  { %1859 = vmatprep.subr.bf16.mxu1 %v2068_v15 }
 0xc2c   :  { %1860 = vmatpush3.bf16.msra.mxu1 %v1916_v28 }
 0xc2d   :  { %1861 = vmatprep.subr.bf16.mxu1 %v2068_v15 }
 0xc30   :  { %1862 = vmatpush3.bf16.msra.mxu1 %v1917_v29 }
 0xc31   :  { %1863 = vmatprep.subr.bf16.mxu1 %v2068_v15 }
 0xc34   :  { %1864 = vmatpush3.bf16.msra.mxu1 %v1918_v30 }
 0xc35   :  { %1865 = vmatprep.subr.bf16.mxu1 %v2068_v15 }
 0xc38   :  { %1866 = vmatpush3.bf16.msra.mxu1 %v1919_v31 }
 0xc39   :  { %1867 = vmatprep.subr.bf16.mxu1 %v2068_v15 }
 0xc3c   :  { %1868 = vmatpush3.bf16.msra.mxu1 %v1920_v32 }
 0xc3d   :  { %1869 = vmatprep.subr.bf16.mxu1 %v2068_v15 }
 0xc40   :  { %1870 = vmatpush3.bf16.msra.mxu1 %v1921_v63 }
 0xc41   :  { %1871 = vmatprep.subr.bf16.mxu1 %v2068_v15 }
 0xc44   :  { %1872 = vmatpush3.bf16.msra.mxu1 %v1922_v33 }
 0xcfa   :  { %v1328_v51 = vpop.f32.mrb[32].mxu1 }
 0xcfb   :  { %v1329_v56 = vadd.f32 %v1638_v55, %v1328_v51  ;;  %v1847_v57 = vpop.f32.mrb[33].mxu1 }
 0xcfc   :  { %v1331_v58 = vpop.f32.mrb[34].mxu1 }
 0xcfd   :  { %v2462_v59 = vadd.f32 %v1329_v56, %v2207_v0  ;;  %v1332_v60 = vadd.f32 %v1638_v55, %v1331_v58  ;;  %v1848_v61 = vpop.f32.mrb[35].mxu1  ;;  %v1644_v58 = vld [vmem:[%s2559_s16] ss:$0 sm:$0xff] }
 0xcff   :  { %v2465_v62 = vadd.f32 %v1332_v60, %v2212_v1  ;;  %v1339_v3 = vsel %vm97_vm0, %v2462_v59, 0.0  ;;  %v1389_v60 = vadd.f32 %v1644_v58, %v2462_v59 }
 0xd00   :  { %1340 = vadd.xlane.f32.xlu1 %v1339_v3 }
 0xd01   :  { %v1342_v4 = vsel %vm97_vm0, %v2465_v62, 0.0 }
 0xd02   :  { %1343 = vadd.xlane.f32.xlu0 %v1342_v4 }
 0xd8d   :  { %v1341_v12 = vpop.xlane.xlu1 %1340 }
 0xd8e   :  { %v1345_v7 = vmul.f32 0.03125, %v1341_v12  ;;  %v1390_v12 = vadd.f32 %v1644_v58, %v2465_v62 }
 0xd8f   :  { %v1344_v8 = vpop.xlane.xlu0 %1343 }
 0xd90   :  { %v1347_v9 = vsub.f32 %v2462_v59, %v1345_v7  ;;  %v1346_v0 = vmul.f32 0.03125, %v1344_v8 }
 0xd92   :  { %v1348_v10 = vsub.f32 %v2465_v62, %v1346_v0  ;;  %v1349_v11 = vmul.f32 %v1347_v9, %v1347_v9 }
 0xd94   :  { %v1351_v1 = vsel %vm97_vm0, %v1349_v11, 0.0  ;;  %v1350_v13 = vmul.f32 %v1348_v10, %v1348_v10 }
 0xd95   :  { %1352 = vadd.xlane.f32.xlu0 %v1351_v1 }
 0xd96   :  { %v1354_v14 = vsel %vm97_vm0, %v1350_v13, 0.0 }
 0xd99   :  { %1355 = vadd.xlane.f32.xlu0 %v1354_v14 }
 0xe22   :  { %v1353_v48 = vpop.xlane.xlu0 %1352 }
 0xe23   :  { %v1357_v50 = vmul.f32 0.03125, %v1353_v48 }
 0xe25   :  { %v1359_v16 = vadd.f32 1e-05, %v1357_v50 }
 0xe26   :  { %v1356_v17 = vpop.xlane.xlu0 %1355 }
 0xe27   :  { %1959 = vrsqrt.f32 %v1359_v16  ;;  %v1358_v18 = vmul.f32 0.03125, %v1356_v17 }
 0xe29   :  { %v1360_v19 = vadd.f32 1e-05, %v1358_v18 }
 0xe2b   :  { %1961 = vrsqrt.f32 %v1360_v19 }
 0xe31   :  { %v1960_v20 = vpop.eup %1959 }
 0xe32   :  { %v1363_v49 = vmul.f32 %v1960_v20, %v1347_v9 }
 0xe34   :  { %v1371_v5 = vmul.f32 %v1642_v53, %v1363_v49 }
 0xe35   :  { %v1962_v21 = vpop.eup %1961 }
 0xe36   :  { %v1364_v2 = vmul.f32 %v1962_v21, %v1348_v10  ;;  %v1379_v24 = vadd.f32 %v1643_v22, %v1371_v5 }
 0xe38   :  { %v1372_v23 = vmul.f32 %v1642_v53, %v1364_v2 }
 0xe3a   :  { %v1380_v25 = vadd.f32 %v1643_v22, %v1372_v23 }
 0xe3c   :  { %v1381_v26 = vpack.c.bf16 %v1380_v25, %v1379_v24 }
 0xe3e   :  { %1854 = vmatmul.mubr.msk.bf16.vlgmr.msra.gmra.mrb[44].mxu0 %vm97_vm0, %v1381_v26 }
 0xf11   :  { %v1451_v35 = vpop.f32.mrb[44].mxu0 }
 0xf12   :  { %v1452_v36 = vadd.f32 %v1645_v34, %v1451_v35  ;;  %v1855_v37 = vpop.f32.mrb[45].mxu0 }
 0xf13   :  { %v1454_v38 = vpop.f32.mrb[46].mxu0 }
 0xf14   :  { %v1649_v39 = vmul.f32 -1.702, %v1452_v36  ;;  %v1455_v40 = vadd.f32 %v1645_v34, %v1454_v38  ;;  %v1856_v41 = vpop.f32.mrb[47].mxu0 }
 0xf16   :  { %v1462_v42 = vmul.f32 1.442695, %v1649_v39  ;;  %v1650_v43 = vmul.f32 -1.702, %v1455_v40 }
 0xf18   :  { %1963 = vpow2.f32 %v1462_v42  ;;  %v1464_v15 = vmul.f32 1.442695, %v1650_v43 }
 0xf1a   :  { %1965 = vpow2.f32 %v1464_v15 }
 0xf22   :  { %v1964_v45 = vpop.eup %1963 }
 0xf23   :  { %v1466_v46 = vadd.f32 1.0, %v1964_v45 }
 0xf24   :  { %v1966_v47 = vpop.eup %1965 }
 0xf25   :  { %1967 = vrcp.f32 %v1466_v46  ;;  %v1467_v52 = vadd.f32 1.0, %v1966_v47 }
 0xf27   :  { %1969 = vrcp.f32 %v1467_v52 }
 0xf2f   :  { %v1968_v54 = vpop.eup %1967 }
 0xf30   :  { %v1472_v51 = vmul.f32 %v1968_v54, %v1452_v36 }
 0xf31   :  { %v1970_v55 = vpop.eup %1969 }
 0xf32   :  { %v1473_v56 = vmul.f32 %v1970_v55, %v1455_v40 }
 0xf34   :  { %v1474_v57 = vpack.c.bf16 %v1473_v56, %v1472_v51 }
 0xf36   :  { %1874 = vmatmul.mubr.bf16.vlgmr.msra.gmra.mrb[36].mxu1 %v1474_v57 }
0x1009   :  { %v1573_v61 = vpop.f32.mrb[36].mxu1 }
0x100a   :  { %v1580_v3 = vadd.f32 %v1573_v61, %v1389_v60  ;;  %v1875_v4 = vpop.f32.mrb[37].mxu1 }
0x100b   :  { %v1576_v7 = vpop.f32.mrb[38].mxu1 }
0x100c   :  { %1582 = vst.msk [vmem:[#allocation9] sm:$0xff] %vm97_vm0, %v1580_v3  ;;  %v1581_v8 = vadd.f32 %v1576_v7, %v1390_v12  ;;  %v1876_v9 = vpop.f32.mrb[39].mxu1 }
0x100e   :  { %1583 = vst.msk [vmem:[#allocation9 + $0x8] sm:$0xff] %vm97_vm0, %v1581_v8 }
0x100f   :  { %2048 = shalt.err (!%p2045_p0)
}
0x1010   :  { %s2049_s0 = scalar_lea.hbm %s2560_s17, 256 }
0x1011   :  { %p2050_p1 = scmp.ne.s32.totalorder %s2560_s17, %s2049_s0  ;;  %p2053_p2 = scmp.lt.u32.totalorder %s2049_s0, %s2560_s17 }
0x1013   :  { %p2055_p3 = pnand %p2053_p2, %p2050_p1 }
0x1015   :  { %2058 = shalt.err (!%p2055_p3)
}
0x1016   :  { %s2077_s2 = smov 128  }
0x1017   :  { %1595 = dma.vmem_to_hbm [thread:$0]  %s1590_s26, 256, %s2560_s17, [#allocation5], %s2077_s2, %s2077_s2, %s2073_s25  }
0x1018   :  { %2063 = dma.done.wait [#allocation5], 256  }
0x1019   :  { %2064 = vsyncadd [#allocation5], 4294967040 }
0x101a   :  { %1599 = vsyncpa [#allocation4], 1 }
0x101b   :  { %1600 = vsyncpa [#allocation7], 1 }
0x101c   :  { %1601 = vsyncpa [#allocation5], 1 }

</bundles_post_ra>
